<compile_context>
chip_gen: v7x
topology: tpu7x:2x2x1
jax: 0.10.0
libtpu: 0.0.40
codegen_flags: <defaults>
</compile_context>

<pallas_src>
import functools

import jax
import jax.numpy as jnp
from jax import lax
from jax.experimental import pallas as pl
from jax.experimental.pallas import tpu as pltpu

CIN = 3          # input channels
COUT_OFF = 18    # conv1 output channels = 2 * KH * KW (dy/dx per tap)
COUT = 3         # deformable-conv output channels
KH = KW = 3      # kernel size (both convs), stride 1, no padding
NK = KH * KW
HIGHEST = lax.Precision.HIGHEST


def _split_bf16(a):
    """hi/lo bf16 split of an f32 array (explicit 3-pass 'HIGH' matmuls)."""
    hi = a.astype(jnp.bfloat16)
    lo = (a - hi.astype(jnp.float32)).astype(jnp.bfloat16)
    return hi, lo


def _make_kernel(H, W, n_pack, p_pad):
    lanes = n_pack * p_pad
    wc = W * CIN

    def kernel(colsT_ref, ximgT_ref, base_ref, w1T_ref, b1_ref,
               w2big_ref, b2_ref, out_ref, gcat_ref):
        # ---- conv1 (offset prediction), all packed images at once.
        # Stays HIGHEST: offsets feed floor(), so a sub-ulp shift could move a
        # sample across an integer cell boundary.
        offs = jnp.dot(w1T_ref[...], colsT_ref[0], precision=HIGHEST,
                       preferred_element_type=jnp.float32) + b1_ref[...]  # (18, lanes)

        # ---- batched 9-tap sampling-position math (rows 0..8 = y, 9..17 = x)
        pos = base_ref[...] + offs           # (18, lanes) sampling positions
        p0 = jnp.floor(pos)                  # low corner index (exact ints)
        frac = pos - p0                      # weight of the p0+1 corner
        rem = 1.0 - frac                     # weight of the p0 corner
        # No explicit in-range gate: the one-hots below only match corner
        # indices in [0, H) / [0, W), reproducing torchvision's boundary
        # handling (fully-outside samples / out-of-range corners contribute 0).

        h_iota = lax.broadcasted_iota(jnp.int32, (H, lanes), 0).astype(jnp.float32)
        w_iota = lax.broadcasted_iota(jnp.int32, (W, lanes), 0).astype(jnp.float32)

        # hoisted bf16 hi/lo split of each packed image (rows = c*W + w, cols = h)
        ximgs = [_split_bf16(ximgT_ref[0, m]) for m in range(n_pack)]

        for k in range(NK):                  # unrolled: 9 kernel taps
            y0 = p0[k:k + 1]                 # (1, lanes)
            x0 = p0[NK + k:NK + k + 1]
            # weighted row / column one-hots for all packed images at once
            wy = (jnp.where(h_iota == y0, rem[k:k + 1], 0.0) +
                  jnp.where(h_iota == y0 + 1.0, frac[k:k + 1], 0.0))            # (H, lanes)
            wx = (jnp.where(w_iota == x0, rem[NK + k:NK + k + 1], 0.0) +
                  jnp.where(w_iota == x0 + 1.0, frac[NK + k:NK + k + 1], 0.0))  # (W, lanes)
            wx_full = jnp.concatenate([wx] * CIN, axis=0)     # (W*CIN, lanes)
            wy_hi, wy_lo = _split_bf16(wy)
            for m in range(n_pack):          # per-image MXU row gather
                l0, l1 = m * p_pad, (m + 1) * p_pad
                xh, xl = ximgs[m]
                # explicit bf16x3 ("HIGH"): three 1-pass bf16 matmuls instead
                # of one 6-pass HIGHEST f32 matmul.
                r = (jnp.dot(xh, wy_hi[:, l0:l1], preferred_element_type=jnp.float32)
                     + jnp.dot(xl, wy_hi[:, l0:l1], preferred_element_type=jnp.float32)
                     + jnp.dot(xh, wy_lo[:, l0:l1], preferred_element_type=jnp.float32))
                gcat_ref[k * wc:(k + 1) * wc, l0:l1] = r * wx_full[:, l0:l1]

        # fused column-sum + Cin contraction + 9-tap sum in one wide matmul
        # (COUT, 9*W*CIN) @ (9*W*CIN, lanes).
        out = jnp.dot(w2big_ref[...], gcat_ref[...], precision=HIGHEST,
                      preferred_element_type=jnp.float32) + b2_ref[...]
        out_ref[0] = out.astype(out_ref.dtype)

    return kernel


def _choose_n_pack(n):
    """Images packed into the lane axis per grid step.  Keep >= 2 grid steps
    when possible so v7x can shard the ("parallel",) grid over both cores."""
    best = 1
    for p in range(1, min(n, 8) + 1):
        if n % p == 0 and n // p >= 2:
            best = p
    return best


@functools.partial(jax.jit, static_argnames=("n_pack",))
def deform_model_forward(x, w1, b1, w2, b2, n_pack=None):
    """x: (N, 3, H, W) float32 NCHW.  Returns (N, 3, H-2, W-2) NCHW."""
    N, C, H, W = x.shape
    assert C == CIN
    Ho, Wo = H - KH + 1, W - KW + 1
    P = Ho * Wo
    p_pad = ((P + 127) // 128) * 128      # lane-pad each image to a 128-multiple
    WC = W * CIN
    NCOLS = CIN * KH * KW
    if n_pack is None:
        n_pack = _choose_n_pack(N)
    assert N % n_pack == 0
    G = N // n_pack
    lanes = n_pack * p_pad

    # ---------------- layout glue (plain JAX) ----------------
    # im2col for conv1, spatial axis last (lane axis), zero-padded to p_pad
    patches = []
    for c in range(CIN):
        for i in range(KH):
            for j in range(KW):
                patches.append(x[:, c, i:i + Ho, j:j + Wo])
    colsT = jnp.stack(patches, axis=1).reshape(N, NCOLS, P)
    colsT = jnp.pad(colsT, ((0, 0), (0, 0), (0, p_pad - P)))
    colsT = colsT.reshape(G, n_pack, NCOLS, p_pad).transpose(0, 2, 1, 3) \
                 .reshape(G, NCOLS, lanes)                       # (G, 27, lanes)

    # image with channel-major rows (row = c*W + w, col = h)
    ximgT = jnp.transpose(x, (0, 1, 3, 2)).reshape(G, n_pack, WC, H)

    # per-tap sampling-position bases: rows 0..8 = oy + i_k, rows 9..17 = ox + j_k
    oy, ox = jnp.meshgrid(jnp.arange(Ho, dtype=jnp.float32),
                          jnp.arange(Wo, dtype=jnp.float32), indexing="ij")
    oy = jnp.pad(oy.reshape(P), (0, p_pad - P))
    ox = jnp.pad(ox.reshape(P), (0, p_pad - P))
    i_k = (jnp.arange(NK) // KW).astype(jnp.float32)
    j_k = (jnp.arange(NK) % KW).astype(jnp.float32)
    base = jnp.concatenate([oy[None, :] + i_k[:, None],
                            ox[None, :] + j_k[:, None]], axis=0)  # (18, p_pad)
    base = jnp.tile(base, (1, n_pack))                             # (18, lanes)

    # conv1 weights, rows deinterleaved to [dy_0..dy_8 ; dx_0..dx_8]
    perm = jnp.concatenate([jnp.arange(0, 2 * NK, 2), jnp.arange(1, 2 * NK, 2)])
    w1T = w1.reshape(COUT_OFF, NCOLS)[perm]                        # (18, 27)
    b1_col = b1[perm].reshape(COUT_OFF, 1)

    # deform-conv weights expanded so one wide matmul performs the column-sum
    # + Cin contraction + 9-tap sum:  w2big[o, k*W*CIN + c*W + w] = w2[o,c,i_k,j_k]
    w2big = jnp.concatenate(
        [jnp.repeat(w2[:, :, k // KW, k % KW], W, axis=1) for k in range(NK)],
        axis=1)                                                    # (3, 9*W*CIN)
    b2_col = b2.reshape(COUT, 1)

    kernel = _make_kernel(H, W, n_pack, p_pad)
    outT = pl.pallas_call(
        kernel,
        out_shape=jax.ShapeDtypeStruct((G, COUT, lanes), jnp.float32),
        grid_spec=pltpu.PrefetchScalarGridSpec(
            num_scalar_prefetch=0,
            grid=(G,),
            in_specs=[
                pl.BlockSpec((1, NCOLS, lanes), lambda b: (b, 0, 0)),
                pl.BlockSpec((1, n_pack, WC, H), lambda b: (b, 0, 0, 0)),
                pl.BlockSpec((2 * NK, lanes), lambda b: (0, 0)),
                pl.BlockSpec((COUT_OFF, NCOLS), lambda b: (0, 0)),
                pl.BlockSpec((COUT_OFF, 1), lambda b: (0, 0)),
                pl.BlockSpec((COUT, NK * WC), lambda b: (0, 0)),
                pl.BlockSpec((COUT, 1), lambda b: (0, 0)),
            ],
            out_specs=pl.BlockSpec((1, COUT, lanes), lambda b: (b, 0, 0)),
            scratch_shapes=[pltpu.VMEM((NK * WC, lanes), jnp.float32)],
        ),
        compiler_params=pltpu.CompilerParams(
            dimension_semantics=("parallel",)),
    )(colsT, ximgT, base, w1T, b1_col, w2big, b2_col)

    # unpack lanes -> (N, COUT, Ho, Wo); drop the lane padding
    out = outT.reshape(G, COUT, n_pack, p_pad).transpose(0, 2, 1, 3) \
              .reshape(N, COUT, p_pad)[:, :, :P]
    return out.reshape(N, COUT, Ho, Wo)


# ------------------- pure-JAX reference (for self-check) -------------------
def reference_forward(x, w1, b1, w2, b2):
    N, C, H, W = x.shape
    Ho, Wo = H - KH + 1, W - KW + 1
    offs = lax.conv_general_dilated(
        x, w1, (1, 1), "VALID",
        dimension_numbers=("NCHW", "OIHW", "NCHW"),
        precision=HIGHEST) + b1[None, :, None, None]
    oy = jnp.arange(Ho, dtype=jnp.float32)[:, None]
    ox = jnp.arange(Wo, dtype=jnp.float32)[None, :]
    out = jnp.zeros((N, COUT, Ho, Wo), jnp.float32) + b2[None, :, None, None]
    for k in range(KH * KW):
        i, j = k // KW, k % KW
        dy = offs[:, 2 * k]
        dx = offs[:, 2 * k + 1]
        y = oy[None] + i + dy
        xx = ox[None] + j + dx
        y0 = jnp.floor(y)
        x0 = jnp.floor(xx)
        ly, lx = y - y0, xx - x0
        hy, hx = 1.0 - ly, 1.0 - lx
        samp = jnp.zeros((N, C, Ho, Wo), jnp.float32)
        for (cy, cx, wgt) in ((y0, x0, hy * hx), (y0, x0 + 1, hy * lx),
                              (y0 + 1, x0, ly * hx), (y0 + 1, x0 + 1, ly * lx)):
            ok = ((y > -1) & (y < H) & (xx > -1) & (xx < W) &
                  (cy >= 0) & (cy < H) & (cx >= 0) & (cx < W))
            cyc = jnp.clip(cy, 0, H - 1).astype(jnp.int32)
            cxc = jnp.clip(cx, 0, W - 1).astype(jnp.int32)
            v = x[jnp.arange(N)[:, None, None, None],
                  jnp.arange(C)[None, :, None, None],
                  cyc[:, None, :, :],
                  cxc[:, None, :, :]]
            samp = samp + v * (wgt * ok)[:, None, :, :]
        out = out + jnp.einsum("nchw,oc->nohw", samp, w2[:, :, i, j],
                               precision=HIGHEST)
    return out


if __name__ == "__main__":
    key = jax.random.PRNGKey(0)
    k1, k2, k3, k4, k5 = jax.random.split(key, 5)
    # Deterministic synthetic parameters (shapes from the module's __init__).
    w1 = jax.random.normal(k1, (COUT_OFF, CIN, KH, KW), jnp.float32) * 0.2
    b1 = jax.random.normal(k2, (COUT_OFF,), jnp.float32) * 0.1
    w2 = jax.random.normal(k3, (COUT, CIN, KH, KW), jnp.float32) * 0.2
    b2 = jax.random.normal(k4, (COUT,), jnp.float32) * 0.1

    x = jax.random.normal(k5, (2, CIN, 16, 16), jnp.float32)

    out = jax.block_until_ready(deform_model_forward(x, w1, b1, w2, b2))
    assert out.shape == (2, COUT, 14, 14), out.shape

    ref = reference_forward(x, w1, b1, w2, b2)
    max_err = float(jnp.max(jnp.abs(out - ref)))
    # 1e-3 tolerance: bf16x3 row gathers are ~1e-5 off a full-f32 reference;
    # any structural error would be O(0.1 - 1).
    assert jnp.allclose(out, ref, atol=1e-3, rtol=1e-3), max_err

    print("KERNEL_OK")
</pallas_src>

<mosaic_0001>
module attributes {stable_mosaic.version = 11 : i64} {
  func.func @kernel(%arg0: i32, %arg1: memref<1x27x256xf32, #tpu.memory_space<vmem>>, %arg2: memref<1x1x48x16xf32, #tpu.memory_space<vmem>>, %arg3: memref<18x256xf32, #tpu.memory_space<vmem>>, %arg4: memref<18x27xf32, #tpu.memory_space<vmem>>, %arg5: memref<18x1xf32, #tpu.memory_space<vmem>>, %arg6: memref<3x432xf32, #tpu.memory_space<vmem>>, %arg7: memref<3x1xf32, #tpu.memory_space<vmem>>, %arg8: memref<1x3x256xf32, #tpu.memory_space<vmem>>, %arg9: memref<432x256xf32, #tpu.memory_space<vmem>>) attributes {dimension_semantics = [#tpu.dimension_semantics<parallel>], iteration_bounds = array<i64: 2>, scalar_prefetch = 0 : i64, scratch_operands = 1 : i64, tpu.core_type = #tpu.core_type<tc>, window_params = [{transform_indices = @transform_0, window_bounds = array<i64: 1, 27, 256>}, {transform_indices = @transform_1, window_bounds = array<i64: 1, 1, 48, 16>}, {pipeline_mode = #tpu.pipeline_mode<synchronous>, transform_indices = @transform_2, window_bounds = array<i64: 18, 256>}, {pipeline_mode = #tpu.pipeline_mode<synchronous>, transform_indices = @transform_3, window_bounds = array<i64: 18, 27>}, {pipeline_mode = #tpu.pipeline_mode<synchronous>, transform_indices = @transform_4, window_bounds = array<i64: 18, 1>}, {pipeline_mode = #tpu.pipeline_mode<synchronous>, transform_indices = @transform_5, window_bounds = array<i64: 3, 432>}, {pipeline_mode = #tpu.pipeline_mode<synchronous>, transform_indices = @transform_6, window_bounds = array<i64: 3, 1>}, {transform_indices = @transform_7, window_bounds = array<i64: 1, 3, 256>}]} {
    %c0 = arith.constant 0 : index
    %c0_0 = arith.constant 0 : index
    %0 = vector.load %arg4[%c0, %c0_0] : memref<18x27xf32, #tpu.memory_space<vmem>>, vector<18x27xf32>
    %c0_1 = arith.constant 0 : index
    %c0_2 = arith.constant 0 : index
    %c0_3 = arith.constant 0 : index
    %1 = vector.load %arg1[%c0_1, %c0_2, %c0_3] : memref<1x27x256xf32, #tpu.memory_space<vmem>>, vector<1x27x256xf32>
    %2 = vector.shape_cast %1 : vector<1x27x256xf32> to vector<27x256xf32>
    %cst = arith.constant dense<0.000000e+00> : vector<18x256xf32>
    %3 = tpu.matmul %0, %2, %cst {dimension_numbers = #tpu.dot_dimension_numbers<[1], [0], [0], [1], [0, 0, 1, 1], [], []>, precision = #tpu.contract_precision<fp32>} : vector<18x27xf32>, vector<27x256xf32>, vector<18x256xf32> -> vector<18x256xf32>
    %c0_4 = arith.constant 0 : index
    %c0_5 = arith.constant 0 : index
    %4 = vector.load %arg5[%c0_4, %c0_5] : memref<18x1xf32, #tpu.memory_space<vmem>>, vector<18x1xf32>
    %5 = vector.broadcast %4 : vector<18x1xf32> to vector<18x256xf32>
    %6 = arith.addf %3, %5 : vector<18x256xf32>
    %c0_6 = arith.constant 0 : index
    %c0_7 = arith.constant 0 : index
    %7 = vector.load %arg3[%c0_6, %c0_7] : memref<18x256xf32, #tpu.memory_space<vmem>>, vector<18x256xf32>
    %8 = arith.addf %7, %6 : vector<18x256xf32>
    %9 = math.floor %8 : vector<18x256xf32>
    %10 = arith.subf %8, %9 : vector<18x256xf32>
    %cst_8 = arith.constant 1.000000e+00 : f32
    %11 = vector.broadcast %cst_8 : f32 to vector<18x256xf32>
    %12 = arith.subf %11, %10 : vector<18x256xf32>
    %13 = tpu.iota {dimensions = array<i32: 0>} : vector<16x256xi32>
    %14 = arith.sitofp %13 : vector<16x256xi32> to vector<16x256xf32>
    %15 = tpu.iota {dimensions = array<i32: 0>} : vector<16x256xi32>
    %16 = arith.sitofp %15 : vector<16x256xi32> to vector<16x256xf32>
    %c0_9 = arith.constant 0 : index
    %c0_10 = arith.constant 0 : index
    %c0_11 = arith.constant 0 : index
    %c0_12 = arith.constant 0 : index
    %17 = vector.load %arg2[%c0_9, %c0_10, %c0_11, %c0_12] : memref<1x1x48x16xf32, #tpu.memory_space<vmem>>, vector<1x1x48x16xf32>
    %18 = vector.shape_cast %17 : vector<1x1x48x16xf32> to vector<48x16xf32>
    %19 = arith.truncf %18 : vector<48x16xf32> to vector<48x16xbf16>
    %20 = arith.extf %19 : vector<48x16xbf16> to vector<48x16xf32>
    %21 = arith.subf %18, %20 : vector<48x16xf32>
    %22 = arith.truncf %21 : vector<48x16xf32> to vector<48x16xbf16>
    %23 = vector.extract_strided_slice %9 {offsets = [0, 0], sizes = [1, 256], strides = [1, 1]} : vector<18x256xf32> to vector<1x256xf32>
    %24 = vector.extract_strided_slice %9 {offsets = [9, 0], sizes = [1, 256], strides = [1, 1]} : vector<18x256xf32> to vector<1x256xf32>
    %25 = vector.broadcast %23 : vector<1x256xf32> to vector<16x256xf32>
    %26 = arith.cmpf oeq, %14, %25 : vector<16x256xf32>
    %27 = vector.extract_strided_slice %12 {offsets = [0, 0], sizes = [1, 256], strides = [1, 1]} : vector<18x256xf32> to vector<1x256xf32>
    %cst_13 = arith.constant 0.000000e+00 : f32
    %28 = vector.shape_cast %27 : vector<1x256xf32> to vector<1x256xf32>
    %29 = vector.broadcast %28 : vector<1x256xf32> to vector<16x256xf32>
    %30 = vector.broadcast %cst_13 : f32 to vector<16x256xf32>
    %31 = arith.select %26, %29, %30 : vector<16x256xi1>, vector<16x256xf32>
    %cst_14 = arith.constant 1.000000e+00 : f32
    %32 = vector.broadcast %cst_14 : f32 to vector<1x256xf32>
    %33 = arith.addf %23, %32 : vector<1x256xf32>
    %34 = vector.broadcast %33 : vector<1x256xf32> to vector<16x256xf32>
    %35 = arith.cmpf oeq, %14, %34 : vector<16x256xf32>
    %36 = vector.extract_strided_slice %10 {offsets = [0, 0], sizes = [1, 256], strides = [1, 1]} : vector<18x256xf32> to vector<1x256xf32>
    %cst_15 = arith.constant 0.000000e+00 : f32
    %37 = vector.shape_cast %36 : vector<1x256xf32> to vector<1x256xf32>
    %38 = vector.broadcast %37 : vector<1x256xf32> to vector<16x256xf32>
    %39 = vector.broadcast %cst_15 : f32 to vector<16x256xf32>
    %40 = arith.select %35, %38, %39 : vector<16x256xi1>, vector<16x256xf32>
    %41 = arith.addf %31, %40 : vector<16x256xf32>
    %42 = vector.broadcast %24 : vector<1x256xf32> to vector<16x256xf32>
    %43 = arith.cmpf oeq, %16, %42 : vector<16x256xf32>
    %44 = vector.extract_strided_slice %12 {offsets = [9, 0], sizes = [1, 256], strides = [1, 1]} : vector<18x256xf32> to vector<1x256xf32>
    %cst_16 = arith.constant 0.000000e+00 : f32
    %45 = vector.shape_cast %44 : vector<1x256xf32> to vector<1x256xf32>
    %46 = vector.broadcast %45 : vector<1x256xf32> to vector<16x256xf32>
    %47 = vector.broadcast %cst_16 : f32 to vector<16x256xf32>
    %48 = arith.select %43, %46, %47 : vector<16x256xi1>, vector<16x256xf32>
    %cst_17 = arith.constant 1.000000e+00 : f32
    %49 = vector.broadcast %cst_17 : f32 to vector<1x256xf32>
    %50 = arith.addf %24, %49 : vector<1x256xf32>
    %51 = vector.broadcast %50 : vector<1x256xf32> to vector<16x256xf32>
    %52 = arith.cmpf oeq, %16, %51 : vector<16x256xf32>
    %53 = vector.extract_strided_slice %10 {offsets = [9, 0], sizes = [1, 256], strides = [1, 1]} : vector<18x256xf32> to vector<1x256xf32>
    %cst_18 = arith.constant 0.000000e+00 : f32
    %54 = vector.shape_cast %53 : vector<1x256xf32> to vector<1x256xf32>
    %55 = vector.broadcast %54 : vector<1x256xf32> to vector<16x256xf32>
    %56 = vector.broadcast %cst_18 : f32 to vector<16x256xf32>
    %57 = arith.select %52, %55, %56 : vector<16x256xi1>, vector<16x256xf32>
    %58 = arith.addf %48, %57 : vector<16x256xf32>
    %59 = tpu.concatenate %58, %58, %58 in 0 : vector<16x256xf32>, vector<16x256xf32>, vector<16x256xf32> -> vector<48x256xf32>
    %60 = arith.truncf %41 : vector<16x256xf32> to vector<16x256xbf16>
    %61 = arith.extf %60 : vector<16x256xbf16> to vector<16x256xf32>
    %62 = arith.subf %41, %61 : vector<16x256xf32>
    %63 = arith.truncf %62 : vector<16x256xf32> to vector<16x256xbf16>
    %cst_19 = arith.constant dense<0.000000e+00> : vector<48x256xf32>
    %64 = tpu.matmul %19, %60, %cst_19 {dimension_numbers = #tpu.dot_dimension_numbers<[1], [0], [0], [1], [0, 0, 1, 1], [], []>} : vector<48x16xbf16>, vector<16x256xbf16>, vector<48x256xf32> -> vector<48x256xf32>
    %cst_20 = arith.constant dense<0.000000e+00> : vector<48x256xf32>
    %65 = tpu.matmul %22, %60, %cst_20 {dimension_numbers = #tpu.dot_dimension_numbers<[1], [0], [0], [1], [0, 0, 1, 1], [], []>} : vector<48x16xbf16>, vector<16x256xbf16>, vector<48x256xf32> -> vector<48x256xf32>
    %66 = arith.addf %64, %65 : vector<48x256xf32>
    %cst_21 = arith.constant dense<0.000000e+00> : vector<48x256xf32>
    %67 = tpu.matmul %19, %63, %cst_21 {dimension_numbers = #tpu.dot_dimension_numbers<[1], [0], [0], [1], [0, 0, 1, 1], [], []>} : vector<48x16xbf16>, vector<16x256xbf16>, vector<48x256xf32> -> vector<48x256xf32>
    %68 = arith.addf %66, %67 : vector<48x256xf32>
    %69 = arith.mulf %68, %59 : vector<48x256xf32>
    %c0_22 = arith.constant 0 : index
    %c0_23 = arith.constant 0 : index
    %70 = vector.load %arg9[%c0_22, %c0_23] : memref<432x256xf32, #tpu.memory_space<vmem>>, vector<48x256xf32>
    tpu.vector_store %arg9[%c0_22, %c0_23], %69 {strides = array<i32>} : memref<432x256xf32, #tpu.memory_space<vmem>>, vector<48x256xf32>,
    %71 = vector.extract_strided_slice %9 {offsets = [1, 0], sizes = [1, 256], strides = [1, 1]} : vector<18x256xf32> to vector<1x256xf32>
    %72 = vector.extract_strided_slice %9 {offsets = [10, 0], sizes = [1, 256], strides = [1, 1]} : vector<18x256xf32> to vector<1x256xf32>
    %73 = vector.broadcast %71 : vector<1x256xf32> to vector<16x256xf32>
    %74 = arith.cmpf oeq, %14, %73 : vector<16x256xf32>
    %75 = vector.extract_strided_slice %12 {offsets = [1, 0], sizes = [1, 256], strides = [1, 1]} : vector<18x256xf32> to vector<1x256xf32>
    %cst_24 = arith.constant 0.000000e+00 : f32
    %76 = vector.shape_cast %75 : vector<1x256xf32> to vector<1x256xf32>
    %77 = vector.broadcast %76 : vector<1x256xf32> to vector<16x256xf32>
    %78 = vector.broadcast %cst_24 : f32 to vector<16x256xf32>
    %79 = arith.select %74, %77, %78 : vector<16x256xi1>, vector<16x256xf32>
    %cst_25 = arith.constant 1.000000e+00 : f32
    %80 = vector.broadcast %cst_25 : f32 to vector<1x256xf32>
    %81 = arith.addf %71, %80 : vector<1x256xf32>
    %82 = vector.broadcast %81 : vector<1x256xf32> to vector<16x256xf32>
    %83 = arith.cmpf oeq, %14, %82 : vector<16x256xf32>
    %84 = vector.extract_strided_slice %10 {offsets = [1, 0], sizes = [1, 256], strides = [1, 1]} : vector<18x256xf32> to vector<1x256xf32>
    %cst_26 = arith.constant 0.000000e+00 : f32
    %85 = vector.shape_cast %84 : vector<1x256xf32> to vector<1x256xf32>
    %86 = vector.broadcast %85 : vector<1x256xf32> to vector<16x256xf32>
    %87 = vector.broadcast %cst_26 : f32 to vector<16x256xf32>
    %88 = arith.select %83, %86, %87 : vector<16x256xi1>, vector<16x256xf32>
    %89 = arith.addf %79, %88 : vector<16x256xf32>
    %90 = vector.broadcast %72 : vector<1x256xf32> to vector<16x256xf32>
    %91 = arith.cmpf oeq, %16, %90 : vector<16x256xf32>
    %92 = vector.extract_strided_slice %12 {offsets = [10, 0], sizes = [1, 256], strides = [1, 1]} : vector<18x256xf32> to vector<1x256xf32>
    %cst_27 = arith.constant 0.000000e+00 : f32
    %93 = vector.shape_cast %92 : vector<1x256xf32> to vector<1x256xf32>
    %94 = vector.broadcast %93 : vector<1x256xf32> to vector<16x256xf32>
    %95 = vector.broadcast %cst_27 : f32 to vector<16x256xf32>
    %96 = arith.select %91, %94, %95 : vector<16x256xi1>, vector<16x256xf32>
    %cst_28 = arith.constant 1.000000e+00 : f32
    %97 = vector.broadcast %cst_28 : f32 to vector<1x256xf32>
    %98 = arith.addf %72, %97 : vector<1x256xf32>
    %99 = vector.broadcast %98 : vector<1x256xf32> to vector<16x256xf32>
    %100 = arith.cmpf oeq, %16, %99 : vector<16x256xf32>
    %101 = vector.extract_strided_slice %10 {offsets = [10, 0], sizes = [1, 256], strides = [1, 1]} : vector<18x256xf32> to vector<1x256xf32>
    %cst_29 = arith.constant 0.000000e+00 : f32
    %102 = vector.shape_cast %101 : vector<1x256xf32> to vector<1x256xf32>
    %103 = vector.broadcast %102 : vector<1x256xf32> to vector<16x256xf32>
    %104 = vector.broadcast %cst_29 : f32 to vector<16x256xf32>
    %105 = arith.select %100, %103, %104 : vector<16x256xi1>, vector<16x256xf32>
    %106 = arith.addf %96, %105 : vector<16x256xf32>
    %107 = tpu.concatenate %106, %106, %106 in 0 : vector<16x256xf32>, vector<16x256xf32>, vector<16x256xf32> -> vector<48x256xf32>
    %108 = arith.truncf %89 : vector<16x256xf32> to vector<16x256xbf16>
    %109 = arith.extf %108 : vector<16x256xbf16> to vector<16x256xf32>
    %110 = arith.subf %89, %109 : vector<16x256xf32>
    %111 = arith.truncf %110 : vector<16x256xf32> to vector<16x256xbf16>
    %cst_30 = arith.constant dense<0.000000e+00> : vector<48x256xf32>
    %112 = tpu.matmul %19, %108, %cst_30 {dimension_numbers = #tpu.dot_dimension_numbers<[1], [0], [0], [1], [0, 0, 1, 1], [], []>} : vector<48x16xbf16>, vector<16x256xbf16>, vector<48x256xf32> -> vector<48x256xf32>
    %cst_31 = arith.constant dense<0.000000e+00> : vector<48x256xf32>
    %113 = tpu.matmul %22, %108, %cst_31 {dimension_numbers = #tpu.dot_dimension_numbers<[1], [0], [0], [1], [0, 0, 1, 1], [], []>} : vector<48x16xbf16>, vector<16x256xbf16>, vector<48x256xf32> -> vector<48x256xf32>
    %114 = arith.addf %112, %113 : vector<48x256xf32>
    %cst_32 = arith.constant dense<0.000000e+00> : vector<48x256xf32>
    %115 = tpu.matmul %19, %111, %cst_32 {dimension_numbers = #tpu.dot_dimension_numbers<[1], [0], [0], [1], [0, 0, 1, 1], [], []>} : vector<48x16xbf16>, vector<16x256xbf16>, vector<48x256xf32> -> vector<48x256xf32>
    %116 = arith.addf %114, %115 : vector<48x256xf32>
    %117 = arith.mulf %116, %107 : vector<48x256xf32>
    %c48 = arith.constant 48 : index
    %c0_33 = arith.constant 0 : index
    %118 = vector.load %arg9[%c48, %c0_33] : memref<432x256xf32, #tpu.memory_space<vmem>>, vector<48x256xf32>
    tpu.vector_store %arg9[%c48, %c0_33], %117 {strides = array<i32>} : memref<432x256xf32, #tpu.memory_space<vmem>>, vector<48x256xf32>,
    %119 = vector.extract_strided_slice %9 {offsets = [2, 0], sizes = [1, 256], strides = [1, 1]} : vector<18x256xf32> to vector<1x256xf32>
    %120 = vector.extract_strided_slice %9 {offsets = [11, 0], sizes = [1, 256], strides = [1, 1]} : vector<18x256xf32> to vector<1x256xf32>
    %121 = vector.broadcast %119 : vector<1x256xf32> to vector<16x256xf32>
    %122 = arith.cmpf oeq, %14, %121 : vector<16x256xf32>
    %123 = vector.extract_strided_slice %12 {offsets = [2, 0], sizes = [1, 256], strides = [1, 1]} : vector<18x256xf32> to vector<1x256xf32>
    %cst_34 = arith.constant 0.000000e+00 : f32
    %124 = vector.shape_cast %123 : vector<1x256xf32> to vector<1x256xf32>
    %125 = vector.broadcast %124 : vector<1x256xf32> to vector<16x256xf32>
    %126 = vector.broadcast %cst_34 : f32 to vector<16x256xf32>
    %127 = arith.select %122, %125, %126 : vector<16x256xi1>, vector<16x256xf32>
    %cst_35 = arith.constant 1.000000e+00 : f32
    %128 = vector.broadcast %cst_35 : f32 to vector<1x256xf32>
    %129 = arith.addf %119, %128 : vector<1x256xf32>
    %130 = vector.broadcast %129 : vector<1x256xf32> to vector<16x256xf32>
    %131 = arith.cmpf oeq, %14, %130 : vector<16x256xf32>
    %132 = vector.extract_strided_slice %10 {offsets = [2, 0], sizes = [1, 256], strides = [1, 1]} : vector<18x256xf32> to vector<1x256xf32>
    %cst_36 = arith.constant 0.000000e+00 : f32
    %133 = vector.shape_cast %132 : vector<1x256xf32> to vector<1x256xf32>
    %134 = vector.broadcast %133 : vector<1x256xf32> to vector<16x256xf32>
    %135 = vector.broadcast %cst_36 : f32 to vector<16x256xf32>
    %136 = arith.select %131, %134, %135 : vector<16x256xi1>, vector<16x256xf32>
    %137 = arith.addf %127, %136 : vector<16x256xf32>
    %138 = vector.broadcast %120 : vector<1x256xf32> to vector<16x256xf32>
    %139 = arith.cmpf oeq, %16, %138 : vector<16x256xf32>
    %140 = vector.extract_strided_slice %12 {offsets = [11, 0], sizes = [1, 256], strides = [1, 1]} : vector<18x256xf32> to vector<1x256xf32>
    %cst_37 = arith.constant 0.000000e+00 : f32
    %141 = vector.shape_cast %140 : vector<1x256xf32> to vector<1x256xf32>
    %142 = vector.broadcast %141 : vector<1x256xf32> to vector<16x256xf32>
    %143 = vector.broadcast %cst_37 : f32 to vector<16x256xf32>
    %144 = arith.select %139, %142, %143 : vector<16x256xi1>, vector<16x256xf32>
    %cst_38 = arith.constant 1.000000e+00 : f32
    %145 = vector.broadcast %cst_38 : f32 to vector<1x256xf32>
    %146 = arith.addf %120, %145 : vector<1x256xf32>
    %147 = vector.broadcast %146 : vector<1x256xf32> to vector<16x256xf32>
    %148 = arith.cmpf oeq, %16, %147 : vector<16x256xf32>
    %149 = vector.extract_strided_slice %10 {offsets = [11, 0], sizes = [1, 256], strides = [1, 1]} : vector<18x256xf32> to vector<1x256xf32>
    %cst_39 = arith.constant 0.000000e+00 : f32
    %150 = vector.shape_cast %149 : vector<1x256xf32> to vector<1x256xf32>
    %151 = vector.broadcast %150 : vector<1x256xf32> to vector<16x256xf32>
    %152 = vector.broadcast %cst_39 : f32 to vector<16x256xf32>
    %153 = arith.select %148, %151, %152 : vector<16x256xi1>, vector<16x256xf32>
    %154 = arith.addf %144, %153 : vector<16x256xf32>
    %155 = tpu.concatenate %154, %154, %154 in 0 : vector<16x256xf32>, vector<16x256xf32>, vector<16x256xf32> -> vector<48x256xf32>
    %156 = arith.truncf %137 : vector<16x256xf32> to vector<16x256xbf16>
    %157 = arith.extf %156 : vector<16x256xbf16> to vector<16x256xf32>
    %158 = arith.subf %137, %157 : vector<16x256xf32>
    %159 = arith.truncf %158 : vector<16x256xf32> to vector<16x256xbf16>
    %cst_40 = arith.constant dense<0.000000e+00> : vector<48x256xf32>
    %160 = tpu.matmul %19, %156, %cst_40 {dimension_numbers = #tpu.dot_dimension_numbers<[1], [0], [0], [1], [0, 0, 1, 1], [], []>} : vector<48x16xbf16>, vector<16x256xbf16>, vector<48x256xf32> -> vector<48x256xf32>
    %cst_41 = arith.constant dense<0.000000e+00> : vector<48x256xf32>
    %161 = tpu.matmul %22, %156, %cst_41 {dimension_numbers = #tpu.dot_dimension_numbers<[1], [0], [0], [1], [0, 0, 1, 1], [], []>} : vector<48x16xbf16>, vector<16x256xbf16>, vector<48x256xf32> -> vector<48x256xf32>
    %162 = arith.addf %160, %161 : vector<48x256xf32>
    %cst_42 = arith.constant dense<0.000000e+00> : vector<48x256xf32>
    %163 = tpu.matmul %19, %159, %cst_42 {dimension_numbers = #tpu.dot_dimension_numbers<[1], [0], [0], [1], [0, 0, 1, 1], [], []>} : vector<48x16xbf16>, vector<16x256xbf16>, vector<48x256xf32> -> vector<48x256xf32>
    %164 = arith.addf %162, %163 : vector<48x256xf32>
    %165 = arith.mulf %164, %155 : vector<48x256xf32>
    %c96 = arith.constant 96 : index
    %c0_43 = arith.constant 0 : index
    %166 = vector.load %arg9[%c96, %c0_43] : memref<432x256xf32, #tpu.memory_space<vmem>>, vector<48x256xf32>
    tpu.vector_store %arg9[%c96, %c0_43], %165 {strides = array<i32>} : memref<432x256xf32, #tpu.memory_space<vmem>>, vector<48x256xf32>,
    %167 = vector.extract_strided_slice %9 {offsets = [3, 0], sizes = [1, 256], strides = [1, 1]} : vector<18x256xf32> to vector<1x256xf32>
    %168 = vector.extract_strided_slice %9 {offsets = [12, 0], sizes = [1, 256], strides = [1, 1]} : vector<18x256xf32> to vector<1x256xf32>
    %169 = vector.broadcast %167 : vector<1x256xf32> to vector<16x256xf32>
    %170 = arith.cmpf oeq, %14, %169 : vector<16x256xf32>
    %171 = vector.extract_strided_slice %12 {offsets = [3, 0], sizes = [1, 256], strides = [1, 1]} : vector<18x256xf32> to vector<1x256xf32>
    %cst_44 = arith.constant 0.000000e+00 : f32
    %172 = vector.shape_cast %171 : vector<1x256xf32> to vector<1x256xf32>
    %173 = vector.broadcast %172 : vector<1x256xf32> to vector<16x256xf32>
    %174 = vector.broadcast %cst_44 : f32 to vector<16x256xf32>
    %175 = arith.select %170, %173, %174 : vector<16x256xi1>, vector<16x256xf32>
    %cst_45 = arith.constant 1.000000e+00 : f32
    %176 = vector.broadcast %cst_45 : f32 to vector<1x256xf32>
    %177 = arith.addf %167, %176 : vector<1x256xf32>
    %178 = vector.broadcast %177 : vector<1x256xf32> to vector<16x256xf32>
    %179 = arith.cmpf oeq, %14, %178 : vector<16x256xf32>
    %180 = vector.extract_strided_slice %10 {offsets = [3, 0], sizes = [1, 256], strides = [1, 1]} : vector<18x256xf32> to vector<1x256xf32>
    %cst_46 = arith.constant 0.000000e+00 : f32
    %181 = vector.shape_cast %180 : vector<1x256xf32> to vector<1x256xf32>
    %182 = vector.broadcast %181 : vector<1x256xf32> to vector<16x256xf32>
    %183 = vector.broadcast %cst_46 : f32 to vector<16x256xf32>
    %184 = arith.select %179, %182, %183 : vector<16x256xi1>, vector<16x256xf32>
    %185 = arith.addf %175, %184 : vector<16x256xf32>
    %186 = vector.broadcast %168 : vector<1x256xf32> to vector<16x256xf32>
    %187 = arith.cmpf oeq, %16, %186 : vector<16x256xf32>
    %188 = vector.extract_strided_slice %12 {offsets = [12, 0], sizes = [1, 256], strides = [1, 1]} : vector<18x256xf32> to vector<1x256xf32>
    %cst_47 = arith.constant 0.000000e+00 : f32
    %189 = vector.shape_cast %188 : vector<1x256xf32> to vector<1x256xf32>
    %190 = vector.broadcast %189 : vector<1x256xf32> to vector<16x256xf32>
    %191 = vector.broadcast %cst_47 : f32 to vector<16x256xf32>
    %192 = arith.select %187, %190, %191 : vector<16x256xi1>, vector<16x256xf32>
    %cst_48 = arith.constant 1.000000e+00 : f32
    %193 = vector.broadcast %cst_48 : f32 to vector<1x256xf32>
    %194 = arith.addf %168, %193 : vector<1x256xf32>
    %195 = vector.broadcast %194 : vector<1x256xf32> to vector<16x256xf32>
    %196 = arith.cmpf oeq, %16, %195 : vector<16x256xf32>
    %197 = vector.extract_strided_slice %10 {offsets = [12, 0], sizes = [1, 256], strides = [1, 1]} : vector<18x256xf32> to vector<1x256xf32>
    %cst_49 = arith.constant 0.000000e+00 : f32
    %198 = vector.shape_cast %197 : vector<1x256xf32> to vector<1x256xf32>
    %199 = vector.broadcast %198 : vector<1x256xf32> to vector<16x256xf32>
    %200 = vector.broadcast %cst_49 : f32 to vector<16x256xf32>
    %201 = arith.select %196, %199, %200 : vector<16x256xi1>, vector<16x256xf32>
    %202 = arith.addf %192, %201 : vector<16x256xf32>
    %203 = tpu.concatenate %202, %202, %202 in 0 : vector<16x256xf32>, vector<16x256xf32>, vector<16x256xf32> -> vector<48x256xf32>
    %204 = arith.truncf %185 : vector<16x256xf32> to vector<16x256xbf16>
    %205 = arith.extf %204 : vector<16x256xbf16> to vector<16x256xf32>
    %206 = arith.subf %185, %205 : vector<16x256xf32>
    %207 = arith.truncf %206 : vector<16x256xf32> to vector<16x256xbf16>
    %cst_50 = arith.constant dense<0.000000e+00> : vector<48x256xf32>
    %208 = tpu.matmul %19, %204, %cst_50 {dimension_numbers = #tpu.dot_dimension_numbers<[1], [0], [0], [1], [0, 0, 1, 1], [], []>} : vector<48x16xbf16>, vector<16x256xbf16>, vector<48x256xf32> -> vector<48x256xf32>
    %cst_51 = arith.constant dense<0.000000e+00> : vector<48x256xf32>
    %209 = tpu.matmul %22, %204, %cst_51 {dimension_numbers = #tpu.dot_dimension_numbers<[1], [0], [0], [1], [0, 0, 1, 1], [], []>} : vector<48x16xbf16>, vector<16x256xbf16>, vector<48x256xf32> -> vector<48x256xf32>
    %210 = arith.addf %208, %209 : vector<48x256xf32>
    %cst_52 = arith.constant dense<0.000000e+00> : vector<48x256xf32>
    %211 = tpu.matmul %19, %207, %cst_52 {dimension_numbers = #tpu.dot_dimension_numbers<[1], [0], [0], [1], [0, 0, 1, 1], [], []>} : vector<48x16xbf16>, vector<16x256xbf16>, vector<48x256xf32> -> vector<48x256xf32>
    %212 = arith.addf %210, %211 : vector<48x256xf32>
    %213 = arith.mulf %212, %203 : vector<48x256xf32>
    %c144 = arith.constant 144 : index
    %c0_53 = arith.constant 0 : index
    %214 = vector.load %arg9[%c144, %c0_53] : memref<432x256xf32, #tpu.memory_space<vmem>>, vector<48x256xf32>
    tpu.vector_store %arg9[%c144, %c0_53], %213 {strides = array<i32>} : memref<432x256xf32, #tpu.memory_space<vmem>>, vector<48x256xf32>,
    %215 = vector.extract_strided_slice %9 {offsets = [4, 0], sizes = [1, 256], strides = [1, 1]} : vector<18x256xf32> to vector<1x256xf32>
    %216 = vector.extract_strided_slice %9 {offsets = [13, 0], sizes = [1, 256], strides = [1, 1]} : vector<18x256xf32> to vector<1x256xf32>
    %217 = vector.broadcast %215 : vector<1x256xf32> to vector<16x256xf32>
    %218 = arith.cmpf oeq, %14, %217 : vector<16x256xf32>
    %219 = vector.extract_strided_slice %12 {offsets = [4, 0], sizes = [1, 256], strides = [1, 1]} : vector<18x256xf32> to vector<1x256xf32>
    %cst_54 = arith.constant 0.000000e+00 : f32
    %220 = vector.shape_cast %219 : vector<1x256xf32> to vector<1x256xf32>
    %221 = vector.broadcast %220 : vector<1x256xf32> to vector<16x256xf32>
    %222 = vector.broadcast %cst_54 : f32 to vector<16x256xf32>
    %223 = arith.select %218, %221, %222 : vector<16x256xi1>, vector<16x256xf32>
    %cst_55 = arith.constant 1.000000e+00 : f32
    %224 = vector.broadcast %cst_55 : f32 to vector<1x256xf32>
    %225 = arith.addf %215, %224 : vector<1x256xf32>
    %226 = vector.broadcast %225 : vector<1x256xf32> to vector<16x256xf32>
    %227 = arith.cmpf oeq, %14, %226 : vector<16x256xf32>
    %228 = vector.extract_strided_slice %10 {offsets = [4, 0], sizes = [1, 256], strides = [1, 1]} : vector<18x256xf32> to vector<1x256xf32>
    %cst_56 = arith.constant 0.000000e+00 : f32
    %229 = vector.shape_cast %228 : vector<1x256xf32> to vector<1x256xf32>
    %230 = vector.broadcast %229 : vector<1x256xf32> to vector<16x256xf32>
    %231 = vector.broadcast %cst_56 : f32 to vector<16x256xf32>
    %232 = arith.select %227, %230, %231 : vector<16x256xi1>, vector<16x256xf32>
    %233 = arith.addf %223, %232 : vector<16x256xf32>
    %234 = vector.broadcast %216 : vector<1x256xf32> to vector<16x256xf32>
    %235 = arith.cmpf oeq, %16, %234 : vector<16x256xf32>
    %236 = vector.extract_strided_slice %12 {offsets = [13, 0], sizes = [1, 256], strides = [1, 1]} : vector<18x256xf32> to vector<1x256xf32>
    %cst_57 = arith.constant 0.000000e+00 : f32
    %237 = vector.shape_cast %236 : vector<1x256xf32> to vector<1x256xf32>
    %238 = vector.broadcast %237 : vector<1x256xf32> to vector<16x256xf32>
    %239 = vector.broadcast %cst_57 : f32 to vector<16x256xf32>
    %240 = arith.select %235, %238, %239 : vector<16x256xi1>, vector<16x256xf32>
    %cst_58 = arith.constant 1.000000e+00 : f32
    %241 = vector.broadcast %cst_58 : f32 to vector<1x256xf32>
    %242 = arith.addf %216, %241 : vector<1x256xf32>
    %243 = vector.broadcast %242 : vector<1x256xf32> to vector<16x256xf32>
    %244 = arith.cmpf oeq, %16, %243 : vector<16x256xf32>
    %245 = vector.extract_strided_slice %10 {offsets = [13, 0], sizes = [1, 256], strides = [1, 1]} : vector<18x256xf32> to vector<1x256xf32>
    %cst_59 = arith.constant 0.000000e+00 : f32
    %246 = vector.shape_cast %245 : vector<1x256xf32> to vector<1x256xf32>
    %247 = vector.broadcast %246 : vector<1x256xf32> to vector<16x256xf32>
    %248 = vector.broadcast %cst_59 : f32 to vector<16x256xf32>
    %249 = arith.select %244, %247, %248 : vector<16x256xi1>, vector<16x256xf32>
    %250 = arith.addf %240, %249 : vector<16x256xf32>
    %251 = tpu.concatenate %250, %250, %250 in 0 : vector<16x256xf32>, vector<16x256xf32>, vector<16x256xf32> -> vector<48x256xf32>
    %252 = arith.truncf %233 : vector<16x256xf32> to vector<16x256xbf16>
    %253 = arith.extf %252 : vector<16x256xbf16> to vector<16x256xf32>
    %254 = arith.subf %233, %253 : vector<16x256xf32>
    %255 = arith.truncf %254 : vector<16x256xf32> to vector<16x256xbf16>
    %cst_60 = arith.constant dense<0.000000e+00> : vector<48x256xf32>
    %256 = tpu.matmul %19, %252, %cst_60 {dimension_numbers = #tpu.dot_dimension_numbers<[1], [0], [0], [1], [0, 0, 1, 1], [], []>} : vector<48x16xbf16>, vector<16x256xbf16>, vector<48x256xf32> -> vector<48x256xf32>
    %cst_61 = arith.constant dense<0.000000e+00> : vector<48x256xf32>
    %257 = tpu.matmul %22, %252, %cst_61 {dimension_numbers = #tpu.dot_dimension_numbers<[1], [0], [0], [1], [0, 0, 1, 1], [], []>} : vector<48x16xbf16>, vector<16x256xbf16>, vector<48x256xf32> -> vector<48x256xf32>
    %258 = arith.addf %256, %257 : vector<48x256xf32>
    %cst_62 = arith.constant dense<0.000000e+00> : vector<48x256xf32>
    %259 = tpu.matmul %19, %255, %cst_62 {dimension_numbers = #tpu.dot_dimension_numbers<[1], [0], [0], [1], [0, 0, 1, 1], [], []>} : vector<48x16xbf16>, vector<16x256xbf16>, vector<48x256xf32> -> vector<48x256xf32>
    %260 = arith.addf %258, %259 : vector<48x256xf32>
    %261 = arith.mulf %260, %251 : vector<48x256xf32>
    %c192 = arith.constant 192 : index
    %c0_63 = arith.constant 0 : index
    %262 = vector.load %arg9[%c192, %c0_63] : memref<432x256xf32, #tpu.memory_space<vmem>>, vector<48x256xf32>
    tpu.vector_store %arg9[%c192, %c0_63], %261 {strides = array<i32>} : memref<432x256xf32, #tpu.memory_space<vmem>>, vector<48x256xf32>,
    %263 = vector.extract_strided_slice %9 {offsets = [5, 0], sizes = [1, 256], strides = [1, 1]} : vector<18x256xf32> to vector<1x256xf32>
    %264 = vector.extract_strided_slice %9 {offsets = [14, 0], sizes = [1, 256], strides = [1, 1]} : vector<18x256xf32> to vector<1x256xf32>
    %265 = vector.broadcast %263 : vector<1x256xf32> to vector<16x256xf32>
    %266 = arith.cmpf oeq, %14, %265 : vector<16x256xf32>
    %267 = vector.extract_strided_slice %12 {offsets = [5, 0], sizes = [1, 256], strides = [1, 1]} : vector<18x256xf32> to vector<1x256xf32>
    %cst_64 = arith.constant 0.000000e+00 : f32
    %268 = vector.shape_cast %267 : vector<1x256xf32> to vector<1x256xf32>
    %269 = vector.broadcast %268 : vector<1x256xf32> to vector<16x256xf32>
    %270 = vector.broadcast %cst_64 : f32 to vector<16x256xf32>
    %271 = arith.select %266, %269, %270 : vector<16x256xi1>, vector<16x256xf32>
    %cst_65 = arith.constant 1.000000e+00 : f32
    %272 = vector.broadcast %cst_65 : f32 to vector<1x256xf32>
    %273 = arith.addf %263, %272 : vector<1x256xf32>
    %274 = vector.broadcast %273 : vector<1x256xf32> to vector<16x256xf32>
    %275 = arith.cmpf oeq, %14, %274 : vector<16x256xf32>
    %276 = vector.extract_strided_slice %10 {offsets = [5, 0], sizes = [1, 256], strides = [1, 1]} : vector<18x256xf32> to vector<1x256xf32>
    %cst_66 = arith.constant 0.000000e+00 : f32
    %277 = vector.shape_cast %276 : vector<1x256xf32> to vector<1x256xf32>
    %278 = vector.broadcast %277 : vector<1x256xf32> to vector<16x256xf32>
    %279 = vector.broadcast %cst_66 : f32 to vector<16x256xf32>
    %280 = arith.select %275, %278, %279 : vector<16x256xi1>, vector<16x256xf32>
    %281 = arith.addf %271, %280 : vector<16x256xf32>
    %282 = vector.broadcast %264 : vector<1x256xf32> to vector<16x256xf32>
    %283 = arith.cmpf oeq, %16, %282 : vector<16x256xf32>
    %284 = vector.extract_strided_slice %12 {offsets = [14, 0], sizes = [1, 256], strides = [1, 1]} : vector<18x256xf32> to vector<1x256xf32>
    %cst_67 = arith.constant 0.000000e+00 : f32
    %285 = vector.shape_cast %284 : vector<1x256xf32> to vector<1x256xf32>
    %286 = vector.broadcast %285 : vector<1x256xf32> to vector<16x256xf32>
    %287 = vector.broadcast %cst_67 : f32 to vector<16x256xf32>
    %288 = arith.select %283, %286, %287 : vector<16x256xi1>, vector<16x256xf32>
    %cst_68 = arith.constant 1.000000e+00 : f32
    %289 = vector.broadcast %cst_68 : f32 to vector<1x256xf32>
    %290 = arith.addf %264, %289 : vector<1x256xf32>
    %291 = vector.broadcast %290 : vector<1x256xf32> to vector<16x256xf32>
    %292 = arith.cmpf oeq, %16, %291 : vector<16x256xf32>
    %293 = vector.extract_strided_slice %10 {offsets = [14, 0], sizes = [1, 256], strides = [1, 1]} : vector<18x256xf32> to vector<1x256xf32>
    %cst_69 = arith.constant 0.000000e+00 : f32
    %294 = vector.shape_cast %293 : vector<1x256xf32> to vector<1x256xf32>
    %295 = vector.broadcast %294 : vector<1x256xf32> to vector<16x256xf32>
    %296 = vector.broadcast %cst_69 : f32 to vector<16x256xf32>
    %297 = arith.select %292, %295, %296 : vector<16x256xi1>, vector<16x256xf32>
    %298 = arith.addf %288, %297 : vector<16x256xf32>
    %299 = tpu.concatenate %298, %298, %298 in 0 : vector<16x256xf32>, vector<16x256xf32>, vector<16x256xf32> -> vector<48x256xf32>
    %300 = arith.truncf %281 : vector<16x256xf32> to vector<16x256xbf16>
    %301 = arith.extf %300 : vector<16x256xbf16> to vector<16x256xf32>
    %302 = arith.subf %281, %301 : vector<16x256xf32>
    %303 = arith.truncf %302 : vector<16x256xf32> to vector<16x256xbf16>
    %cst_70 = arith.constant dense<0.000000e+00> : vector<48x256xf32>
    %304 = tpu.matmul %19, %300, %cst_70 {dimension_numbers = #tpu.dot_dimension_numbers<[1], [0], [0], [1], [0, 0, 1, 1], [], []>} : vector<48x16xbf16>, vector<16x256xbf16>, vector<48x256xf32> -> vector<48x256xf32>
    %cst_71 = arith.constant dense<0.000000e+00> : vector<48x256xf32>
    %305 = tpu.matmul %22, %300, %cst_71 {dimension_numbers = #tpu.dot_dimension_numbers<[1], [0], [0], [1], [0, 0, 1, 1], [], []>} : vector<48x16xbf16>, vector<16x256xbf16>, vector<48x256xf32> -> vector<48x256xf32>
    %306 = arith.addf %304, %305 : vector<48x256xf32>
    %cst_72 = arith.constant dense<0.000000e+00> : vector<48x256xf32>
    %307 = tpu.matmul %19, %303, %cst_72 {dimension_numbers = #tpu.dot_dimension_numbers<[1], [0], [0], [1], [0, 0, 1, 1], [], []>} : vector<48x16xbf16>, vector<16x256xbf16>, vector<48x256xf32> -> vector<48x256xf32>
    %308 = arith.addf %306, %307 : vector<48x256xf32>
    %309 = arith.mulf %308, %299 : vector<48x256xf32>
    %c240 = arith.constant 240 : index
    %c0_73 = arith.constant 0 : index
    %310 = vector.load %arg9[%c240, %c0_73] : memref<432x256xf32, #tpu.memory_space<vmem>>, vector<48x256xf32>
    tpu.vector_store %arg9[%c240, %c0_73], %309 {strides = array<i32>} : memref<432x256xf32, #tpu.memory_space<vmem>>, vector<48x256xf32>,
    %311 = vector.extract_strided_slice %9 {offsets = [6, 0], sizes = [1, 256], strides = [1, 1]} : vector<18x256xf32> to vector<1x256xf32>
    %312 = vector.extract_strided_slice %9 {offsets = [15, 0], sizes = [1, 256], strides = [1, 1]} : vector<18x256xf32> to vector<1x256xf32>
    %313 = vector.broadcast %311 : vector<1x256xf32> to vector<16x256xf32>
    %314 = arith.cmpf oeq, %14, %313 : vector<16x256xf32>
    %315 = vector.extract_strided_slice %12 {offsets = [6, 0], sizes = [1, 256], strides = [1, 1]} : vector<18x256xf32> to vector<1x256xf32>
    %cst_74 = arith.constant 0.000000e+00 : f32
    %316 = vector.shape_cast %315 : vector<1x256xf32> to vector<1x256xf32>
    %317 = vector.broadcast %316 : vector<1x256xf32> to vector<16x256xf32>
    %318 = vector.broadcast %cst_74 : f32 to vector<16x256xf32>
    %319 = arith.select %314, %317, %318 : vector<16x256xi1>, vector<16x256xf32>
    %cst_75 = arith.constant 1.000000e+00 : f32
    %320 = vector.broadcast %cst_75 : f32 to vector<1x256xf32>
    %321 = arith.addf %311, %320 : vector<1x256xf32>
    %322 = vector.broadcast %321 : vector<1x256xf32> to vector<16x256xf32>
    %323 = arith.cmpf oeq, %14, %322 : vector<16x256xf32>
    %324 = vector.extract_strided_slice %10 {offsets = [6, 0], sizes = [1, 256], strides = [1, 1]} : vector<18x256xf32> to vector<1x256xf32>
    %cst_76 = arith.constant 0.000000e+00 : f32
    %325 = vector.shape_cast %324 : vector<1x256xf32> to vector<1x256xf32>
    %326 = vector.broadcast %325 : vector<1x256xf32> to vector<16x256xf32>
    %327 = vector.broadcast %cst_76 : f32 to vector<16x256xf32>
    %328 = arith.select %323, %326, %327 : vector<16x256xi1>, vector<16x256xf32>
    %329 = arith.addf %319, %328 : vector<16x256xf32>
    %330 = vector.broadcast %312 : vector<1x256xf32> to vector<16x256xf32>
    %331 = arith.cmpf oeq, %16, %330 : vector<16x256xf32>
    %332 = vector.extract_strided_slice %12 {offsets = [15, 0], sizes = [1, 256], strides = [1, 1]} : vector<18x256xf32> to vector<1x256xf32>
    %cst_77 = arith.constant 0.000000e+00 : f32
    %333 = vector.shape_cast %332 : vector<1x256xf32> to vector<1x256xf32>
    %334 = vector.broadcast %333 : vector<1x256xf32> to vector<16x256xf32>
    %335 = vector.broadcast %cst_77 : f32 to vector<16x256xf32>
    %336 = arith.select %331, %334, %335 : vector<16x256xi1>, vector<16x256xf32>
    %cst_78 = arith.constant 1.000000e+00 : f32
    %337 = vector.broadcast %cst_78 : f32 to vector<1x256xf32>
    %338 = arith.addf %312, %337 : vector<1x256xf32>
    %339 = vector.broadcast %338 : vector<1x256xf32> to vector<16x256xf32>
    %340 = arith.cmpf oeq, %16, %339 : vector<16x256xf32>
    %341 = vector.extract_strided_slice %10 {offsets = [15, 0], sizes = [1, 256], strides = [1, 1]} : vector<18x256xf32> to vector<1x256xf32>
    %cst_79 = arith.constant 0.000000e+00 : f32
    %342 = vector.shape_cast %341 : vector<1x256xf32> to vector<1x256xf32>
    %343 = vector.broadcast %342 : vector<1x256xf32> to vector<16x256xf32>
    %344 = vector.broadcast %cst_79 : f32 to vector<16x256xf32>
    %345 = arith.select %340, %343, %344 : vector<16x256xi1>, vector<16x256xf32>
    %346 = arith.addf %336, %345 : vector<16x256xf32>
    %347 = tpu.concatenate %346, %346, %346 in 0 : vector<16x256xf32>, vector<16x256xf32>, vector<16x256xf32> -> vector<48x256xf32>
    %348 = arith.truncf %329 : vector<16x256xf32> to vector<16x256xbf16>
    %349 = arith.extf %348 : vector<16x256xbf16> to vector<16x256xf32>
    %350 = arith.subf %329, %349 : vector<16x256xf32>
    %351 = arith.truncf %350 : vector<16x256xf32> to vector<16x256xbf16>
    %cst_80 = arith.constant dense<0.000000e+00> : vector<48x256xf32>
    %352 = tpu.matmul %19, %348, %cst_80 {dimension_numbers = #tpu.dot_dimension_numbers<[1], [0], [0], [1], [0, 0, 1, 1], [], []>} : vector<48x16xbf16>, vector<16x256xbf16>, vector<48x256xf32> -> vector<48x256xf32>
    %cst_81 = arith.constant dense<0.000000e+00> : vector<48x256xf32>
    %353 = tpu.matmul %22, %348, %cst_81 {dimension_numbers = #tpu.dot_dimension_numbers<[1], [0], [0], [1], [0, 0, 1, 1], [], []>} : vector<48x16xbf16>, vector<16x256xbf16>, vector<48x256xf32> -> vector<48x256xf32>
    %354 = arith.addf %352, %353 : vector<48x256xf32>
    %cst_82 = arith.constant dense<0.000000e+00> : vector<48x256xf32>
    %355 = tpu.matmul %19, %351, %cst_82 {dimension_numbers = #tpu.dot_dimension_numbers<[1], [0], [0], [1], [0, 0, 1, 1], [], []>} : vector<48x16xbf16>, vector<16x256xbf16>, vector<48x256xf32> -> vector<48x256xf32>
    %356 = arith.addf %354, %355 : vector<48x256xf32>
    %357 = arith.mulf %356, %347 : vector<48x256xf32>
    %c288 = arith.constant 288 : index
    %c0_83 = arith.constant 0 : index
    %358 = vector.load %arg9[%c288, %c0_83] : memref<432x256xf32, #tpu.memory_space<vmem>>, vector<48x256xf32>
    tpu.vector_store %arg9[%c288, %c0_83], %357 {strides = array<i32>} : memref<432x256xf32, #tpu.memory_space<vmem>>, vector<48x256xf32>,
    %359 = vector.extract_strided_slice %9 {offsets = [7, 0], sizes = [1, 256], strides = [1, 1]} : vector<18x256xf32> to vector<1x256xf32>
    %360 = vector.extract_strided_slice %9 {offsets = [16, 0], sizes = [1, 256], strides = [1, 1]} : vector<18x256xf32> to vector<1x256xf32>
    %361 = vector.broadcast %359 : vector<1x256xf32> to vector<16x256xf32>
    %362 = arith.cmpf oeq, %14, %361 : vector<16x256xf32>
    %363 = vector.extract_strided_slice %12 {offsets = [7, 0], sizes = [1, 256], strides = [1, 1]} : vector<18x256xf32> to vector<1x256xf32>
    %cst_84 = arith.constant 0.000000e+00 : f32
    %364 = vector.shape_cast %363 : vector<1x256xf32> to vector<1x256xf32>
    %365 = vector.broadcast %364 : vector<1x256xf32> to vector<16x256xf32>
    %366 = vector.broadcast %cst_84 : f32 to vector<16x256xf32>
    %367 = arith.select %362, %365, %366 : vector<16x256xi1>, vector<16x256xf32>
    %cst_85 = arith.constant 1.000000e+00 : f32
    %368 = vector.broadcast %cst_85 : f32 to vector<1x256xf32>
    %369 = arith.addf %359, %368 : vector<1x256xf32>
    %370 = vector.broadcast %369 : vector<1x256xf32> to vector<16x256xf32>
    %371 = arith.cmpf oeq, %14, %370 : vector<16x256xf32>
    %372 = vector.extract_strided_slice %10 {offsets = [7, 0], sizes = [1, 256], strides = [1, 1]} : vector<18x256xf32> to vector<1x256xf32>
    %cst_86 = arith.constant 0.000000e+00 : f32
    %373 = vector.shape_cast %372 : vector<1x256xf32> to vector<1x256xf32>
    %374 = vector.broadcast %373 : vector<1x256xf32> to vector<16x256xf32>
    %375 = vector.broadcast %cst_86 : f32 to vector<16x256xf32>
    %376 = arith.select %371, %374, %375 : vector<16x256xi1>, vector<16x256xf32>
    %377 = arith.addf %367, %376 : vector<16x256xf32>
    %378 = vector.broadcast %360 : vector<1x256xf32> to vector<16x256xf32>
    %379 = arith.cmpf oeq, %16, %378 : vector<16x256xf32>
    %380 = vector.extract_strided_slice %12 {offsets = [16, 0], sizes = [1, 256], strides = [1, 1]} : vector<18x256xf32> to vector<1x256xf32>
    %cst_87 = arith.constant 0.000000e+00 : f32
    %381 = vector.shape_cast %380 : vector<1x256xf32> to vector<1x256xf32>
    %382 = vector.broadcast %381 : vector<1x256xf32> to vector<16x256xf32>
    %383 = vector.broadcast %cst_87 : f32 to vector<16x256xf32>
    %384 = arith.select %379, %382, %383 : vector<16x256xi1>, vector<16x256xf32>
    %cst_88 = arith.constant 1.000000e+00 : f32
    %385 = vector.broadcast %cst_88 : f32 to vector<1x256xf32>
    %386 = arith.addf %360, %385 : vector<1x256xf32>
    %387 = vector.broadcast %386 : vector<1x256xf32> to vector<16x256xf32>
    %388 = arith.cmpf oeq, %16, %387 : vector<16x256xf32>
    %389 = vector.extract_strided_slice %10 {offsets = [16, 0], sizes = [1, 256], strides = [1, 1]} : vector<18x256xf32> to vector<1x256xf32>
    %cst_89 = arith.constant 0.000000e+00 : f32
    %390 = vector.shape_cast %389 : vector<1x256xf32> to vector<1x256xf32>
    %391 = vector.broadcast %390 : vector<1x256xf32> to vector<16x256xf32>
    %392 = vector.broadcast %cst_89 : f32 to vector<16x256xf32>
    %393 = arith.select %388, %391, %392 : vector<16x256xi1>, vector<16x256xf32>
    %394 = arith.addf %384, %393 : vector<16x256xf32>
    %395 = tpu.concatenate %394, %394, %394 in 0 : vector<16x256xf32>, vector<16x256xf32>, vector<16x256xf32> -> vector<48x256xf32>
    %396 = arith.truncf %377 : vector<16x256xf32> to vector<16x256xbf16>
    %397 = arith.extf %396 : vector<16x256xbf16> to vector<16x256xf32>
    %398 = arith.subf %377, %397 : vector<16x256xf32>
    %399 = arith.truncf %398 : vector<16x256xf32> to vector<16x256xbf16>
    %cst_90 = arith.constant dense<0.000000e+00> : vector<48x256xf32>
    %400 = tpu.matmul %19, %396, %cst_90 {dimension_numbers = #tpu.dot_dimension_numbers<[1], [0], [0], [1], [0, 0, 1, 1], [], []>} : vector<48x16xbf16>, vector<16x256xbf16>, vector<48x256xf32> -> vector<48x256xf32>
    %cst_91 = arith.constant dense<0.000000e+00> : vector<48x256xf32>
    %401 = tpu.matmul %22, %396, %cst_91 {dimension_numbers = #tpu.dot_dimension_numbers<[1], [0], [0], [1], [0, 0, 1, 1], [], []>} : vector<48x16xbf16>, vector<16x256xbf16>, vector<48x256xf32> -> vector<48x256xf32>
    %402 = arith.addf %400, %401 : vector<48x256xf32>
    %cst_92 = arith.constant dense<0.000000e+00> : vector<48x256xf32>
    %403 = tpu.matmul %19, %399, %cst_92 {dimension_numbers = #tpu.dot_dimension_numbers<[1], [0], [0], [1], [0, 0, 1, 1], [], []>} : vector<48x16xbf16>, vector<16x256xbf16>, vector<48x256xf32> -> vector<48x256xf32>
    %404 = arith.addf %402, %403 : vector<48x256xf32>
    %405 = arith.mulf %404, %395 : vector<48x256xf32>
    %c336 = arith.constant 336 : index
    %c0_93 = arith.constant 0 : index
    %406 = vector.load %arg9[%c336, %c0_93] : memref<432x256xf32, #tpu.memory_space<vmem>>, vector<48x256xf32>
    tpu.vector_store %arg9[%c336, %c0_93], %405 {strides = array<i32>} : memref<432x256xf32, #tpu.memory_space<vmem>>, vector<48x256xf32>,
    %407 = vector.extract_strided_slice %9 {offsets = [8, 0], sizes = [1, 256], strides = [1, 1]} : vector<18x256xf32> to vector<1x256xf32>
    %408 = vector.extract_strided_slice %9 {offsets = [17, 0], sizes = [1, 256], strides = [1, 1]} : vector<18x256xf32> to vector<1x256xf32>
    %409 = vector.broadcast %407 : vector<1x256xf32> to vector<16x256xf32>
    %410 = arith.cmpf oeq, %14, %409 : vector<16x256xf32>
    %411 = vector.extract_strided_slice %12 {offsets = [8, 0], sizes = [1, 256], strides = [1, 1]} : vector<18x256xf32> to vector<1x256xf32>
    %cst_94 = arith.constant 0.000000e+00 : f32
    %412 = vector.shape_cast %411 : vector<1x256xf32> to vector<1x256xf32>
    %413 = vector.broadcast %412 : vector<1x256xf32> to vector<16x256xf32>
    %414 = vector.broadcast %cst_94 : f32 to vector<16x256xf32>
    %415 = arith.select %410, %413, %414 : vector<16x256xi1>, vector<16x256xf32>
    %cst_95 = arith.constant 1.000000e+00 : f32
    %416 = vector.broadcast %cst_95 : f32 to vector<1x256xf32>
    %417 = arith.addf %407, %416 : vector<1x256xf32>
    %418 = vector.broadcast %417 : vector<1x256xf32> to vector<16x256xf32>
    %419 = arith.cmpf oeq, %14, %418 : vector<16x256xf32>
    %420 = vector.extract_strided_slice %10 {offsets = [8, 0], sizes = [1, 256], strides = [1, 1]} : vector<18x256xf32> to vector<1x256xf32>
    %cst_96 = arith.constant 0.000000e+00 : f32
    %421 = vector.shape_cast %420 : vector<1x256xf32> to vector<1x256xf32>
    %422 = vector.broadcast %421 : vector<1x256xf32> to vector<16x256xf32>
    %423 = vector.broadcast %cst_96 : f32 to vector<16x256xf32>
    %424 = arith.select %419, %422, %423 : vector<16x256xi1>, vector<16x256xf32>
    %425 = arith.addf %415, %424 : vector<16x256xf32>
    %426 = vector.broadcast %408 : vector<1x256xf32> to vector<16x256xf32>
    %427 = arith.cmpf oeq, %16, %426 : vector<16x256xf32>
    %428 = vector.extract_strided_slice %12 {offsets = [17, 0], sizes = [1, 256], strides = [1, 1]} : vector<18x256xf32> to vector<1x256xf32>
    %cst_97 = arith.constant 0.000000e+00 : f32
    %429 = vector.shape_cast %428 : vector<1x256xf32> to vector<1x256xf32>
    %430 = vector.broadcast %429 : vector<1x256xf32> to vector<16x256xf32>
    %431 = vector.broadcast %cst_97 : f32 to vector<16x256xf32>
    %432 = arith.select %427, %430, %431 : vector<16x256xi1>, vector<16x256xf32>
    %cst_98 = arith.constant 1.000000e+00 : f32
    %433 = vector.broadcast %cst_98 : f32 to vector<1x256xf32>
    %434 = arith.addf %408, %433 : vector<1x256xf32>
    %435 = vector.broadcast %434 : vector<1x256xf32> to vector<16x256xf32>
    %436 = arith.cmpf oeq, %16, %435 : vector<16x256xf32>
    %437 = vector.extract_strided_slice %10 {offsets = [17, 0], sizes = [1, 256], strides = [1, 1]} : vector<18x256xf32> to vector<1x256xf32>
    %cst_99 = arith.constant 0.000000e+00 : f32
    %438 = vector.shape_cast %437 : vector<1x256xf32> to vector<1x256xf32>
    %439 = vector.broadcast %438 : vector<1x256xf32> to vector<16x256xf32>
    %440 = vector.broadcast %cst_99 : f32 to vector<16x256xf32>
    %441 = arith.select %436, %439, %440 : vector<16x256xi1>, vector<16x256xf32>
    %442 = arith.addf %432, %441 : vector<16x256xf32>
    %443 = tpu.concatenate %442, %442, %442 in 0 : vector<16x256xf32>, vector<16x256xf32>, vector<16x256xf32> -> vector<48x256xf32>
    %444 = arith.truncf %425 : vector<16x256xf32> to vector<16x256xbf16>
    %445 = arith.extf %444 : vector<16x256xbf16> to vector<16x256xf32>
    %446 = arith.subf %425, %445 : vector<16x256xf32>
    %447 = arith.truncf %446 : vector<16x256xf32> to vector<16x256xbf16>
    %cst_100 = arith.constant dense<0.000000e+00> : vector<48x256xf32>
    %448 = tpu.matmul %19, %444, %cst_100 {dimension_numbers = #tpu.dot_dimension_numbers<[1], [0], [0], [1], [0, 0, 1, 1], [], []>} : vector<48x16xbf16>, vector<16x256xbf16>, vector<48x256xf32> -> vector<48x256xf32>
    %cst_101 = arith.constant dense<0.000000e+00> : vector<48x256xf32>
    %449 = tpu.matmul %22, %444, %cst_101 {dimension_numbers = #tpu.dot_dimension_numbers<[1], [0], [0], [1], [0, 0, 1, 1], [], []>} : vector<48x16xbf16>, vector<16x256xbf16>, vector<48x256xf32> -> vector<48x256xf32>
    %450 = arith.addf %448, %449 : vector<48x256xf32>
    %cst_102 = arith.constant dense<0.000000e+00> : vector<48x256xf32>
    %451 = tpu.matmul %19, %447, %cst_102 {dimension_numbers = #tpu.dot_dimension_numbers<[1], [0], [0], [1], [0, 0, 1, 1], [], []>} : vector<48x16xbf16>, vector<16x256xbf16>, vector<48x256xf32> -> vector<48x256xf32>
    %452 = arith.addf %450, %451 : vector<48x256xf32>
    %453 = arith.mulf %452, %443 : vector<48x256xf32>
    %c384 = arith.constant 384 : index
    %c0_103 = arith.constant 0 : index
    %454 = vector.load %arg9[%c384, %c0_103] : memref<432x256xf32, #tpu.memory_space<vmem>>, vector<48x256xf32>
    tpu.vector_store %arg9[%c384, %c0_103], %453 {strides = array<i32>} : memref<432x256xf32, #tpu.memory_space<vmem>>, vector<48x256xf32>,
    %c0_104 = arith.constant 0 : index
    %c0_105 = arith.constant 0 : index
    %455 = vector.load %arg6[%c0_104, %c0_105] : memref<3x432xf32, #tpu.memory_space<vmem>>, vector<3x432xf32>
    %c0_106 = arith.constant 0 : index
    %c0_107 = arith.constant 0 : index
    %456 = vector.load %arg9[%c0_106, %c0_107] : memref<432x256xf32, #tpu.memory_space<vmem>>, vector<432x256xf32>
    %cst_108 = arith.constant dense<0.000000e+00> : vector<3x256xf32>
    %457 = tpu.matmul %455, %456, %cst_108 {dimension_numbers = #tpu.dot_dimension_numbers<[1], [0], [0], [1], [0, 0, 1, 1], [], []>, precision = #tpu.contract_precision<fp32>} : vector<3x432xf32>, vector<432x256xf32>, vector<3x256xf32> -> vector<3x256xf32>
    %c0_109 = arith.constant 0 : index
    %c0_110 = arith.constant 0 : index
    %458 = vector.load %arg7[%c0_109, %c0_110] : memref<3x1xf32, #tpu.memory_space<vmem>>, vector<3x1xf32>
    %459 = vector.broadcast %458 : vector<3x1xf32> to vector<3x256xf32>
    %460 = arith.addf %457, %459 : vector<3x256xf32>
    %c0_111 = arith.constant 0 : index
    %c0_112 = arith.constant 0 : index
    %c0_113 = arith.constant 0 : index
    %461 = vector.load %arg8[%c0_111, %c0_112, %c0_113] : memref<1x3x256xf32, #tpu.memory_space<vmem>>, vector<1x3x256xf32>
    %462 = vector.shape_cast %461 : vector<1x3x256xf32> to vector<3x256xf32>
    %463 = vector.shape_cast %460 : vector<3x256xf32> to vector<1x3x256xf32>
    tpu.vector_store %arg8[%c0_111, %c0_112, %c0_113], %463 {strides = array<i32>} : memref<1x3x256xf32, #tpu.memory_space<vmem>>, vector<1x3x256xf32>,
    return
  }
  func.func @transform_0(%arg0: i32) -> (i32, i32, i32) {
    %c0_i32 = arith.constant 0 : i32
    %c0_i32_0 = arith.constant 0 : i32
    %c0_i32_1 = arith.constant 0 : i32
    return %arg0, %c0_i32, %c0_i32_0 : i32, i32, i32
  }
  func.func @transform_1(%arg0: i32) -> (i32, i32, i32, i32) {
    %c0_i32 = arith.constant 0 : i32
    %c0_i32_0 = arith.constant 0 : i32
    %c0_i32_1 = arith.constant 0 : i32
    %c0_i32_2 = arith.constant 0 : i32
    return %arg0, %c0_i32, %c0_i32_0, %c0_i32_1 : i32, i32, i32, i32
  }
  func.func @transform_2(%arg0: i32) -> (i32, i32) {
    %c0_i32 = arith.constant 0 : i32
    %c0_i32_0 = arith.constant 0 : i32
    %c0_i32_1 = arith.constant 0 : i32
    return %c0_i32, %c0_i32_0 : i32, i32
  }
  func.func @transform_3(%arg0: i32) -> (i32, i32) {
    %c0_i32 = arith.constant 0 : i32
    %c0_i32_0 = arith.constant 0 : i32
    %c0_i32_1 = arith.constant 0 : i32
    return %c0_i32, %c0_i32_0 : i32, i32
  }
  func.func @transform_4(%arg0: i32) -> (i32, i32) {
    %c0_i32 = arith.constant 0 : i32
    %c0_i32_0 = arith.constant 0 : i32
    %c0_i32_1 = arith.constant 0 : i32
    return %c0_i32, %c0_i32_0 : i32, i32
  }
  func.func @transform_5(%arg0: i32) -> (i32, i32) {
    %c0_i32 = arith.constant 0 : i32
    %c0_i32_0 = arith.constant 0 : i32
    %c0_i32_1 = arith.constant 0 : i32
    return %c0_i32, %c0_i32_0 : i32, i32
  }
  func.func @transform_6(%arg0: i32) -> (i32, i32) {
    %c0_i32 = arith.constant 0 : i32
    %c0_i32_0 = arith.constant 0 : i32
    %c0_i32_1 = arith.constant 0 : i32
    return %c0_i32, %c0_i32_0 : i32, i32
  }
  func.func @transform_7(%arg0: i32) -> (i32, i32, i32) {
    %c0_i32 = arith.constant 0 : i32
    %c0_i32_0 = arith.constant 0 : i32
    %c0_i32_1 = arith.constant 0 : i32
    return %arg0, %c0_i32, %c0_i32_0 : i32, i32, i32
  }
}

</mosaic_0001>

<bundles_post_ra>
// kernel: deform_model_forward.1
= control target key start
LH: loop header
LB: loop body
LE: loop exit
PB: predicated region body
PF: predicated region fallthrough
CT: control target
= control target key end

     0   :  { %s7776_s24 = smov 0   ;;  %s11359_s0 = inlined_call_operand.vmem [shape: f32[2,27,256], index: 0, kind: input, shape index: {}]   ;;  %s11360_s1 = inlined_call_operand.vmem [shape: f32[2,1,48,16], index: 1, kind: input, shape index: {}]   ;;  %s11361_s2 = inlined_call_operand.vmem [shape: f32[18,256], index: 2, kind: input, shape index: {}]   ;;  %s11362_s3 = inlined_call_operand.vmem [shape: f32[18,27], index: 3, kind: input, shape index: {}]   ;;  %s11363_s4 = inlined_call_operand.vmem [shape: f32[18,1], index: 4, kind: input, shape index: {}]   ;;  %s11364_s5 = inlined_call_operand.vmem [shape: f32[3,432], index: 5, kind: input, shape index: {}]   ;;  %s11365_s6 = inlined_call_operand.vmem [shape: f32[3,1], index: 6, kind: input, shape index: {}]   ;;  %s11366_s7 = inlined_call_operand.vmem [shape: f32[2,3,256], index: 7, kind: output, shape index: {}]  }
   0x1 LB: > { %s6644_s25 = sadd.s32 4294967295, %s7732_s24   ;;  %p6648_p0 = scmp.ge.s32.totalorder %s7732_s24, 1  ;;  %s7732_s24 = sphi %s7776_s24, %s17_s24  }
   0x2   : > { %p247_p1 = scmp.lt.s32.totalorder %s7732_s24, 3 }
   0x4   : > { %p248_p2 = pnand %p6648_p0, %p247_p1 }
   0x6   : > { %251 = sbr.rel (%p248_p2) target bundleno = 1364 (0x554), region = 48 }
   0xd   : > { %p284_p3 = scmp.lt.s32.totalorder %s6644_s25, 1  ;;  %v300_v0 = vld [vmem:[%s11362_s3] sm:$0xff]  ;;  %vm329_vm0 = vcmask 220160   ;;  %v301_v1 = vld [vmem:[%s11362_s3 + $0x8] sm:$0xff]  ;;  %v7734_v2 = vmov 0.0   ;;  %v11367_v10 = vmov 0  }
   0xe   : > { %418 = vmatprep.mubr.f32.mxu0 %v7734_v2  ;;  %v331_v3 = vsel %vm329_vm0, %v300_v0, 0  ;;  %v334_v4 = vsel %vm329_vm0, %v301_v1, 0  ;;  %v302_v5 = vld [vmem:[%s11362_s3 + $0x10] sm:$0x3]  ;;  %v311_v6 = vld [vmem:[%s11363_s4] sm:$0xff]  ;;  %7722 = vset.pattern.permute.xlu0 %v11367_v10  ;;  %v312_v15 = vld [vmem:[%s11363_s4 + $0x8] sm:$0xff] }
   0xf   : > { %s12509_s25 = smov (!%p284_p3, %s6644_s25), 1  ;;  %v7799_v7 = vand.u32 4294901760, %v331_v3  ;;  %v7801_v8 = vand.u32 4294901760, %v334_v4  ;;  %v337_v9 = vsel %vm329_vm0, %v302_v5, 0  ;;  %7723 = vset.pattern.permute.xlu1 %v11367_v10  ;;  %316 = vperm.xlu0 %7722, %v311_v6   ;;  %v313_v11 = vld [vmem:[%s11363_s4 + $0x10] sm:$0x3] }
  0x10   : > { %1208 = vmatprep.mubr.bf16.mxu1 %v11367_v10  ;;  %s6737_s13 = sshll.u32 %s12509_s25, 6  ;;  %v7816_v14 = vand.u32 4294901760, %v337_v9  ;;  %326 = vperm.xlu1 %7723, %v313_v11   ;;  %vm339_vm1 = vcmask 1042432   ;;  %s7711_s19 = smul.u32 48, %s12509_s25 }
  0x11   : > { %v7811_v12 = vsub.f32 %v331_v3, %v7799_v7  ;;  %v7814_v13 = vsub.f32 %v334_v4, %v7801_v8  ;;  %s288_s18 = scalar_lea.vmem %s11359_s0, %s6737_s13  ;;  %s6738_s20 = sshll.u32 %s12509_s25, 3 }
  0x12   : > { %v304_v16 = vld [vmem:[%s288_s18 + $0x8] sm:$0xff]  ;;  %v306_v17 = vld [vmem:[%s288_s18 + $0x18] sm:$0xff]  ;;  %v303_v18 = vld [vmem:[%s288_s18] sm:$0xff]  ;;  %v7827_v24 = vsub.f32 %v337_v9, %v7816_v14  ;;  %s7961_s22 = scalar_lea.vmem %s11360_s1, %s7711_s19  ;;  %s298_s23 = scalar_lea.vmem %s11366_s7, %s6738_s20 }
  0x13   : > { %v421_v19 = vand.u32 4294901760, %v7811_v12  ;;  %v432_v20 = vand.u32 4294901760, %v7814_v13  ;;  %v346_v21 = vand.u32 4294901760, %v304_v16  ;;  %v350_v22 = vand.u32 4294901760, %v306_v17  ;;  %321 = vperm.xlu0 %7722, %v312_v15   ;;  %v305_v27 = vld [vmem:[%s288_s18 + $0x10] sm:$0xff]  ;;  %v308_v28 = vld [vmem:[%s288_s18 + $0x28] sm:$0xff] }
  0x14   : > { %v348_v23 = vand.u32 4294901760, %v303_v18  ;;  %v310_v29 = vld [vmem:[%s288_s18 + $0x38] sm:$0x7]  ;;  %v352_v33 = vand.u32 4294901760, %v305_v27  ;;  %v307_v36 = vld [vmem:[%s288_s18 + $0x20] sm:$0xff]  ;;  %v354_v38 = vand.u32 4294901760, %v308_v28 }
  0x15   : > { %v7829_v25 = vpack.c.bf16 %v350_v22, %v346_v21  ;;  %v7831_v26 = vsub.f32 %v304_v16, %v346_v21  ;;  %v422_v30 = vsub.f32 %v7811_v12, %v421_v19  ;;  %v433_v31 = vsub.f32 %v7814_v13, %v432_v20  ;;  %v309_v37 = vld [vmem:[%s288_s18 + $0x30] sm:$0x7] }
  0x16   : > { %v7839_v32 = vsub.f32 %v306_v17, %v350_v22  ;;  %v7841_v34 = vsub.f32 %v303_v18, %v348_v23  ;;  %v344_v35 = vsel %vm339_vm1, %v310_v29, 0  ;;  %v341_v40 = vsel %vm339_vm1, %v309_v37, 0 }
  0x17   : > { %6740 = vmatprep.subr.bf16.mxu0 %v7829_v25  ;;  %v358_v39 = vand.u32 4294901760, %v344_v35  ;;  %v356_v41 = vand.u32 4294901760, %v307_v36  ;;  %v7846_v42 = vpack.c.bf16 %v352_v33, %v348_v23  ;;  %v7848_v43 = vsub.f32 %v305_v27, %v352_v33 }
  0x18   : > { %v360_v44 = vand.u32 4294901760, %v341_v40  ;;  %v443_v45 = vand.u32 4294901760, %v7827_v24  ;;  %v7853_v47 = vsub.f32 %v308_v28, %v354_v38  ;;  %v454_v52 = vand.u32 4294901760, %v7831_v26 }
  0x19   : > { %v7851_v46 = vpack.c.bf16 %v358_v39, %v354_v38  ;;  %v7855_v48 = vsub.f32 %v344_v35, %v358_v39  ;;  %v7857_v49 = vsub.f32 %v307_v36, %v356_v41  ;;  %6742 = vmatpush1.bf16.msra.mxu0 %v7846_v42  ;;  %v466_v53 = vand.u32 4294901760, %v7839_v32 }
  0x1a   : > { %v7860_v50 = vpack.c.bf16 %v360_v44, %v356_v41  ;;  %v7862_v51 = vsub.f32 %v341_v40, %v360_v44  ;;  %v423_v54 = vand.u32 4294901760, %v422_v30  ;;  %v460_v55 = vand.u32 4294901760, %v7841_v34 }
  0x1b   : > { %6744 = vmatprep.subr.bf16.mxu0 %v7851_v46  ;;  %v472_v56 = vand.u32 4294901760, %v7848_v43  ;;  %v478_v57 = vand.u32 4294901760, %v7853_v47  ;;  %v455_v58 = vsub.f32 %v7831_v26, %v454_v52  ;;  %v467_v59 = vsub.f32 %v7839_v32, %v466_v53 }
  0x1c   : > { %v490_v60 = vand.u32 4294901760, %v7855_v48  ;;  %v484_v61 = vand.u32 4294901760, %v7857_v49  ;;  %v461_v62 = vsub.f32 %v7841_v34, %v460_v55  ;;  %v496_v1 = vand.u32 4294901760, %v7862_v51 }
  0x1d   : > { %v473_v63 = vsub.f32 %v7848_v43, %v472_v56  ;;  %v479_v0 = vsub.f32 %v7853_v47, %v478_v57  ;;  %6746 = vmatpush1.bf16.msra.mxu0 %v7860_v50  ;;  %v456_v3 = vand.u32 4294901760, %v455_v58  ;;  %v468_v4 = vand.u32 4294901760, %v467_v59 }
  0x1e   : > { %v491_v5 = vsub.f32 %v7855_v48, %v490_v60  ;;  %v485_v6 = vsub.f32 %v7857_v49, %v484_v61  ;;  %v462_v9 = vand.u32 4294901760, %v461_v62  ;;  %v497_v16 = vsub.f32 %v7862_v51, %v496_v1 }
  0x1f   : > { %v474_v11 = vand.u32 4294901760, %v473_v63  ;;  %v480_v15 = vand.u32 4294901760, %v479_v0  ;;  %v6747_v17 = vpack.c.bf16 %v468_v4, %v456_v3  ;;  %v434_v23 = vand.u32 4294901760, %v433_v31 }
  0x20   : > { %v492_v18 = vand.u32 4294901760, %v491_v5  ;;  %v486_v21 = vand.u32 4294901760, %v485_v6  ;;  %424 = vmatmul.mubr.f32.vlgmr.msra.gmra.mrb[0].mxu0 %v423_v54  ;;  %v498_v27 = vand.u32 4294901760, %v497_v16  ;;  %v444_v28 = vsub.f32 %v7827_v24, %v443_v45 }
  0x21   : > { %v6749_v22 = vpack.c.bf16 %v474_v11, %v462_v9  ;;  %6748 = vmatprep.subr.bf16.mxu0 %v6747_v17  ;;  %429 = vmatprep.mubr.f32.mxu0 %v7734_v2  ;;  %v6755_v33 = vpack.c.bf16 %v7839_v32, %v7831_v26  ;;  %v6757_v31 = vpack.c.bf16 %v7848_v43, %v7841_v34 }
  0x22   : > { %v6751_v29 = vpack.c.bf16 %v492_v18, %v480_v15  ;;  %v6753_v30 = vpack.c.bf16 %v498_v27, %v486_v21  ;;  %v445_v35 = vand.u32 4294901760, %v444_v28  ;;  %v6759_v36 = vpack.c.bf16 %v7855_v48, %v7853_v47 }
  0x23   : > { %6750 = vmatpush1.bf16.msra.mxu0 %v6749_v22  ;;  %v6761_v32 = vpack.c.bf16 %v7862_v51, %v7857_v49  ;;  %v6771_v37 = vpack.c.bf16 %v466_v53, %v454_v52  ;;  %v6773_v38 = vpack.c.bf16 %v472_v56, %v460_v55  ;;  %v6775_v26 = vpack.c.bf16 %v490_v60, %v478_v57  ;;  %v7991_v51 = vld [vmem:[%s7961_s22 + $0x18] sm:$0xff] }
  0x24   : > { %6752 = vmatprep.subr.bf16.mxu0 %v6751_v29  ;;  %435 = vmatmul.mubr.f32.gmra.mrb[2].mxu0 %v434_v23  ;;  %v6777_v39 = vpack.c.bf16 %v496_v1, %v484_v61 }
  0x25   : > { %440 = vmatprep.mubr.f32.mxu0 %v7734_v2 }
  0x27   : > { %6754 = vmatpush1.bf16.msra.mxu0 %v6753_v30 }
  0x28   : > { %6756 = vmatprep.subr.bf16.mxu0 %v6755_v33  ;;  %446 = vmatmul.mubr.f32.gmra.mrb[4].mxu0 %v445_v35 }
  0x29   : > { %556 = vmatprep.mubr.f32.mxu0 %v7734_v2 }
  0x2c   : > { %558 = vmatmul.mubr.f32.vlgmr.msra.gmra.mrb[0].mxu0 %v7799_v7 }
  0x2d   : > { %6758 = vmatpush1.bf16.msra.mxu0 %v6757_v31  ;;  %563 = vmatprep.mubr.f32.mxu0 %v7734_v2 }
  0x2e   : > { %6760 = vmatprep.subr.bf16.mxu0 %v6759_v36 }
  0x30   : > { %565 = vmatmul.mubr.f32.gmra.mrb[2].mxu0 %v7801_v8 }
  0x31   : > { %570 = vmatprep.mubr.f32.mxu0 %v7734_v2  ;;  %6762 = vmatpush1.bf16.msra.mxu0 %v6761_v32 }
  0x32   : > { %6764 = vmatprep.subr.bf16.mxu0 %v7829_v25 }
  0x34   : > { %572 = vmatmul.mubr.f32.gmra.mrb[4].mxu0 %v7816_v14 }
  0x35   : > { %658 = vmatprep.mubr.f32.mxu0 %v7734_v2 }
  0x38   : > { %661 = vmatmul.mubr.f32.vlgmr.msra.gmra.mrb[0].mxu0 %v7811_v12  ;;  %v1022_v12 = vld [vmem:[%s7961_s22] sm:$0xff] }
  0x39   : > { %6766 = vmatpush1.bf16.msra.mxu0 %v7846_v42  ;;  %666 = vmatprep.mubr.f32.mxu0 %v7734_v2 }
  0x3a   : > { %6768 = vmatprep.subr.bf16.mxu0 %v7851_v46 }
  0x3c   : > { %669 = vmatmul.mubr.f32.gmra.mrb[2].mxu0 %v7814_v13  ;;  %v1017_v13 = vlaneseq }
  0x3d   : > { %674 = vmatprep.mubr.f32.mxu0 %v7734_v2  ;;  %6770 = vmatpush1.bf16.msra.mxu0 %v7860_v50 }
  0x3e   : > { %6772 = vmatprep.subr.bf16.mxu0 %v6771_v37  ;;  %v7973_v34 = vshrl.u32 %v1017_v13, 7 }
  0x40   : > { %677 = vmatmul.mubr.f32.gmra.mrb[4].mxu0 %v7827_v24  ;;  %v1019_v47 = vadd.s32 8, %v7973_v34  ;;  %v7983_v48 = vsub.s32 0, %v7973_v34  ;;  %v8004_v58 = vsub.s32 2, %v7973_v34  ;;  %v8009_v60 = vcvt.s32.f32 %v7973_v34 }
  0x41   : > { %755 = vmatprep.mubr.f32.mxu0 %v7734_v2 }
  0x42   : > { %11668 = vst [vmem:[#allocation4_spill] sm:$0xff] %v7983_v48  ;;  %11670 = vst [vmem:[#allocation6_spill] sm:$0xff] %v8004_v58  ;;  %v8011_v61 = vcvt.s32.f32 %v1019_v47 }
  0x43   : > { %11672 = vst [vmem:[#allocation8_spill] sm:$0xff] %v8009_v60 }
  0x44   : > { %759 = vmatmul.mubr.f32.vlgmr.msra.gmra.mrb[0].mxu0 %v421_v19  ;;  %11673 = vst [vmem:[#allocation9_spill] sm:$0xff] %v8011_v61 }
  0x45   : > { %6774 = vmatpush1.bf16.msra.mxu0 %v6773_v38  ;;  %764 = vmatprep.mubr.f32.mxu0 %v7734_v2 }
  0x46   : > { %6776 = vmatprep.subr.bf16.mxu0 %v6775_v26 }
  0x48   : > { %768 = vmatmul.mubr.f32.gmra.mrb[2].mxu0 %v432_v20 }
  0x49   : > { %773 = vmatprep.mubr.f32.mxu0 %v7734_v2  ;;  %6778 = vmatpush1.bf16.msra.mxu0 %v6777_v39 }
  0x4a   : > { %6780 = vmatprep.subr.bf16.mxu0 %v7829_v25  ;;  %v988_v25 = vld [vmem:[%s11361_s2 + $0x8] sm:$0xff] }
  0x4c   : > { %777 = vmatmul.mubr.f32.gmra.mrb[4].mxu0 %v443_v45 }
  0x4d   : > { %871 = vmatprep.mubr.f32.mxu0 %v7734_v2 }
  0x50   : > { %873 = vmatmul.mubr.f32.vlgmr.msra.gmra.mrb[0].mxu0 %v7799_v7 }
  0x51   : > { %6782 = vmatpush1.bf16.msra.mxu0 %v7846_v42  ;;  %878 = vmatprep.mubr.f32.mxu0 %v7734_v2 }
  0x52   : > { %6784 = vmatprep.subr.bf16.mxu0 %v7851_v46 }
  0x54   : > { %880 = vmatmul.mubr.f32.gmra.mrb[2].mxu0 %v7801_v8 }
  0x55   : > { %885 = vmatprep.mubr.f32.mxu0 %v7734_v2  ;;  %6786 = vmatpush1.bf16.msra.mxu0 %v7860_v50  ;;  %v7988_v50 = vld [vmem:[%s7961_s22 + $0x10] sm:$0xff] }
  0x56   : > { %v8017_v63 = vpack.c.bf16 %v7991_v51, %v7988_v50 }
  0x58   : > { %887 = vmatmul.mubr.f32.gmra.mrb[4].mxu0 %v7816_v14  ;;  %11674 = vst [vmem:[#allocation10_spill] sm:$0xff] %v8017_v63  ;;  %v1033_v18 = vunpack.c.l.bf16 %v8017_v63  ;;  %v1034_v33 = vunpack.c.h.bf16 %v8017_v63 }
  0x59   : > { %965 = vmatprep.mubr.f32.mxu0 %v7734_v2 }
  0x5c   : > { %967 = vmatmul.mubr.f32.vlgmr.msra.gmra.mrb[0].mxu0 %v7799_v7  ;;  %v1023_v7 = vld [vmem:[%s7961_s22 + $0x8] sm:$0xff] }
  0x5d   : > { %972 = vmatprep.mubr.f32.mxu0 %v7734_v2  ;;  %v7965_v19 = vpack.c.bf16 %v1023_v7, %v1022_v12 }
  0x5f   : > { %11667 = vst [vmem:[#allocation3_spill] sm:$0xff] %v7965_v19  ;;  %v1031_v42 = vunpack.c.l.bf16 %v7965_v19  ;;  %v1032_v43 = vunpack.c.h.bf16 %v7965_v19 }
  0x60   : > { %974 = vmatmul.mubr.f32.gmra.mrb[2].mxu0 %v7801_v8 }
  0x61   : > { %979 = vmatprep.mubr.f32.mxu0 %v7734_v2  ;;  %v987_v2 = vld [vmem:[%s11361_s2] sm:$0xff]  ;;  %v1037_v53 = vsub.f32 %v1022_v12, %v1031_v42  ;;  %v1038_v54 = vsub.f32 %v1023_v7, %v1032_v43 }
  0x63   : > { %v8027_v4 = vpack.c.bf16 %v1038_v54, %v1037_v53 }
  0x64   : > { %981 = vmatmul.mubr.f32.gmra.mrb[4].mxu0 %v7816_v14 }
  0x65   : > { %1899 = vmatprep.mubr.bf16.mxu0 %v11367_v10 }
  0x8e   : > { %v317_v8 = vpop.permute.xlu0 %316 }
 0x12f   : > { %v968_v20 = vpop.f32.mrb[0].mxu0 }
 0x130   : > { %v7435_v14 = vadd.f32 %v968_v20, %v317_v8  ;;  %v970_v24 = vpop.f32.mrb[1].mxu0 }
 0x131   : > { %v7436_v40 = vadd.f32 %v970_v24, %v317_v8 }
 0x132   : > { %v993_v41 = vadd.f32 %v7435_v14, %v987_v2 }
 0x133   : > { %v994_v44 = vadd.f32 %v7436_v40, %v988_v25  ;;  %v7977_v45 = vpop.f32.mrb[2].mxu0 }
 0x134   : > { %v7979_v46 = vpop.f32.mrb[3].mxu0  ;;  %v7993_v52 = vfloor.f32 %v993_v41 }
 0x135   : > { %v7985_v49 = vfloor.f32 %v994_v44 }
 0x136   : > { %v8023_v1 = vsub.f32 %v993_v41, %v7993_v52  ;;  %v1049_v11 = vrot.slane %v7993_v52, %v7983_v48  ;;  %v8046_v27 = vadd.f32 1.0, %v7993_v52  ;;  %v1754_v7 = vrot.slane %v7993_v52, %v8004_v58 }
 0x137   : > { %v7996_v55 = vsub.f32 %v994_v44, %v7985_v49  ;;  %v7998_v56 = vpop.f32.mrb[4].mxu0  ;;  %v8001_v57 = vadd.f32 1.0, %v7985_v49  ;;  %v1053_v62 = vrot.slane %v7985_v49, %v7983_v48  ;;  %v1758_v9 = vrot.slane %v7985_v49, %v8004_v58 }
 0x138   : > { %11669 = vst [vmem:[#allocation5_spill] sm:$0xff] %v7998_v56  ;;  %v8006_v59 = vpop.f32.mrb[5].mxu0  ;;  %v8043_v23 = vsub.f32 1.0, %v8023_v1  ;;  %vm1054_vm8 = vcmp.eq.f32.partialorder %v8009_v60, %v1049_v11  ;;  %vm1056_vm9 = vcmp.eq.f32.partialorder %v8011_v61, %v1049_v11  ;;  %v1075_v38 = vrot.slane %v8046_v27, %v7983_v48 }
 0x139   : > { %11671 = vst [vmem:[#allocation7_spill] sm:$0xff] %v8006_v59  ;;  %v8020_v0 = vsub.f32 1.0, %v7996_v55  ;;  %v1079_v3 = vrot.slane %v8001_v57, %v7983_v48  ;;  %v1091_v6 = vrot.slane %v7996_v55, %v7983_v48  ;;  %vm1055_vm2 = vcmp.eq.f32.partialorder %v8009_v60, %v1053_v62 }
 0x13a   : > { %vm1057_vm3 = vcmp.eq.f32.partialorder %v8011_v61, %v1053_v62  ;;  %v1782_v30 = vrot.slane %v8001_v57, %v8004_v58  ;;  %vm1760_vm6 = vcmp.eq.f32.partialorder %v8009_v60, %v1758_v9  ;;  %vm1762_vm7 = vcmp.eq.f32.partialorder %v8011_v61, %v1758_v9 }
 0x13b   : > { %v1065_v5 = vrot.slane %v8020_v0, %v7983_v48  ;;  %vm1081_vm4 = vcmp.eq.f32.partialorder %v8009_v60, %v1079_v3  ;;  %vm1083_vm5 = vcmp.eq.f32.partialorder %v8011_v61, %v1079_v3  ;;  %v1770_v29 = vrot.slane %v8020_v0, %v8004_v58 }
 0x13c   : > { %v1093_v17 = vsel %vm1081_vm4, %v1091_v6, 0.0  ;;  %v1095_v21 = vsel %vm1083_vm5, %v1091_v6, 0.0  ;;  %v1794_v35 = vrot.slane %v7996_v55, %v8004_v58  ;;  %vm1784_vm10 = vcmp.eq.f32.partialorder %v8009_v60, %v1782_v30 }
 0x13d   : > { %v1067_v15 = vsel %vm1055_vm2, %v1065_v5, 0.0  ;;  %v1069_v16 = vsel %vm1057_vm3, %v1065_v5, 0.0  ;;  %v1772_v36 = vsel %vm1760_vm6, %v1770_v29, 0.0  ;;  %v1774_v32 = vsel %vm1762_vm7, %v1770_v29, 0.0 }
 0x13e   : > { %v1097_v22 = vadd.f32 %v1093_v17, %v1067_v15  ;;  %v1099_v28 = vadd.f32 %v1095_v21, %v1069_v16  ;;  %vm1786_vm11 = vcmp.eq.f32.partialorder %v8011_v61, %v1782_v30  ;;  %v1061_v37 = vrot.slane %v8043_v23, %v7983_v48  ;;  %v1026_v16 = vld [vmem:[%s7961_s22 + $0x20] sm:$0xff]  ;;  %v1027_v17 = vld [vmem:[%s7961_s22 + $0x28] sm:$0xff] }
 0x13f   : > { %v1796_v26 = vsel %vm1784_vm10, %v1794_v35, 0.0  ;;  %v1798_v39 = vsel %vm1786_vm11, %v1794_v35, 0.0  ;;  %v1087_v12 = vrot.slane %v8023_v1, %v7983_v48  ;;  %vm1080_vm12 = vcmp.eq.f32.partialorder %v8009_v60, %v1075_v38 }
 0x140   : > { %v1155_v31 = vpack.c.bf16 %v1099_v28, %v1097_v22  ;;  %v1800_v13 = vadd.f32 %v1796_v26, %v1772_v36  ;;  %v1802_v8 = vadd.f32 %v1798_v39, %v1774_v32  ;;  %v1066_v20 = vsel %vm1054_vm8, %v1061_v37, 0.0 }
 0x141   : > { %v1068_v2 = vsel %vm1056_vm9, %v1061_v37, 0.0  ;;  %vm1082_vm13 = vcmp.eq.f32.partialorder %v8011_v61, %v1075_v38  ;;  %vm1759_vm14 = vcmp.eq.f32.partialorder %v8009_v60, %v1754_v7  ;;  %vm1761_vm15 = vcmp.eq.f32.partialorder %v8011_v61, %v1754_v7 }
 0x142   : > { %1176 = vmatprep.subr.bf16.mxu1 %v1155_v31  ;;  %v1856_v14 = vpack.c.bf16 %v1802_v8, %v1800_v13  ;;  %v1092_v24 = vsel %vm1080_vm12, %v1087_v12, 0.0  ;;  %v1094_v25 = vsel %vm1082_vm13, %v1087_v12, 0.0  ;;  %v1766_v40 = vrot.slane %v8043_v23, %v8004_v58 }
 0x143   : > { %v8077_v41 = vadd.f32 %v1092_v24, %v1066_v20  ;;  %v8079_v42 = vadd.f32 %v1094_v25, %v1068_v2  ;;  %v1778_v43 = vrot.slane %v8046_v27, %v8004_v58  ;;  %v1790_v44 = vrot.slane %v8023_v1, %v8004_v58 }
 0x144   : > { %1867 = vmatprep.subr.bf16.mxu0 %v1856_v14  ;;  %v1771_v47 = vsel %vm1759_vm14, %v1766_v40, 0.0  ;;  %v1773_v53 = vsel %vm1761_vm15, %v1766_v40, 0.0  ;;  %v1157_v54 = vunpack.c.l.bf16 %v1155_v31  ;;  %v1159_v62 = vunpack.c.h.bf16 %v1155_v31 }
 0x145   : > { %v8087_v3 = vpack.c.bf16 %v8079_v42, %v8077_v41  ;;  %vm1783_vm0 = vcmp.eq.f32.partialorder %v8009_v60, %v1778_v43  ;;  %vm1785_vm1 = vcmp.eq.f32.partialorder %v8011_v61, %v1778_v43  ;;  %v1858_v5 = vunpack.c.l.bf16 %v1856_v14 }
 0x146   : > { %v1795_v6 = vsel %vm1783_vm0, %v1790_v44, 0.0  ;;  %v1797_v9 = vsel %vm1785_vm1, %v1790_v44, 0.0  ;;  %v1161_v11 = vsub.f32 %v1097_v22, %v1157_v54  ;;  %v1163_v15 = vsub.f32 %v1099_v28, %v1159_v62 }
 0x147   : > { %1177 = vmatpush1.bf16.msra.mxu1 %v8087_v3  ;;  %v8094_v21 = vadd.f32 %v1795_v6, %v1771_v47  ;;  %v8096_v29 = vadd.f32 %v1797_v9, %v1773_v53  ;;  %vm1166_vm2 = vcmask 130048   ;;  %v1860_v30 = vunpack.c.h.bf16 %v1856_v14 }
 0x148   : > { %1248 = vmatprep.subr.bf16.mxu1 %v1155_v31  ;;  %v1165_v35 = vpack.c.bf16 %v1163_v15, %v1161_v11  ;;  %v1862_v36 = vsub.f32 %v1800_v13, %v1858_v5  ;;  %v8102_v22 = vpack.c.bf16 %v1027_v17, %v1026_v16  ;;  %v1039_v28 = vsub.f32 %v7988_v50, %v1033_v18 }
 0x149   : > { %v8100_v32 = vpack.c.bf16 %v8096_v29, %v8094_v21  ;;  %v1864_v37 = vsub.f32 %v1802_v8, %v1860_v30  ;;  %v1040_v38 = vsub.f32 %v7991_v51, %v1034_v33  ;;  %v8122_v51 = vsub.s32 1, %v7973_v34 }
 0x14a   : > { %11675 = vst [vmem:[#allocation11_spill] sm:$0xff] %v8102_v22  ;;  %6654 = vmatmul.mubr.msk.bf16.vlgmr.msra.gmra.mrb[0].mxu1 %vm1166_vm2, %v8027_v4  ;;  %v1035_v39 = vunpack.c.l.bf16 %v8102_v22  ;;  %v1036_v50 = vunpack.c.h.bf16 %v8102_v22  ;;  %v8138_v20 = vsub.s32 4, %v7973_v34  ;;  %v1156_v24 = vunpack.c.l.bf16 %v8087_v3 }
 0x14b   : > { %1868 = vmatpush1.bf16.msra.mxu0 %v8100_v32  ;;  %1249 = vmatpush1.bf16.msra.mxu1 %v8087_v3  ;;  %v1866_v31 = vpack.c.bf16 %v1864_v37, %v1862_v36  ;;  %v8115_v26 = vpack.c.bf16 %v1040_v38, %v1039_v28  ;;  %11676 = vst [vmem:[#allocation12_spill] sm:$0xff] %v8122_v51  ;;  %v1158_v25 = vunpack.c.h.bf16 %v8087_v3  ;;  %v1857_v6 = vunpack.c.l.bf16 %v8100_v32 }
 0x14c   : > { %1930 = vmatprep.subr.bf16.mxu0 %v1856_v14  ;;  %1311 = vmatprep.subr.bf16.mxu1 %v1165_v35  ;;  %v1041_v18 = vsub.f32 %v1026_v16, %v1035_v39  ;;  %v1042_v33 = vsub.f32 %v1027_v17, %v1036_v50  ;;  %v1441_v12 = vrot.slane %v8001_v57, %v8122_v51  ;;  %v1859_v9 = vunpack.c.h.bf16 %v8100_v32 }
 0x14d   : > { %1218 = vmatprep.mubr.bf16.mxu1 %v11367_v10  ;;  %v1417_v7 = vrot.slane %v7985_v49, %v8122_v51  ;;  %v1429_v8 = vrot.slane %v8020_v0, %v8122_v51  ;;  %11677 = vst [vmem:[#allocation13_spill] sm:$0xff] %v8138_v20  ;;  %v1453_v2 = vrot.slane %v7996_v55, %v8122_v51 }
 0x14e   : > { %6672 = vmatmul.mubr.msk.bf16.vlgmr.msra.gmra.mrb[8].mxu0 %vm1166_vm2, %v8027_v4  ;;  %v8133_v13 = vpack.c.bf16 %v1042_v33, %v1041_v18  ;;  %vm1443_vm3 = vcmp.eq.f32.partialorder %v8009_v60, %v1441_v12  ;;  %vm1445_vm4 = vcmp.eq.f32.partialorder %v8011_v61, %v1441_v12  ;;  %v2464_v14 = vrot.slane %v8001_v57, %v8138_v20 }
 0x14f   : > { %1931 = vmatpush1.bf16.msra.mxu0 %v8100_v32  ;;  %1909 = vmatprep.mubr.bf16.mxu0 %v11367_v10  ;;  %vm1419_vm5 = vcmp.eq.f32.partialorder %v8009_v60, %v1417_v7  ;;  %vm1421_vm6 = vcmp.eq.f32.partialorder %v8011_v61, %v1417_v7  ;;  %v2440_v44 = vrot.slane %v7985_v49, %v8138_v20  ;;  %v1455_v47 = vsel %vm1443_vm3, %v1453_v2, 0.0 }
 0x150   : > { %1993 = vmatprep.subr.bf16.mxu0 %v1866_v31  ;;  %v1431_v40 = vsel %vm1419_vm5, %v1429_v8, 0.0  ;;  %v1433_v43 = vsel %vm1421_vm6, %v1429_v8, 0.0  ;;  %v1457_v53 = vsel %vm1445_vm4, %v1453_v2, 0.0  ;;  %v2452_v54 = vrot.slane %v8020_v0, %v8138_v20 }
 0x151   : > { %v2476_v62 = vrot.slane %v7996_v55, %v8138_v20  ;;  %vm2466_vm7 = vcmp.eq.f32.partialorder %v8009_v60, %v2464_v14  ;;  %vm2468_vm8 = vcmp.eq.f32.partialorder %v8011_v61, %v2464_v14  ;;  %v1160_v3 = vsub.f32 %v8077_v41, %v1156_v24 }
 0x152   : > { %6655 = vmatmul.mubr.msk.bf16.gmra.mrb[4].mxu1 %vm1166_vm2, %v8115_v26  ;;  %v1162_v5 = vsub.f32 %v8079_v42, %v1158_v25  ;;  %v8168_v11 = vadd.f32 %v1455_v47, %v1431_v40  ;;  %v8170_v15 = vadd.f32 %v1457_v53, %v1433_v43  ;;  %vm2442_vm9 = vcmp.eq.f32.partialorder %v8009_v60, %v2440_v44  ;;  %v8225_v25 = vpop.permute.xlu0 %321  ;;  %v989_v47 = vld [vmem:[%s11361_s2 + $0x10] sm:$0xff] }
 0x153   : > { %1228 = vmatprep.mubr.bf16.mxu1 %v11367_v10  ;;  %vm2444_vm10 = vcmp.eq.f32.partialorder %v8011_v61, %v2440_v44  ;;  %v2454_v41 = vsel %vm2442_vm9, %v2452_v54, 0.0  ;;  %v2478_v42 = vsel %vm2466_vm7, %v2476_v62, 0.0  ;;  %v2480_v17 = vsel %vm2468_vm8, %v2476_v62, 0.0 }
 0x154   : > { %v2456_v16 = vsel %vm2444_vm10, %v2452_v54, 0.0  ;;  %v1164_v30 = vpack.c.bf16 %v1162_v5, %v1160_v3  ;;  %v1861_v35 = vsub.f32 %v8094_v21, %v1857_v6  ;;  %v1863_v36 = vsub.f32 %v8096_v29, %v1859_v9 }
 0x155   : > { %v8181_v32 = vpack.c.bf16 %v8170_v15, %v8168_v11  ;;  %v8183_v37 = vadd.f32 %v2478_v42, %v2454_v41  ;;  %v8185_v28 = vadd.f32 %v2480_v17, %v2456_v16  ;;  %v1437_v29 = vrot.slane %v8046_v27, %v8122_v51 }
 0x156   : > { %6673 = vmatmul.mubr.msk.bf16.gmra.mrb[12].mxu0 %vm1166_vm2, %v8115_v26  ;;  %v1865_v38 = vpack.c.bf16 %v1863_v36, %v1861_v35  ;;  %v1413_v31 = vrot.slane %v7993_v52, %v8122_v51  ;;  %v1425_v39 = vrot.slane %v8043_v23, %v8122_v51  ;;  %v1449_v50 = vrot.slane %v8023_v1, %v8122_v51 }
 0x157   : > { %1919 = vmatprep.mubr.bf16.mxu0 %v11367_v10  ;;  %v8193_v21 = vpack.c.bf16 %v8185_v28, %v8183_v37  ;;  %vm1442_vm11 = vcmp.eq.f32.partialorder %v8009_v60, %v1437_v29  ;;  %vm1444_vm12 = vcmp.eq.f32.partialorder %v8011_v61, %v1437_v29  ;;  %v2460_v18 = vrot.slane %v8046_v27, %v8138_v20 }
 0x158   : > { %vm1418_vm13 = vcmp.eq.f32.partialorder %v8009_v60, %v1413_v31  ;;  %vm1420_vm14 = vcmp.eq.f32.partialorder %v8011_v61, %v1413_v31  ;;  %v2436_v12 = vrot.slane %v7993_v52, %v8138_v20  ;;  %v2448_v7 = vrot.slane %v8043_v23, %v8138_v20 }
 0x159   : > { %v1430_v33 = vsel %vm1418_vm13, %v1425_v39, 0.0  ;;  %v1432_v8 = vsel %vm1420_vm14, %v1425_v39, 0.0  ;;  %v1454_v2 = vsel %vm1442_vm11, %v1449_v50, 0.0  ;;  %v1456_v14 = vsel %vm1444_vm12, %v1449_v50, 0.0 }
 0x15a   : > { %6656 = vmatmul.mubr.msk.bf16.gmra.mrb[8].mxu1 %vm1166_vm2, %v8133_v13  ;;  %v2472_v24 = vrot.slane %v8023_v1, %v8138_v20  ;;  %vm2465_vm15 = vcmp.eq.f32.partialorder %v8009_v60, %v2460_v18  ;;  %vm2467_vm0 = vcmp.eq.f32.partialorder %v8011_v61, %v2460_v18  ;;  %v7437_v40 = vadd.f32 %v7977_v45, %v8225_v25 }
 0x15b   : > { %1280 = vmatprep.mubr.bf16.mxu1 %v11367_v10  ;;  %v8232_v43 = vadd.f32 %v1454_v2, %v1430_v33  ;;  %v8234_v44 = vadd.f32 %v1456_v14, %v1432_v8  ;;  %vm2441_vm1 = vcmp.eq.f32.partialorder %v8009_v60, %v2436_v12  ;;  %vm2443_vm3 = vcmp.eq.f32.partialorder %v8011_v61, %v2436_v12 }
 0x15c   : > { %v2453_v53 = vsel %vm2441_vm1, %v2448_v7, 0.0  ;;  %v2455_v54 = vsel %vm2443_vm3, %v2448_v7, 0.0  ;;  %v2477_v62 = vsel %vm2465_vm15, %v2472_v24, 0.0  ;;  %v2479_v3 = vsel %vm2467_vm0, %v2472_v24, 0.0 }
 0x15d   : > { %v995_v45 = vadd.f32 %v7437_v40, %v989_v47  ;;  %v8246_v5 = vpack.c.bf16 %v8234_v44, %v8232_v43  ;;  %v8248_v6 = vadd.f32 %v2477_v62, %v2453_v53  ;;  %v8250_v9 = vadd.f32 %v2479_v3, %v2455_v54 }
 0x15e   : > { %6674 = vmatmul.mubr.msk.bf16.gmra.mrb[16].mxu0 %vm1166_vm2, %v8133_v13  ;;  %v1519_v29 = vunpack.c.h.bf16 %v8181_v32  ;;  %v2540_v31 = vunpack.c.l.bf16 %v8193_v21  ;;  %v8294_v39 = vsub.s32 3, %v7973_v34  ;;  %v2542_v18 = vunpack.c.h.bf16 %v8193_v21 }
 0x15f   : > { %1962 = vmatprep.mubr.bf16.mxu0 %v11367_v10  ;;  %v8257_v41 = vfloor.f32 %v995_v45  ;;  %v8261_v16 = vpack.c.bf16 %v8250_v9, %v8248_v6 }
 0x160   : > { %v2544_v53 = vsub.f32 %v8183_v37, %v2540_v31  ;;  %v2546_v54 = vsub.f32 %v8185_v28, %v2542_v18  ;;  %v2111_v18 = vrot.slane %v8020_v0, %v8294_v39 }
 0x161   : > { %v8269_v42 = vsub.f32 %v995_v45, %v8257_v41  ;;  %v8282_v35 = vadd.f32 1.0, %v8257_v41  ;;  %v1103_v36 = vrot.slane %v8257_v41, %v8122_v51  ;;  %v1806_v7 = vrot.slane %v8257_v41, %v8294_v39 }
 0x162   : > { %6657 = vmatmul.mubr.msk.bf16.vlgmr.msra.gmra.mrb[0].mxu1 %vm1166_vm2, %v7965_v19  ;;  %v2548_v37 = vpack.c.bf16 %v2546_v54, %v2544_v53 }
 0x163   : > { %1312 = vmatpush1.bf16.msra.mxu1 %v1164_v30  ;;  %1290 = vmatprep.mubr.bf16.mxu1 %v11367_v10  ;;  %v8275_v17 = vsub.f32 1.0, %v8269_v42  ;;  %v1517_v30 = vunpack.c.l.bf16 %v8181_v32  ;;  %vm1108_vm4 = vcmp.eq.f32.partialorder %v8009_v60, %v1103_v36  ;;  %v1129_v33 = vrot.slane %v8282_v35, %v8122_v51 }
 0x164   : > { %1526 = vmatprep.subr.bf16.mxu1 %v8181_v32  ;;  %v1842_v2 = vrot.slane %v8269_v42, %v8294_v39  ;;  %vm1811_vm6 = vcmp.eq.f32.partialorder %v8009_v60, %v1806_v7  ;;  %vm1110_vm8 = vcmp.eq.f32.partialorder %v8011_v61, %v1103_v36  ;;  %vm1813_vm10 = vcmp.eq.f32.partialorder %v8011_v61, %v1806_v7 }
 0x165   : > { %v1521_v50 = vsub.f32 %v8168_v11, %v1517_v30  ;;  %v1818_v8 = vrot.slane %v8275_v17, %v8294_v39  ;;  %v1523_v11 = vsub.f32 %v8170_v15, %v1519_v29  ;;  %vm1134_vm5 = vcmp.eq.f32.partialorder %v8009_v60, %v1129_v33 }
 0x166   : > { %6675 = vmatmul.mubr.msk.bf16.vlgmr.msra.gmra.mrb[8].mxu0 %vm1166_vm2, %v7965_v19  ;;  %vm1136_vm9 = vcmp.eq.f32.partialorder %v8011_v61, %v1129_v33  ;;  %v2099_v29 = vrot.slane %v7985_v49, %v8294_v39  ;;  %v2123_v33 = vrot.slane %v8001_v57, %v8294_v39 }
 0x167   : > { %1994 = vmatpush1.bf16.msra.mxu0 %v1865_v38  ;;  %1972 = vmatprep.mubr.bf16.mxu0 %v11367_v10  ;;  %v1115_v38 = vrot.slane %v8275_v17, %v8122_v51  ;;  %v1823_v40 = vsel %vm1811_vm6, %v1818_v8, 0.0  ;;  %v1525_v15 = vpack.c.bf16 %v1523_v11, %v1521_v50  ;;  %v1825_v30 = vsel %vm1813_vm10, %v1818_v8, 0.0 }
 0x168   : > { %2549 = vmatprep.subr.bf16.mxu0 %v8193_v21  ;;  %v1518_v50 = vunpack.c.h.bf16 %v8246_v5  ;;  %vm2101_vm12 = vcmp.eq.f32.partialorder %v8009_v60, %v2099_v29  ;;  %vm2103_vm13 = vcmp.eq.f32.partialorder %v8011_v61, %v2099_v29  ;;  %vm2125_vm14 = vcmp.eq.f32.partialorder %v8009_v60, %v2123_v33 }
 0x169   : > { %v1120_v12 = vsel %vm1108_vm4, %v1115_v38, 0.0  ;;  %v1122_v3 = vsel %vm1110_vm8, %v1115_v38, 0.0  ;;  %v1516_v38 = vunpack.c.l.bf16 %v8246_v5  ;;  %v2113_v11 = vsel %vm2101_vm12, %v2111_v18, 0.0 }
 0x16a   : > { %6658 = vmatmul.mubr.msk.bf16.gmra.mrb[4].mxu1 %vm1166_vm2, %v8017_v63  ;;  %v1522_v8 = vsub.f32 %v8234_v44, %v1518_v50  ;;  %vm2127_vm15 = vcmp.eq.f32.partialorder %v8011_v61, %v2123_v33  ;;  %v2539_v33 = vunpack.c.l.bf16 %v8261_v16 }
 0x16b   : > { %1300 = vmatprep.mubr.bf16.mxu1 %v11367_v10  ;;  %v8358_v7 = vsub.f32 %v8232_v43, %v1516_v38 }
 0x16e   : > { %6676 = vmatmul.mubr.msk.bf16.gmra.mrb[12].mxu0 %vm1166_vm2, %v8017_v63 }
 0x16f   : > { %1982 = vmatprep.mubr.bf16.mxu0 %v11367_v10 }
 0x172   : > { %6659 = vmatmul.mubr.msk.bf16.gmra.mrb[8].mxu1 %vm1166_vm2, %v8102_v22 }
 0x173   : > { %1343 = vmatprep.mubr.bf16.mxu1 %v11367_v10 }
 0x176   : > { %6677 = vmatmul.mubr.msk.bf16.gmra.mrb[16].mxu0 %vm1166_vm2, %v8102_v22 }
 0x177   : > { %2025 = vmatprep.mubr.bf16.mxu0 %v11367_v10 }
 0x17a   : > { %6660 = vmatmul.mubr.msk.bf16.vlgmr.msra.gmra.mrb[0].mxu1 %vm1166_vm2, %v7965_v19 }
 0x17b   : > { %1527 = vmatpush1.bf16.msra.mxu1 %v8246_v5  ;;  %1353 = vmatprep.mubr.bf16.mxu1 %v11367_v10 }
 0x17c   : > { %1589 = vmatprep.subr.bf16.mxu1 %v8181_v32  ;;  %v1141_v32 = vrot.slane %v8269_v42, %v8122_v51 }
 0x17e   : > { %6678 = vmatmul.mubr.msk.bf16.vlgmr.msra.gmra.mrb[8].mxu0 %vm1166_vm2, %v7965_v19  ;;  %v1146_v14 = vsel %vm1134_vm5, %v1141_v32, 0.0  ;;  %v1148_v45 = vsel %vm1136_vm9, %v1141_v32, 0.0  ;;  %v8355_v32 = vsub.s32 5, %v7973_v34 }
 0x17f   : > { %2550 = vmatpush1.bf16.msra.mxu0 %v8261_v16  ;;  %2035 = vmatprep.mubr.bf16.mxu0 %v11367_v10  ;;  %v8317_v24 = vadd.f32 %v1146_v14, %v1120_v12  ;;  %v8333_v28 = vadd.f32 %v1148_v45, %v1122_v3  ;;  %v8351_v12 = vsub.s32 6, %v7973_v34  ;;  %v1477_v14 = vrot.slane %v8275_v17, %v8004_v58 }
 0x180   : > { %2612 = vmatprep.subr.bf16.mxu0 %v8193_v21  ;;  %v1830_v21 = vrot.slane %v8282_v35, %v8294_v39  ;;  %11679 = vst [vmem:[#allocation15_spill] sm:$0xff] %v8355_v32  ;;  %v2500_v54 = vrot.slane %v8275_v17, %v8355_v32  ;;  %v2512_v3 = vrot.slane %v8282_v35, %v8355_v32 }
 0x181   : > { %11678 = vst [vmem:[#allocation14_spill] sm:$0xff] %v8351_v12  ;;  %v3122_v43 = vrot.slane %v7985_v49, %v8351_v12  ;;  %v3146_v44 = vrot.slane %v8001_v57, %v8351_v12 }
 0x182   : > { %6661 = vmatmul.mubr.msk.bf16.gmra.mrb[4].mxu1 %vm1166_vm2, %v8017_v63  ;;  %vm1835_vm7 = vcmp.eq.f32.partialorder %v8009_v60, %v1830_v21  ;;  %vm1837_vm11 = vcmp.eq.f32.partialorder %v8011_v61, %v1830_v21  ;;  %v2115_v21 = vsel %vm2103_vm13, %v2111_v18, 0.0  ;;  %vm2517_vm5 = vcmp.eq.f32.partialorder %v8009_v60, %v2512_v3 }
 0x183   : > { %1363 = vmatprep.mubr.bf16.mxu1 %v11367_v10  ;;  %v1847_v47 = vsel %vm1835_vm7, %v1842_v2, 0.0  ;;  %v1849_v36 = vsel %vm1837_vm11, %v1842_v2, 0.0  ;;  %v1465_v2 = vrot.slane %v8257_v41, %v8004_v58  ;;  %vm3148_vm4 = vcmp.eq.f32.partialorder %v8009_v60, %v3146_v44 }
 0x184   : > { %v8324_v62 = vadd.f32 %v1847_v47, %v1823_v40  ;;  %v8341_v31 = vadd.f32 %v1849_v36, %v1825_v30  ;;  %v1489_v40 = vrot.slane %v8282_v35, %v8004_v58  ;;  %v1501_v47 = vrot.slane %v8269_v42, %v8004_v58 }
 0x185   : > { %vm1470_vm0 = vcmp.eq.f32.partialorder %v8009_v60, %v1465_v2  ;;  %v3134_v30 = vrot.slane %v8020_v0, %v8351_v12  ;;  %v3158_v36 = vrot.slane %v7996_v55, %v8351_v12  ;;  %v2524_v18 = vrot.slane %v8269_v42, %v8355_v32 }
 0x186   : > { %6679 = vmatmul.mubr.msk.bf16.gmra.mrb[12].mxu0 %vm1166_vm2, %v8017_v63  ;;  %vm1494_vm1 = vcmp.eq.f32.partialorder %v8009_v60, %v1489_v40  ;;  %vm3150_vm6 = vcmp.eq.f32.partialorder %v8011_v61, %v3146_v44  ;;  %vm3124_vm7 = vcmp.eq.f32.partialorder %v8009_v60, %v3122_v43  ;;  %vm3126_vm8 = vcmp.eq.f32.partialorder %v8011_v61, %v3122_v43 }
 0x187   : > { %2045 = vmatprep.mubr.bf16.mxu0 %v11367_v10  ;;  %v1506_v38 = vsel %vm1494_vm1, %v1501_v47, 0.0  ;;  %v11682_v58 = vmov 0   ;;  %v3162_v44 = vsel %vm3150_vm6, %v3158_v36, 0.0  ;;  %vm1472_vm9 = vcmp.eq.f32.partialorder %v8011_v61, %v1465_v2 }
 0x188   : > { %vm1496_vm10 = vcmp.eq.f32.partialorder %v8011_v61, %v1489_v40  ;;  %vm2519_vm12 = vcmp.eq.f32.partialorder %v8011_v61, %v2512_v3  ;;  %v8442_v40 = vsub.s32 7, %v7973_v34  ;;  %v2159_v3 = vrot.slane %v8275_v17, %v8138_v20 }
 0x189   : > { %v2171_v34 = vrot.slane %v8282_v35, %v8138_v20 }
 0x18a   : > { %6662 = vmatmul.mubr.msk.bf16.gmra.mrb[8].mxu1 %vm1166_vm2, %v8102_v22  ;;  %11685 = vst [vmem:[#allocation20_spill] sm:$0xff] %v8442_v40 }
 0x18b   : > { %1558 = vmatprep.mubr.bf16.mxu1 %v11367_v10 }
 0x18e   : > { %6680 = vmatmul.mubr.msk.bf16.gmra.mrb[16].mxu0 %vm1166_vm2, %v8102_v22 }
 0x18f   : > { %2581 = vmatprep.mubr.bf16.mxu0 %v11367_v10 }
 0x192   : > { %6663 = vmatmul.mubr.msk.bf16.vlgmr.msra.gmra.mrb[12].mxu1 %vm1166_vm2, %v8027_v4 }
 0x193   : > { %1590 = vmatpush1.bf16.msra.mxu1 %v8246_v5  ;;  %1568 = vmatprep.mubr.bf16.mxu1 %v11367_v10  ;;  %v2135_v5 = vrot.slane %v7996_v55, %v8294_v39 }
 0x194   : > { %1652 = vmatprep.subr.bf16.mxu1 %v1525_v15  ;;  %v2488_v15 = vrot.slane %v8257_v41, %v8355_v32 }
 0x195   : > { %v2137_v53 = vsel %vm2125_vm14, %v2135_v5, 0.0  ;;  %v2139_v45 = vsel %vm2127_vm15, %v2135_v5, 0.0  ;;  %v2541_v5 = vunpack.c.h.bf16 %v8261_v16  ;;  %vm2176_vm14 = vcmp.eq.f32.partialorder %v8009_v60, %v2171_v34 }
 0x196   : > { %6690 = vmatmul.mubr.msk.bf16.vlgmr.msra.gmra.mrb[20].mxu0 %vm1166_vm2, %v8027_v4  ;;  %vm2493_vm3 = vcmp.eq.f32.partialorder %v8009_v60, %v2488_v15  ;;  %v8407_v59 = vadd.f32 %v2137_v53, %v2113_v11  ;;  %v8409_v56 = vadd.f32 %v2139_v45, %v2115_v21  ;;  %v3138_v11 = vsel %vm3126_vm8, %v3134_v30, 0.0 }
 0x197   : > { %2613 = vmatpush1.bf16.msra.mxu0 %v8261_v16  ;;  %2591 = vmatprep.mubr.bf16.mxu0 %v11367_v10  ;;  %v2505_v29 = vsel %vm2493_vm3, %v2500_v54, 0.0  ;;  %v1524_v16 = vpack.c.bf16 %v1522_v8, %v8358_v7  ;;  %v2543_v21 = vsub.f32 %v8248_v6, %v2539_v33  ;;  %v2545_v53 = vsub.f32 %v8250_v9, %v2541_v5 }
 0x198   : > { %2675 = vmatprep.subr.bf16.mxu0 %v2548_v37  ;;  %v1482_v37 = vsel %vm1470_vm0, %v1477_v14, 0.0  ;;  %v8425_v43 = vpack.c.bf16 %v8409_v56, %v8407_v59  ;;  %v1484_v45 = vsel %vm1472_vm9, %v1477_v14, 0.0  ;;  %v8431_v7 = vadd.f32 %v3162_v44, %v3138_v11 }
 0x199   : > { %v8399_v50 = vadd.f32 %v1506_v38, %v1482_v37  ;;  %v3136_v37 = vsel %vm3124_vm7, %v3134_v30, 0.0  ;;  %v3160_v38 = vsel %vm3148_vm4, %v3158_v36, 0.0  ;;  %vm2495_vm11 = vcmp.eq.f32.partialorder %v8011_v61, %v2488_v15 }
 0x19a   : > { %6664 = vmatmul.mubr.msk.bf16.gmra.mrb[16].mxu1 %vm1166_vm2, %v8115_v26  ;;  %v2507_v9 = vsel %vm2495_vm11, %v2500_v54, 0.0  ;;  %v2531_v8 = vsel %vm2519_vm12, %v2524_v18, 0.0  ;;  %v2547_v14 = vpack.c.bf16 %v2545_v53, %v2543_v21  ;;  %v2095_v54 = vrot.slane %v7993_v52, %v8294_v39 }
 0x19b   : > { %1578 = vmatprep.mubr.bf16.mxu1 %v11367_v10  ;;  %11680 = vst [vmem:[#allocation16_spill] sm:$0xff] %v8399_v50  ;;  %v8439_v2 = vadd.f32 %v2531_v8, %v2507_v9  ;;  %v2107_v30 = vrot.slane %v8043_v23, %v8294_v39  ;;  %v2183_v36 = vrot.slane %v8269_v42, %v8138_v20 }
 0x19c   : > { %v3170_v33 = vrot.slane %v8257_v41, %v8442_v40  ;;  %v3182_v5 = vrot.slane %v8275_v17, %v8442_v40  ;;  %v3206_v11 = vrot.slane %v8269_v42, %v8442_v40  ;;  %vm2100_vm1 = vcmp.eq.f32.partialorder %v8009_v60, %v2095_v54 }
 0x19d   : > { %11684 = vst [vmem:[#allocation19_spill] sm:$0xff] %v8439_v2  ;;  %v2131_v53 = vrot.slane %v8023_v1, %v8294_v39  ;;  %vm2102_vm3 = vcmp.eq.f32.partialorder %v8011_v61, %v2095_v54  ;;  %v3130_v54 = vrot.slane %v8043_v23, %v8351_v12  ;;  %vm2178_vm7 = vcmp.eq.f32.partialorder %v8011_v61, %v2171_v34 }
 0x19e   : > { %6691 = vmatmul.mubr.msk.bf16.gmra.mrb[24].mxu0 %vm1166_vm2, %v8115_v26  ;;  %vm3175_vm15 = vcmp.eq.f32.partialorder %v8009_v60, %v3170_v33  ;;  %v2114_v8 = vsel %vm2102_vm3, %v2107_v30, 0.0  ;;  %vm3177_vm8 = vcmp.eq.f32.partialorder %v8011_v61, %v3170_v33  ;;  %v2829_v33 = vrot.slane %v8257_v41, %v8351_v12 }
 0x19f   : > { %2601 = vmatprep.mubr.bf16.mxu0 %v11367_v10  ;;  %v3187_v21 = vsel %vm3175_vm15, %v3182_v5, 0.0 }
 0x1a2   : > { %6665 = vmatmul.mubr.msk.bf16.gmra.mrb[20].mxu1 %vm1166_vm2, %v8133_v13 }
 0x1a3   : > { %1621 = vmatprep.mubr.bf16.mxu1 %v11367_v10  ;;  %v2529_v10 = vsel %vm2517_vm5, %v2524_v18, 0.0 }
 0x1a4   : > { %v8415_v50 = vadd.f32 %v2529_v10, %v2505_v29  ;;  %v8427_v10 = vadd.f32 %v3160_v38, %v3136_v37  ;;  %v1508_v29 = vsel %vm1496_vm10, %v1501_v47, 0.0  ;;  %v2147_v47 = vrot.slane %v8257_v41, %v8138_v20 }
 0x1a5   : > { %v8433_v6 = vadd.f32 %v1508_v29, %v1484_v45  ;;  %v2119_v37 = vrot.slane %v8046_v27, %v8294_v39  ;;  %v2188_v38 = vsel %vm2176_vm14, %v2183_v36, 0.0  ;;  %v2112_v29 = vsel %vm2100_vm1, %v2107_v30, 0.0 }
 0x1a6   : > { %6692 = vmatmul.mubr.msk.bf16.gmra.mrb[28].mxu0 %vm1166_vm2, %v8133_v13  ;;  %11681 = vst [vmem:[#allocation17_spill] sm:$0xff] %v8415_v50  ;;  %v8450_v15 = vpack.c.bf16 %v8431_v7, %v8427_v10  ;;  %vm2152_vm13 = vcmp.eq.f32.partialorder %v8009_v60, %v2147_v47  ;;  %vm2154_vm6 = vcmp.eq.f32.partialorder %v8011_v61, %v2147_v47  ;;  %v2190_v30 = vsel %vm2178_vm7, %v2183_v36, 0.0 }
 0x1a7   : > { %2644 = vmatprep.mubr.bf16.mxu0 %v11682_v58  ;;  %11683 = vst [vmem:[#allocation18_spill] sm:$0xff] %v8433_v6  ;;  %v2164_v18 = vsel %vm2152_vm13, %v2159_v3, 0.0  ;;  %vm2124_vm4 = vcmp.eq.f32.partialorder %v8009_v60, %v2119_v37  ;;  %vm2126_vm5 = vcmp.eq.f32.partialorder %v8011_v61, %v2119_v37  ;;  %v3189_v47 = vsel %vm3177_vm8, %v3182_v5, 0.0 }
 0x1a8   : > { %v8478_v44 = vadd.f32 %v2188_v38, %v2164_v18  ;;  %v3142_v18 = vrot.slane %v8046_v27, %v8351_v12  ;;  %v2166_v38 = vsel %vm2154_vm6, %v2159_v3, 0.0  ;;  %v2138_v37 = vsel %vm2126_vm5, %v2131_v53, 0.0 }
 0x1a9   : > { %v8517_v36 = vadd.f32 %v2138_v37, %v2114_v8  ;;  %v2841_v5 = vrot.slane %v8275_v17, %v8351_v12  ;;  %vm2834_vm14 = vcmp.eq.f32.partialorder %v8009_v60, %v2829_v33 }
 0x1aa   : > { %6666 = vmatmul.mubr.msk.bf16.vlgmr.msra.gmra.mrb[12].mxu1 %vm1166_vm2, %v7965_v19  ;;  %11686 = vst [vmem:[#allocation21_spill] sm:$0xff] %v8478_v44  ;;  %v3154_v44 = vrot.slane %v8023_v1, %v8351_v12  ;;  %vm3147_vm10 = vcmp.eq.f32.partialorder %v8009_v60, %v3142_v18  ;;  %vm3149_vm11 = vcmp.eq.f32.partialorder %v8011_v61, %v3142_v18 }
 0x1ab   : > { %1653 = vmatpush1.bf16.msra.mxu1 %v1524_v16  ;;  %1631 = vmatprep.mubr.bf16.mxu1 %v11682_v58  ;;  %v3194_v16 = vrot.slane %v8282_v35, %v8442_v40  ;;  %v2846_v18 = vsel %vm2834_vm14, %v2841_v5, 0.0 }
 0x1ac   : > { %2208 = vmatprep.subr.bf16.mxu1 %v8425_v43  ;;  %v3161_v8 = vsel %vm3149_vm11, %v3154_v44, 0.0 }
 0x1ad   : > { %vm3199_vm0 = vcmp.eq.f32.partialorder %v8009_v60, %v3194_v16  ;;  %vm3201_vm9 = vcmp.eq.f32.partialorder %v8011_v61, %v3194_v16 }
 0x1ae   : > { %6693 = vmatmul.mubr.msk.bf16.vlgmr.msra.gmra.mrb[20].mxu0 %vm1166_vm2, %v7965_v19  ;;  %v3211_v45 = vsel %vm3199_vm0, %v3206_v11, 0.0  ;;  %vm2836_vm0 = vcmp.eq.f32.partialorder %v8011_v61, %v2829_v33  ;;  %v2199_v33 = vunpack.c.l.bf16 %v8425_v43 }
 0x1af   : > { %2676 = vmatpush1.bf16.msra.mxu0 %v2547_v14  ;;  %2654 = vmatprep.mubr.bf16.mxu0 %v11682_v58  ;;  %v8488_v9 = vadd.f32 %v3211_v45, %v3187_v21  ;;  %v3118_v14 = vrot.slane %v7993_v52, %v8351_v12  ;;  %v2136_v21 = vsel %vm2124_vm4, %v2131_v53, 0.0  ;;  %v8504_v45 = vadd.f32 %v2190_v30, %v2166_v38 }
 0x1b0   : > { %3231 = vmatprep.subr.bf16.mxu0 %v8450_v15  ;;  %v8513_v34 = vadd.f32 %v2136_v21, %v2112_v29  ;;  %v2865_v53 = vrot.slane %v8269_v42, %v8351_v12 }
 0x1b1   : > { %11687 = vst [vmem:[#allocation22_spill] sm:$0xff] %v8488_v9  ;;  %11688 = vst [vmem:[#allocation23_spill] sm:$0xff] %v8504_v45  ;;  %v3213_v9 = vsel %vm3201_vm9, %v3206_v11, 0.0  ;;  %vm3123_vm12 = vcmp.eq.f32.partialorder %v8009_v60, %v3118_v14  ;;  %vm3125_vm13 = vcmp.eq.f32.partialorder %v8011_v61, %v3118_v14  ;;  %v2853_v11 = vrot.slane %v8282_v35, %v8351_v12 }
 0x1b2   : > { %6667 = vmatmul.mubr.msk.bf16.gmra.mrb[16].mxu1 %vm1166_vm2, %v8017_v63  ;;  %v8510_v3 = vadd.f32 %v3213_v9, %v3189_v47  ;;  %v3135_v16 = vsel %vm3123_vm12, %v3130_v54, 0.0  ;;  %v3137_v29 = vsel %vm3125_vm13, %v3130_v54, 0.0  ;;  %v3159_v9 = vsel %vm3147_vm10, %v3154_v44, 0.0 }
 0x1b3   : > { %1641 = vmatprep.mubr.bf16.mxu1 %v11682_v58  ;;  %vm2858_vm15 = vcmp.eq.f32.partialorder %v8009_v60, %v2853_v11  ;;  %v8536_v38 = vpack.c.bf16 %v8517_v36, %v8513_v34  ;;  %v8538_v21 = vadd.f32 %v3159_v9, %v3135_v16  ;;  %v8540_v30 = vadd.f32 %v3161_v8, %v3137_v29 }
 0x1b4   : > { %11689 = vst [vmem:[#allocation24_spill] sm:$0xff] %v8510_v3  ;;  %v2870_v14 = vsel %vm2858_vm15, %v2865_v53, 0.0  ;;  %v2848_v54 = vsel %vm2836_vm0, %v2841_v5, 0.0  ;;  %vm2860_vm1 = vcmp.eq.f32.partialorder %v8011_v61, %v2853_v11  ;;  %v2201_v5 = vunpack.c.h.bf16 %v8425_v43 }
 0x1b5   : > { %v8542_v37 = vadd.f32 %v2870_v14, %v2846_v18  ;;  %v8552_v44 = vpack.c.bf16 %v8540_v30, %v8538_v21  ;;  %v2872_v47 = vsel %vm2860_vm1, %v2865_v53, 0.0  ;;  %v2203_v11 = vsub.f32 %v8407_v59, %v2199_v33 }
 0x1b6   : > { %6694 = vmatmul.mubr.msk.bf16.gmra.mrb[24].mxu0 %vm1166_vm2, %v8017_v63  ;;  %v8559_v16 = vadd.f32 %v2872_v47, %v2848_v54  ;;  %v2205_v53 = vsub.f32 %v8409_v56, %v2201_v5  ;;  %v3222_v29 = vunpack.c.l.bf16 %v8450_v15  ;;  %v3224_v9 = vunpack.c.h.bf16 %v8450_v15 }
 0x1b7   : > { %2664 = vmatprep.mubr.bf16.mxu0 %v11682_v58  ;;  %11690 = vst [vmem:[#allocation25_spill] sm:$0xff] %v8542_v37  ;;  %v7438_v8 = vadd.f32 %v7979_v46, %v8225_v25  ;;  %v2781_v54 = vrot.slane %v7985_v49, %v8355_v32  ;;  %v2793_v47 = vrot.slane %v8020_v0, %v8355_v32 }
 0x1b8   : > { %11691 = vst [vmem:[#allocation26_spill] sm:$0xff] %v8559_v16  ;;  %v2207_v18 = vpack.c.bf16 %v2205_v53, %v2203_v11  ;;  %v3226_v59 = vsub.f32 %v8427_v10, %v3222_v29  ;;  %v3228_v56 = vsub.f32 %v8431_v7, %v3224_v9  ;;  %v2805_v7 = vrot.slane %v8001_v57, %v8355_v32 }
 0x1b9   : > { %v2817_v33 = vrot.slane %v7996_v55, %v8355_v32  ;;  %v2198_v53 = vunpack.c.l.bf16 %v8536_v38  ;;  %v2200_v29 = vunpack.c.h.bf16 %v8536_v38  ;;  %vm2783_vm5 = vcmp.eq.f32.partialorder %v8009_v60, %v2781_v54 }
 0x1ba   : > { %6668 = vmatmul.mubr.msk.bf16.gmra.mrb[20].mxu1 %vm1166_vm2, %v8102_v22  ;;  %v3230_v46 = vpack.c.bf16 %v3228_v56, %v3226_v59  ;;  %vm2807_vm3 = vcmp.eq.f32.partialorder %v8009_v60, %v2805_v7  ;;  %vm2809_vm4 = vcmp.eq.f32.partialorder %v8011_v61, %v2805_v7  ;;  %vm2785_vm6 = vcmp.eq.f32.partialorder %v8011_v61, %v2781_v54 }
 0x1bb   : > { %1684 = vmatprep.mubr.bf16.mxu1 %v11682_v58  ;;  %v2795_v9 = vsel %vm2783_vm5, %v2793_v47, 0.0  ;;  %v2821_v59 = vsel %vm2809_vm4, %v2817_v33, 0.0  ;;  %v3221_v7 = vunpack.c.l.bf16 %v8552_v44  ;;  %v3223_v54 = vunpack.c.h.bf16 %v8552_v44 }
 0x1bd   : > { %v3227_v16 = vsub.f32 %v8540_v30, %v3223_v54  ;;  %v2801_v30 = vrot.slane %v8046_v27, %v8355_v32 }
 0x1be   : > { %6695 = vmatmul.mubr.msk.bf16.gmra.mrb[28].mxu0 %vm1166_vm2, %v8102_v22 }
 0x1bf   : > { %2707 = vmatprep.mubr.bf16.mxu0 %v11682_v58  ;;  %vm2806_vm11 = vcmp.eq.f32.partialorder %v8009_v60, %v2801_v30  ;;  %vm2808_vm12 = vcmp.eq.f32.partialorder %v8011_v61, %v2801_v30 }
 0x1c2   : > { %6669 = vmatmul.mubr.msk.bf16.vlgmr.msra.gmra.mrb[12].mxu1 %vm1166_vm2, %v7965_v19 }
 0x1c3   : > { %2209 = vmatpush1.bf16.msra.mxu1 %v8536_v38  ;;  %1694 = vmatprep.mubr.bf16.mxu1 %v11682_v58 }
 0x1c4   : > { %2271 = vmatprep.subr.bf16.mxu1 %v8425_v43  ;;  %v990_v43 = vld [vmem:[%s11361_s2 + $0x18] sm:$0xff] }
 0x1c5   : > { %v996_v14 = vadd.f32 %v7438_v8, %v990_v43  ;;  %v2797_v8 = vsel %vm2785_vm6, %v2793_v47, 0.0 }
 0x1c6   : > { %6696 = vmatmul.mubr.msk.bf16.vlgmr.msra.gmra.mrb[20].mxu0 %vm1166_vm2, %v7965_v19 }
 0x1c7   : > { %3232 = vmatpush1.bf16.msra.mxu0 %v8552_v44  ;;  %2717 = vmatprep.mubr.bf16.mxu0 %v11682_v58  ;;  %v8593_v25 = vfloor.f32 %v996_v14 }
 0x1c8   : > { %3294 = vmatprep.subr.bf16.mxu0 %v8450_v15 }
 0x1c9   : > { %11692 = vst [vmem:[#allocation27_spill] sm:$0xff] %v8593_v25  ;;  %v8600_v10 = vsub.f32 %v996_v14, %v8593_v25  ;;  %v8606_v15 = vadd.f32 1.0, %v8593_v25  ;;  %v3806_v43 = vrot.slane %v8593_v25, %v7983_v48  ;;  %v2202_v14 = vsub.f32 %v8513_v34, %v2198_v53 }
 0x1ca   : > { %6670 = vmatmul.mubr.msk.bf16.gmra.mrb[16].mxu1 %vm1166_vm2, %v8017_v63 }
 0x1cb   : > { %1704 = vmatprep.mubr.bf16.mxu1 %v11682_v58  ;;  %11693 = vst [vmem:[#allocation28_spill] sm:$0xff] %v8600_v10  ;;  %11694 = vst [vmem:[#allocation29_spill] sm:$0xff] %v8606_v15  ;;  %v8618_v5 = vsub.f32 1.0, %v8600_v10  ;;  %v3830_v11 = vrot.slane %v8606_v15, %v7983_v48  ;;  %vm3808_vm9 = vcmp.eq.f32.partialorder %v8009_v60, %v3806_v43 }
 0x1cc   : > { %vm3810_vm10 = vcmp.eq.f32.partialorder %v8011_v61, %v3806_v43 }
 0x1cd   : > { %11695 = vst [vmem:[#allocation30_spill] sm:$0xff] %v8618_v5  ;;  %v3818_v56 = vrot.slane %v8618_v5, %v7983_v48  ;;  %vm3832_vm7 = vcmp.eq.f32.partialorder %v8009_v60, %v3830_v11  ;;  %vm3834_vm8 = vcmp.eq.f32.partialorder %v8011_v61, %v3830_v11 }
 0x1ce   : > { %6697 = vmatmul.mubr.msk.bf16.gmra.mrb[24].mxu0 %vm1166_vm2, %v8017_v63 }
 0x1cf   : > { %2727 = vmatprep.mubr.bf16.mxu0 %v11682_v58  ;;  %v3820_v34 = vsel %vm3808_vm9, %v3818_v56, 0.0  ;;  %v3822_v11 = vsel %vm3810_vm10, %v3818_v56, 0.0  ;;  %v2813_v56 = vrot.slane %v8023_v1, %v8355_v32 }
 0x1d1   : > { %v2818_v54 = vsel %vm2806_vm11, %v2813_v56, 0.0 }
 0x1d2   : > { %6671 = vmatmul.mubr.msk.bf16.gmra.mrb[20].mxu1 %vm1166_vm2, %v8102_v22 }
 0x1d3   : > { %2240 = vmatprep.mubr.bf16.mxu1 %v11682_v58 }
 0x1d6   : > { %6698 = vmatmul.mubr.msk.bf16.gmra.mrb[28].mxu0 %vm1166_vm2, %v8102_v22 }
 0x1d7   : > { %3263 = vmatprep.mubr.bf16.mxu0 %v11682_v58 }
 0x1da   : > { %6681 = vmatmul.mubr.msk.bf16.vlgmr.msra.gmra.mrb[24].mxu1 %vm1166_vm2, %v8027_v4 }
 0x1db   : > { %2272 = vmatpush1.bf16.msra.mxu1 %v8536_v38  ;;  %2250 = vmatprep.mubr.bf16.mxu1 %v11682_v58  ;;  %v3842_v38 = vrot.slane %v8600_v10, %v7983_v48 }
 0x1dc   : > { %2334 = vmatprep.subr.bf16.mxu1 %v2207_v18  ;;  %v2819_v18 = vsel %vm2807_vm3, %v2817_v33, 0.0  ;;  %v8647_v33 = vadd.f32 %v2821_v59, %v2797_v8  ;;  %v2789_v59 = vrot.slane %v8043_v23, %v8355_v32 }
 0x1dd   : > { %v8645_v47 = vadd.f32 %v2819_v18, %v2795_v9  ;;  %v3846_v53 = vsel %vm3834_vm8, %v3842_v38, 0.0 }
 0x1de   : > { %6708 = vmatmul.mubr.msk.bf16.vlgmr.msra.gmra.mrb[32].mxu0 %vm1166_vm2, %v8027_v4  ;;  %v8662_v43 = vadd.f32 %v3846_v53, %v3822_v11  ;;  %v3814_v11 = vrot.slane %v8275_v17, %v7983_v48 }
 0x1df   : > { %3295 = vmatpush1.bf16.msra.mxu0 %v8552_v44  ;;  %3273 = vmatprep.mubr.bf16.mxu0 %v11682_v58  ;;  %v3225_v44 = vsub.f32 %v8538_v21, %v3221_v7  ;;  %v8658_v9 = vpack.c.bf16 %v8647_v33, %v8645_v47  ;;  %v3802_v7 = vrot.slane %v8257_v41, %v7983_v48 }
 0x1e0   : > { %3357 = vmatprep.subr.bf16.mxu0 %v3230_v46  ;;  %v2204_v46 = vsub.f32 %v8517_v36, %v2200_v29  ;;  %v3844_v36 = vsel %vm3832_vm7, %v3842_v38, 0.0  ;;  %v3826_v38 = vrot.slane %v8282_v35, %v7983_v48  ;;  %v3838_v35 = vrot.slane %v8269_v42, %v7983_v48 }
 0x1e1   : > { %v8660_v8 = vadd.f32 %v3844_v36, %v3820_v34  ;;  %v3229_v18 = vpack.c.bf16 %v3227_v16, %v3225_v44  ;;  %v2777_v16 = vrot.slane %v7993_v52, %v8355_v32  ;;  %v2820_v34 = vsel %vm2808_vm12, %v2813_v56, 0.0 }
 0x1e2   : > { %6682 = vmatmul.mubr.msk.bf16.gmra.mrb[28].mxu1 %vm1166_vm2, %v8115_v26  ;;  %v2206_v29 = vpack.c.bf16 %v2204_v46, %v2202_v14  ;;  %vm3831_vm15 = vcmp.eq.f32.partialorder %v8009_v60, %v3826_v38  ;;  %vm3833_vm0 = vcmp.eq.f32.partialorder %v8011_v61, %v3826_v38  ;;  %vm3807_vm1 = vcmp.eq.f32.partialorder %v8009_v60, %v3802_v7 }
 0x1e3   : > { %2260 = vmatprep.mubr.bf16.mxu1 %v11682_v58  ;;  %v8670_v21 = vpack.c.bf16 %v8662_v43, %v8660_v8  ;;  %vm2782_vm13 = vcmp.eq.f32.partialorder %v8009_v60, %v2777_v16  ;;  %vm2784_vm14 = vcmp.eq.f32.partialorder %v8011_v61, %v2777_v16  ;;  %vm3809_vm3 = vcmp.eq.f32.partialorder %v8011_v61, %v3802_v7 }
 0x1e4   : > { %v2794_v14 = vsel %vm2782_vm13, %v2789_v59, 0.0  ;;  %v2796_v46 = vsel %vm2784_vm14, %v2789_v59, 0.0  ;;  %v3819_v17 = vsel %vm3807_vm1, %v3814_v11, 0.0  ;;  %v3821_v53 = vsel %vm3809_vm3, %v3814_v11, 0.0 }
 0x1e5   : > { %v8705_v36 = vadd.f32 %v2818_v54, %v2794_v14  ;;  %v8707_v41 = vadd.f32 %v2820_v34, %v2796_v46  ;;  %v3843_v42 = vsel %vm3831_vm15, %v3838_v35, 0.0  ;;  %v2881_v59 = vunpack.c.l.bf16 %v8658_v9 }
 0x1e6   : > { %6709 = vmatmul.mubr.msk.bf16.gmra.mrb[36].mxu0 %vm1166_vm2, %v8115_v26  ;;  %v2883_v56 = vunpack.c.h.bf16 %v8658_v9  ;;  %v3906_v46 = vunpack.c.l.bf16 %v8670_v21  ;;  %v3908_v7 = vunpack.c.h.bf16 %v8670_v21 }
 0x1e7   : > { %3283 = vmatprep.mubr.bf16.mxu0 %v11682_v58  ;;  %v2878_v44 = vpack.c.bf16 %v8707_v41, %v8705_v36  ;;  %v2885_v38 = vsub.f32 %v8645_v47, %v2881_v59 }
 0x1e8   : > { %v2887_v14 = vsub.f32 %v8647_v33, %v2883_v56  ;;  %v3912_v34 = vsub.f32 %v8662_v43, %v3908_v7  ;;  %v3487_v33 = vrot.slane %v8001_v57, %v8442_v40  ;;  %v3475_v43 = vrot.slane %v8020_v0, %v8442_v40 }
 0x1e9   : > { %v2880_v11 = vunpack.c.l.bf16 %v2878_v44  ;;  %v2882_v57 = vunpack.c.h.bf16 %v2878_v44 }
 0x1ea   : > { %6683 = vmatmul.mubr.msk.bf16.gmra.mrb[32].mxu1 %vm1166_vm2, %v8133_v13  ;;  %v2889_v54 = vpack.c.bf16 %v2887_v14, %v2885_v38  ;;  %vm3489_vm4 = vcmp.eq.f32.partialorder %v8009_v60, %v3487_v33  ;;  %vm3491_vm5 = vcmp.eq.f32.partialorder %v8011_v61, %v3487_v33 }
 0x1eb   : > { %2303 = vmatprep.mubr.bf16.mxu1 %v11682_v58 }
 0x1ee   : > { %6710 = vmatmul.mubr.msk.bf16.gmra.mrb[40].mxu0 %vm1166_vm2, %v8133_v13 }
 0x1ef   : > { %3326 = vmatprep.mubr.bf16.mxu0 %v11682_v58 }
 0x1f2   : > { %6684 = vmatmul.mubr.msk.bf16.vlgmr.msra.gmra.mrb[24].mxu1 %vm1166_vm2, %v7965_v19 }
 0x1f3   : > { %2335 = vmatpush1.bf16.msra.mxu1 %v2206_v29  ;;  %2313 = vmatprep.mubr.bf16.mxu1 %v11682_v58  ;;  %v3845_v29 = vsel %vm3833_vm0, %v3838_v35, 0.0 }
 0x1f4   : > { %2890 = vmatprep.subr.bf16.mxu1 %v8658_v9  ;;  %v8718_v30 = vadd.f32 %v3845_v29, %v3821_v53  ;;  %v2886_v53 = vsub.f32 %v8707_v41, %v2882_v57  ;;  %v3483_v41 = vrot.slane %v8046_v27, %v8442_v40  ;;  %v1133_v27 = vrot.slane %v8606_v15, %v8122_v51 }
 0x1f5   : > { %v1822_v57 = vrot.slane %v8618_v5, %v8294_v39 }
 0x1f6   : > { %6711 = vmatmul.mubr.msk.bf16.vlgmr.msra.gmra.mrb[32].mxu0 %vm1166_vm2, %v7965_v19  ;;  %vm3488_vm8 = vcmp.eq.f32.partialorder %v8009_v60, %v3483_v41  ;;  %vm3490_vm9 = vcmp.eq.f32.partialorder %v8011_v61, %v3483_v41  ;;  %vm1135_vm12 = vcmp.eq.f32.partialorder %v8009_v60, %v1133_v27  ;;  %vm1137_vm14 = vcmp.eq.f32.partialorder %v8011_v61, %v1133_v27 }
 0x1f7   : > { %3358 = vmatpush1.bf16.msra.mxu0 %v3229_v18  ;;  %3336 = vmatprep.mubr.bf16.mxu0 %v11682_v58  ;;  %v8716_v18 = vadd.f32 %v3843_v42, %v3819_v17 }
 0x1f8   : > { %3915 = vmatprep.subr.bf16.mxu0 %v8670_v21 }
 0x1f9   : > { %v3903_v16 = vpack.c.bf16 %v8718_v30, %v8716_v18 }
 0x1fa   : > { %6685 = vmatmul.mubr.msk.bf16.gmra.mrb[28].mxu1 %vm1166_vm2, %v8017_v63 }
 0x1fb   : > { %2323 = vmatprep.mubr.bf16.mxu1 %v11682_v58  ;;  %v3905_v42 = vunpack.c.l.bf16 %v3903_v16  ;;  %v3907_v29 = vunpack.c.h.bf16 %v3903_v16 }
 0x1fd   : > { %v3909_v38 = vsub.f32 %v8716_v18, %v3905_v42  ;;  %v3911_v14 = vsub.f32 %v8718_v30, %v3907_v29  ;;  %v3459_v18 = vrot.slane %v7993_v52, %v8442_v40  ;;  %v3471_v30 = vrot.slane %v8043_v23, %v8442_v40 }
 0x1fe   : > { %6712 = vmatmul.mubr.msk.bf16.gmra.mrb[36].mxu0 %vm1166_vm2, %v8017_v63  ;;  %v1107_v52 = vrot.slane %v8593_v25, %v8122_v51 }
 0x1ff   : > { %3346 = vmatprep.mubr.bf16.mxu0 %v11682_v58  ;;  %vm3464_vm10 = vcmp.eq.f32.partialorder %v8009_v60, %v3459_v18  ;;  %vm3466_vm11 = vcmp.eq.f32.partialorder %v8011_v61, %v3459_v18 }
 0x200   : > { %v3478_v23 = vsel %vm3466_vm11, %v3471_v30, 0.0  ;;  %vm1109_vm13 = vcmp.eq.f32.partialorder %v8009_v60, %v1107_v52  ;;  %vm1111_vm1 = vcmp.eq.f32.partialorder %v8011_v61, %v1107_v52 }
 0x202   : > { %6686 = vmatmul.mubr.msk.bf16.gmra.mrb[32].mxu1 %vm1166_vm2, %v8102_v22 }
 0x203   : > { %2366 = vmatprep.mubr.bf16.mxu1 %v11682_v58 }
 0x206   : > { %6713 = vmatmul.mubr.msk.bf16.gmra.mrb[40].mxu0 %vm1166_vm2, %v8102_v22 }
 0x207   : > { %3389 = vmatprep.mubr.bf16.mxu0 %v11682_v58 }
 0x20a   : > { %6687 = vmatmul.mubr.msk.bf16.vlgmr.msra.gmra.mrb[24].mxu1 %vm1166_vm2, %v7965_v19 }
 0x20b   : > { %2891 = vmatpush1.bf16.msra.mxu1 %v2878_v44  ;;  %2376 = vmatprep.mubr.bf16.mxu1 %v11682_v58 }
 0x20c   : > { %2953 = vmatprep.subr.bf16.mxu1 %v8658_v9  ;;  %v3910_v9 = vsub.f32 %v8660_v8, %v3906_v46  ;;  %v3463_v8 = vrot.slane %v7985_v49, %v8442_v40  ;;  %v3495_v46 = vrot.slane %v8023_v1, %v8442_v40  ;;  %v3476_v1 = vsel %vm3464_vm10, %v3471_v30, 0.0 }
 0x20e   : > { %6714 = vmatmul.mubr.msk.bf16.vlgmr.msra.gmra.mrb[32].mxu0 %vm1166_vm2, %v7965_v19  ;;  %v3914_v47 = vpack.c.bf16 %v3912_v34, %v3910_v9  ;;  %vm3465_vm6 = vcmp.eq.f32.partialorder %v8009_v60, %v3463_v8  ;;  %vm3467_vm7 = vcmp.eq.f32.partialorder %v8011_v61, %v3463_v8  ;;  %v3500_v7 = vsel %vm3488_vm8, %v3495_v46, 0.0 }
 0x20f   : > { %3916 = vmatpush1.bf16.msra.mxu0 %v3903_v16  ;;  %3399 = vmatprep.mubr.bf16.mxu0 %v11682_v58  ;;  %v3477_v49 = vsel %vm3465_vm6, %v3475_v43, 0.0  ;;  %v3479_v0 = vsel %vm3467_vm7, %v3475_v43, 0.0  ;;  %v1119_v9 = vrot.slane %v8618_v5, %v8122_v51  ;;  %v1145_v34 = vrot.slane %v8600_v10, %v8122_v51 }
 0x210   : > { %3978 = vmatprep.subr.bf16.mxu0 %v8670_v21  ;;  %v3499_v21 = vrot.slane %v7996_v55, %v8442_v40  ;;  %v2884_v55 = vsub.f32 %v8705_v36, %v2880_v11  ;;  %v3504_v33 = vadd.f32 %v3500_v7, %v3476_v1  ;;  %v1810_v43 = vrot.slane %v8593_v25, %v8294_v39 }
 0x211   : > { %v1147_v11 = vsel %vm1135_vm12, %v1145_v34, 0.0  ;;  %v1149_v42 = vsel %vm1137_vm14, %v1145_v34, 0.0 }
 0x212   : > { %6688 = vmatmul.mubr.msk.bf16.gmra.mrb[28].mxu1 %vm1166_vm2, %v8017_v63  ;;  %v3501_v35 = vsel %vm3489_vm4, %v3499_v21, 0.0  ;;  %v3503_v17 = vsel %vm3491_vm5, %v3499_v21, 0.0  ;;  %v2888_v56 = vpack.c.bf16 %v2886_v53, %v2884_v55  ;;  %v1121_v21 = vsel %vm1109_vm13, %v1119_v9, 0.0 }
 0x213   : > { %2386 = vmatprep.mubr.bf16.mxu1 %v11682_v58  ;;  %v3507_v59 = vadd.f32 %v3503_v17, %v3479_v0  ;;  %vm1812_vm0 = vcmp.eq.f32.partialorder %v8009_v60, %v1810_v43  ;;  %v1123_v53 = vsel %vm1111_vm1, %v1119_v9, 0.0  ;;  %vm1814_vm4 = vcmp.eq.f32.partialorder %v8011_v61, %v1810_v43 }
 0x214   : > { %v1824_v55 = vsel %vm1812_vm0, %v1822_v57, 0.0  ;;  %v1826_v18 = vsel %vm1814_vm4, %v1822_v57, 0.0  ;;  %v8855_v1 = vadd.f32 %v1149_v42, %v1123_v53 }
 0x216   : > { %6715 = vmatmul.mubr.msk.bf16.gmra.mrb[36].mxu0 %vm1166_vm2, %v8017_v63 }
 0x217   : > { %3409 = vmatprep.mubr.bf16.mxu0 %v11682_v58 }
 0x21a   : > { %6689 = vmatmul.mubr.msk.bf16.gmra.mrb[32].mxu1 %vm1166_vm2, %v8102_v22 }
 0x21b   : > { %2922 = vmatprep.mubr.bf16.mxu1 %v11682_v58 }
 0x21e   : > { %6716 = vmatmul.mubr.msk.bf16.gmra.mrb[40].mxu0 %vm1166_vm2, %v8102_v22 }
 0x21f   : > { %3947 = vmatprep.mubr.bf16.mxu0 %v11682_v58 }
 0x222   : > { %6699 = vmatmul.mubr.msk.bf16.vlgmr.msra.gmra.mrb[36].mxu1 %vm1166_vm2, %v8027_v4 }
 0x223   : > { %2954 = vmatpush1.bf16.msra.mxu1 %v2878_v44  ;;  %2932 = vmatprep.mubr.bf16.mxu1 %v11682_v58  ;;  %v3505_v44 = vadd.f32 %v3501_v35, %v3477_v49  ;;  %v1846_v49 = vrot.slane %v8600_v10, %v8294_v39 }
 0x224   : > { %3016 = vmatprep.subr.bf16.mxu1 %v2889_v54  ;;  %v3502_v54 = vsel %vm3490_vm9, %v3495_v46, 0.0 }
 0x225   : > { %v8786_v36 = vpack.c.bf16 %v3507_v59, %v3505_v44  ;;  %v3506_v8 = vadd.f32 %v3502_v54, %v3478_v23 }
 0x226   : > { %6726 = vmatmul.mubr.msk.bf16.vlgmr.msra.gmra.mrb[44].mxu0 %vm1166_vm2, %v8027_v4 }
 0x227   : > { %3979 = vmatpush1.bf16.msra.mxu0 %v3903_v16  ;;  %3957 = vmatprep.mubr.bf16.mxu0 %v11682_v58  ;;  %v3913_v16 = vpack.c.bf16 %v3911_v14, %v3909_v38  ;;  %v3565_v0 = vunpack.c.l.bf16 %v8786_v36  ;;  %v3567_v35 = vunpack.c.h.bf16 %v8786_v36  ;;  %v8835_v17 = vpack.c.bf16 %v3506_v8, %v3504_v33 }
 0x228   : > { %4041 = vmatprep.subr.bf16.mxu0 %v3914_v47  ;;  %v1834_v47 = vrot.slane %v8606_v15, %v8294_v39  ;;  %v8841_v39 = vadd.f32 %v1147_v11, %v1121_v21 }
 0x229   : > { %v8844_v38 = vsub.f32 %v3505_v44, %v3565_v0  ;;  %v8846_v14 = vsub.f32 %v3507_v59, %v3567_v35  ;;  %v3564_v46 = vunpack.c.l.bf16 %v8835_v17  ;;  %v3566_v44 = vunpack.c.h.bf16 %v8835_v17 }
 0x22a   : > { %6700 = vmatmul.mubr.msk.bf16.gmra.mrb[40].mxu1 %vm1166_vm2, %v8115_v26  ;;  %vm1836_vm15 = vcmp.eq.f32.partialorder %v8009_v60, %v1834_v47  ;;  %vm1838_vm3 = vcmp.eq.f32.partialorder %v8011_v61, %v1834_v47 }
 0x22b   : > { %2942 = vmatprep.mubr.bf16.mxu1 %v11682_v58  ;;  %v1850_v30 = vsel %vm1838_vm3, %v1846_v49, 0.0  ;;  %v8875_v35 = vsub.f32 %v3504_v33, %v3564_v46 }
 0x22c   : > { %v8866_v43 = vadd.f32 %v1850_v30, %v1826_v18 }
 0x22d   : > { %11697 = vst [vmem:[#allocation32_spill] sm:$0xff] %v8875_v35 }
 0x22e   : > { %6727 = vmatmul.mubr.msk.bf16.gmra.mrb[48].mxu0 %vm1166_vm2, %v8115_v26 }
 0x22f   : > { %3967 = vmatprep.mubr.bf16.mxu0 %v11682_v58 }
 0x232   : > { %6701 = vmatmul.mubr.msk.bf16.gmra.mrb[44].mxu1 %vm1166_vm2, %v8133_v13 }
 0x233   : > { %2985 = vmatprep.mubr.bf16.mxu1 %v11682_v58 }
 0x236   : > { %6728 = vmatmul.mubr.msk.bf16.gmra.mrb[52].mxu0 %vm1166_vm2, %v8133_v13 }
 0x237   : > { %4010 = vmatprep.mubr.bf16.mxu0 %v11682_v58 }
 0x23a   : > { %6702 = vmatmul.mubr.msk.bf16.vlgmr.msra.gmra.mrb[36].mxu1 %vm1166_vm2, %v7965_v19 }
 0x23b   : > { %3017 = vmatpush1.bf16.msra.mxu1 %v2888_v56  ;;  %2995 = vmatprep.mubr.bf16.mxu1 %v11682_v58  ;;  %v1848_v56 = vsel %vm1836_vm15, %v1846_v49, 0.0 }
 0x23c   : > { %3574 = vmatprep.subr.bf16.mxu1 %v8786_v36  ;;  %v8859_v23 = vadd.f32 %v1848_v56, %v1824_v55  ;;  %v8888_v56 = vsub.f32 %v3506_v8, %v3566_v44 }
 0x23e   : > { %6729 = vmatmul.mubr.msk.bf16.vlgmr.msra.gmra.mrb[44].mxu0 %vm1166_vm2, %v7965_v19  ;;  %11699 = vst [vmem:[#allocation34_spill] sm:$0xff] %v8888_v56 }
 0x23f   : > { %4042 = vmatpush1.bf16.msra.mxu0 %v3913_v16  ;;  %4020 = vmatprep.mubr.bf16.mxu0 %v11682_v58 }
 0x242   : > { %6703 = vmatmul.mubr.msk.bf16.gmra.mrb[40].mxu1 %vm1166_vm2, %v8017_v63 }
 0x243   : > { %3005 = vmatprep.mubr.bf16.mxu1 %v11682_v58 }
 0x246   : > { %6730 = vmatmul.mubr.msk.bf16.gmra.mrb[48].mxu0 %vm1166_vm2, %v8017_v63 }
 0x247   : > { %4030 = vmatprep.mubr.bf16.mxu0 %v11682_v58 }
 0x24a   : > { %6704 = vmatmul.mubr.msk.bf16.gmra.mrb[44].mxu1 %vm1166_vm2, %v8102_v22 }
 0x24b   : > { %3048 = vmatprep.mubr.bf16.mxu1 %v11682_v58 }
 0x24d   : > { %v1345_v29 = vpop.f32.mrb[0].mxu1 }
 0x24e   : > { %6731 = vmatmul.mubr.msk.bf16.gmra.mrb[52].mxu0 %vm1166_vm2, %v8102_v22  ;;  %v1386_v41 = vmul.f32 %v1345_v29, %v8317_v24  ;;  %v1347_v16 = vpop.f32.mrb[1].mxu1 }
 0x24f   : > { %v8853_v27 = vmul.f32 %v1347_v16, %v8841_v39  ;;  %v1349_v52 = vpop.f32.mrb[2].mxu1  ;;  %4073 = vmatprep.mubr.bf16.mxu0 %v11682_v58 }
 0x250   : > { %v4266_v59 = vand.u32 4294901760, %v1386_v41  ;;  %v1388_v7 = vmul.f32 %v1349_v52, %v8333_v28  ;;  %v1351_v54 = vpop.f32.mrb[3].mxu1 }
 0x251   : > { %v2027_v9 = vpop.f32.mrb[8].mxu0  ;;  %v11378_v34 = vand.u32 4294901760, %v8853_v27  ;;  %v8864_v47 = vmul.f32 %v1351_v54, %v8855_v1 }
 0x252   : > { %v8870_v11 = vsub.f32 %v1386_v41, %v4266_v59  ;;  %v2068_v57 = vmul.f32 %v2027_v9, %v8324_v62  ;;  %v2029_v49 = vpop.f32.mrb[9].mxu0  ;;  %v4270_v0 = vand.u32 4294901760, %v1388_v7  ;;  %6705 = vmatmul.mubr.msk.bf16.vlgmr.msra.gmra.mrb[36].mxu1 %vm1166_vm2, %v7965_v19 }
 0x253   : > { %v8880_v55 = vsub.f32 %v8853_v27, %v11378_v34  ;;  %v8883_v53 = vmul.f32 %v2029_v49, %v8859_v23  ;;  %v2031_v42 = vpop.f32.mrb[10].mxu0  ;;  %v11376_v29 = vand.u32 4294901760, %v8864_v47  ;;  %3575 = vmatpush1.bf16.msra.mxu1 %v8835_v17  ;;  %3058 = vmatprep.mubr.bf16.mxu1 %v11682_v58 }
 0x254   : > { %11696 = vst [vmem:[#allocation31_spill] sm:$0xff] %v8870_v11  ;;  %v11375_v33 = vand.u32 4294901760, %v8870_v11  ;;  %v4314_v41 = vand.u32 4294901760, %v2068_v57  ;;  %v8891_v16 = vpack.c.bf16 %v4270_v0, %v4266_v59  ;;  %v8893_v18 = vsub.f32 %v1388_v7, %v4270_v0  ;;  %v2033_v30 = vpop.f32.mrb[11].mxu0  ;;  %3637 = vmatprep.subr.bf16.mxu1 %v8786_v36 }
 0x255   : > { %11698 = vst [vmem:[#allocation33_spill] sm:$0xff] %v8880_v55  ;;  %v11377_v52 = vand.u32 4294901760, %v8883_v53  ;;  %v2070_v54 = vmul.f32 %v2031_v42, %v8341_v31  ;;  %v8902_v8 = vsub.f32 %v8864_v47, %v11376_v29  ;;  %v1355_v44 = vpop.f32.mrb[4].mxu1 }
 0x256   : > { %11700 = vst [vmem:[#allocation35_spill] sm:$0xff] %v8891_v16  ;;  %11701 = vst [vmem:[#allocation36_spill] sm:$0xff] %v8893_v18  ;;  %v8907_v59 = vsub.f32 %v8870_v11, %v11375_v33  ;;  %v8909_v7 = vsub.f32 %v2068_v57, %v4314_v41  ;;  %v11384_v36 = vand.u32 4294901760, %v8893_v18  ;;  %6732 = vmatmul.mubr.msk.bf16.vlgmr.msra.gmra.mrb[44].mxu0 %vm1166_vm2, %v7965_v19  ;;  %v1357_v49 = vpop.f32.mrb[5].mxu1 }
 0x257   : > { %11702 = vst [vmem:[#allocation37_spill] sm:$0xff] %v8902_v8  ;;  %v8919_v0 = vsub.f32 %v8883_v53, %v11377_v52  ;;  %v4318_v42 = vand.u32 4294901760, %v2070_v54  ;;  %v8923_v57 = vmul.f32 %v2033_v30, %v8866_v43  ;;  %v1359_v46 = vpop.f32.mrb[6].mxu1  ;;  %4083 = vmatprep.mubr.bf16.mxu0 %v11682_v58  ;;  %v1390_v52 = vmul.f32 %v1355_v44, %v8317_v24 }
 0x258   : > { %11703 = vst [vmem:[#allocation38_spill] sm:$0xff] %v8909_v7  ;;  %v11388_v21 = vand.u32 4294901760, %v8909_v7  ;;  %v8931_v29 = vsub.f32 %v8893_v18, %v11384_v36  ;;  %v1361_v34 = vpop.f32.mrb[7].mxu1 }
 0x259   : > { %11704 = vst [vmem:[#allocation39_spill] sm:$0xff] %v8919_v0  ;;  %v8935_v48 = vpack.c.bf16 %v4318_v42, %v4314_v41  ;;  %v8937_v30 = vsub.f32 %v2070_v54, %v4318_v42  ;;  %v11392_v37 = vand.u32 4294901760, %v8923_v57  ;;  %v2037_v51 = vpop.f32.mrb[12].mxu0  ;;  %v4274_v12 = vand.u32 4294901760, %v1390_v52 }
 0x25a   : > { %v8943_v9 = vsub.f32 %v8909_v7, %v11388_v21  ;;  %v2072_v44 = vmul.f32 %v2037_v51, %v8324_v62  ;;  %v2039_v3 = vpop.f32.mrb[13].mxu0  ;;  %6706 = vmatmul.mubr.msk.bf16.gmra.mrb[40].mxu1 %vm1166_vm2, %v8017_v63  ;;  %v8958_v21 = vmul.f32 %v1357_v49, %v8841_v39 }
 0x25b   : > { %11705 = vst [vmem:[#allocation40_spill] sm:$0xff] %v8935_v48  ;;  %11706 = vst [vmem:[#allocation41_spill] sm:$0xff] %v8937_v30  ;;  %v8955_v42 = vsub.f32 %v8923_v57, %v11392_v37  ;;  %v2041_v33 = vpop.f32.mrb[14].mxu0  ;;  %3068 = vmatprep.mubr.bf16.mxu1 %v11682_v58  ;;  %v8962_v36 = vsub.f32 %v1390_v52, %v4274_v12  ;;  %v8965_v41 = vmul.f32 %v2039_v3, %v8859_v23 }
 0x25c   : > { %v4322_v45 = vand.u32 4294901760, %v2072_v44  ;;  %v2043_v54 = vpop.f32.mrb[15].mxu0  ;;  %v11709_v40 = vand.u32 4294901760, %v8937_v30  ;;  %v11403_v20 = vand.u32 4294901760, %v8958_v21  ;;  %v1392_v48 = vmul.f32 %v1359_v46, %v8333_v28 }
 0x25d   : > { %11707 = vst [vmem:[#allocation42_spill] sm:$0xff] %v8955_v42  ;;  %11708 = vst [vmem:[#allocation43_spill] sm:$0xff] %v8962_v36  ;;  %v1365_v2 = vpop.f32.mrb[8].mxu1  ;;  %v2074_v50 = vmul.f32 %v2041_v33, %v8341_v31  ;;  %v11712_v52 = vand.u32 4294901760, %v8853_v27  ;;  %v11715_v33 = vand.u32 4294901760, %v8962_v36  ;;  %v2075_v15 = vmul.f32 %v2043_v54, %v8866_v43 }
 0x25e   : > { %v8970_v37 = vsub.f32 %v8937_v30, %v11709_v40  ;;  %v8976_v51 = vsub.f32 %v2072_v44, %v4322_v45  ;;  %6733 = vmatmul.mubr.msk.bf16.gmra.mrb[48].mxu0 %vm1166_vm2, %v8017_v63  ;;  %v1367_v40 = vpop.f32.mrb[9].mxu1  ;;  %v8986_v49 = vsub.f32 %v8958_v21, %v11403_v20  ;;  %v4278_v46 = vand.u32 4294901760, %v1392_v48 }
 0x25f   : > { %v11713_v44 = vand.u32 4294901760, %v8864_v47  ;;  %v1369_v3 = vpop.f32.mrb[10].mxu1  ;;  %4093 = vmatprep.mubr.bf16.mxu0 %v11682_v58  ;;  %v8998_v32 = vsub.f32 %v8962_v36, %v11715_v33  ;;  %v11716_v20 = vand.u32 4294901760, %v8965_v41  ;;  %v4326_v27 = vand.u32 4294901760, %v2074_v50 }
 0x260   : > { %11710 = vst [vmem:[#allocation44_spill] sm:$0xff] %v8976_v51  ;;  %11711 = vst [vmem:[#allocation45_spill] sm:$0xff] %v8986_v49  ;;  %v1371_v10 = vpop.f32.mrb[11].mxu1  ;;  %v1393_v33 = vmul.f32 %v1361_v34, %v8855_v1  ;;  %v11720_v25 = vand.u32 4294901760, %v8976_v51  ;;  %v1394_v47 = vmul.f32 %v1365_v2, %v8317_v24  ;;  %v1395_v24 = vmul.f32 %v1367_v40, %v8841_v39 }
 0x261   : > { %v8992_v61 = vpack.c.bf16 %v11713_v44, %v11712_v52  ;;  %v9004_v60 = vsub.f32 %v8965_v41, %v11716_v20  ;;  %v9007_v52 = vpack.c.bf16 %v4278_v46, %v4274_v12  ;;  %v9009_v44 = vsub.f32 %v1392_v48, %v4278_v46  ;;  %v2047_v5 = vpop.f32.mrb[16].mxu0 }
 0x262   : > { %v9017_v20 = vsub.f32 %v8976_v51, %v11720_v25  ;;  %v9020_v63 = vpack.c.bf16 %v4326_v27, %v4322_v45  ;;  %v2049_v48 = vpop.f32.mrb[17].mxu0  ;;  %6707 = vmatmul.mubr.msk.bf16.gmra.mrb[44].mxu1 %vm1166_vm2, %v8102_v22  ;;  %v9028_v46 = vsub.f32 %v2074_v50, %v4326_v27  ;;  %v4276_v6 = vand.u32 4294901760, %v1393_v33 }
 0x263   : > { %11714 = vst [vmem:[#allocation46_spill] sm:$0xff] %v8992_v61  ;;  %11717 = vst [vmem:[#allocation47_spill] sm:$0xff] %v9004_v60  ;;  %6788 = vmatprep.subr.bf16.mxu0 %v8992_v61  ;;  %v11423_v12 = vand.u32 4294901760, %v9009_v44  ;;  %v2051_v25 = vpop.f32.mrb[18].mxu0  ;;  %3606 = vmatprep.mubr.bf16.mxu1 %v11682_v58  ;;  %v4324_v45 = vand.u32 4294901760, %v2075_v15  ;;  %v4282_v19 = vand.u32 4294901760, %v1394_v47 }
 0x264   : > { %11718 = vst [vmem:[#allocation48_spill] sm:$0xff] %v9007_v52  ;;  %11719 = vst [vmem:[#allocation49_spill] sm:$0xff] %v9009_v44  ;;  %6790 = vmatpush1.bf16.msra.mxu0 %v8891_v16  ;;  %v2053_v16 = vpop.f32.mrb[19].mxu0  ;;  %v11426_v50 = vand.u32 4294901760, %v9028_v46  ;;  %v9043_v34 = vsub.f32 %v1393_v33, %v4276_v6  ;;  %v2077_v33 = vmul.f32 %v2049_v48, %v8859_v23  ;;  %v4280_v39 = vand.u32 4294901760, %v1395_v24 }
 0x265   : > { %11721 = vst [vmem:[#allocation50_spill] sm:$0xff] %v9020_v63  ;;  %11722 = vst [vmem:[#allocation51_spill] sm:$0xff] %v9028_v46  ;;  %v2076_v63 = vmul.f32 %v2047_v5, %v8324_v62  ;;  %v9038_v61 = vsub.f32 %v9009_v44, %v11423_v12  ;;  %v9056_v27 = vsub.f32 %v2075_v15, %v4324_v45  ;;  %v11729_v40 = vand.u32 4294901760, %v8958_v21 }
 0x266   : > { %11723 = vst [vmem:[#allocation52_spill] sm:$0xff] %v9043_v34  ;;  %6734 = vmatmul.mubr.msk.bf16.gmra.mrb[52].mxu0 %vm1166_vm2, %v8102_v22  ;;  %v9052_v2 = vsub.f32 %v9028_v46, %v11426_v50  ;;  %v9058_v12 = vsub.f32 %v1394_v47, %v4282_v19  ;;  %v4328_v22 = vand.u32 4294901760, %v2077_v33  ;;  %v1396_v62 = vmul.f32 %v1369_v3, %v8333_v28 }
 0x267   : > { %v4330_v54 = vand.u32 4294901760, %v2076_v63  ;;  %11724 = vst [vmem:[#allocation53_spill] sm:$0xff] %v9056_v27  ;;  %v2078_v35 = vmul.f32 %v2051_v25, %v8341_v31  ;;  %v9068_v15 = vsub.f32 %v1395_v24, %v4280_v39  ;;  %v9076_v28 = vpack.c.bf16 %v4276_v6, %v11729_v40 }
 0x268   : > { %11725 = vst [vmem:[#allocation54_spill] sm:$0xff] %v9058_v12  ;;  %v11428_v5 = vand.u32 4294901760, %v9058_v12  ;;  %v4286_v47 = vand.u32 4294901760, %v1396_v62  ;;  %v1397_v25 = vmul.f32 %v1371_v10, %v8855_v1  ;;  %v11731_v6 = vpack.c.bf16 %v8846_v14, %v8844_v38 }
 0x269   : > { %v9060_v56 = vsub.f32 %v2076_v63, %v4330_v54  ;;  %11727 = vst [vmem:[#allocation56_spill] sm:$0xff] %v9068_v15  ;;  %v9072_v63 = vsub.f32 %v2077_v33, %v4328_v22  ;;  %v4334_v48 = vand.u32 4294901760, %v2078_v35  ;;  %11730 = vst [vmem:[#allocation58_spill] sm:$0xff] %v9076_v28  ;;  %v11431_v3 = vand.u32 4294901760, %v9068_v15  ;;  %6792 = vmatprep.subr.bf16.mxu0 %v9076_v28 }
 0x26a   : > { %6717 = vmatmul.mubr.msk.bf16.vlgmr.msra.gmra.mrb[48].mxu1 %vm1166_vm2, %v8027_v4  ;;  %v4466_v31 = vsub.f32 %v9058_v12, %v11428_v5  ;;  %v9094_v21 = vpack.c.bf16 %v4286_v47, %v4282_v19  ;;  %v9096_v24 = vsub.f32 %v1396_v62, %v4286_v47  ;;  %v4284_v10 = vand.u32 4294901760, %v1397_v25  ;;  %6794 = vmatpush1.bf16.msra.mxu0 %v9007_v52 }
 0x26b   : > { %11726 = vst [vmem:[#allocation55_spill] sm:$0xff] %v9060_v56  ;;  %v11427_v23 = vand.u32 4294901760, %v9060_v56  ;;  %11728 = vst [vmem:[#allocation57_spill] sm:$0xff] %v9072_v63  ;;  %3638 = vmatpush1.bf16.msra.mxu1 %v8835_v17  ;;  %3616 = vmatprep.mubr.bf16.mxu1 %v11682_v58  ;;  %v9098_v33 = vpack.c.bf16 %v4334_v48, %v4330_v54  ;;  %v9102_v5 = vsub.f32 %v2078_v35, %v4334_v48 }
 0x26c   : > { %3700 = vmatprep.subr.bf16.mxu1 %v11731_v6  ;;  %11732 = vst [vmem:[#allocation59_spill] sm:$0xff] %v9094_v21  ;;  %11733 = vst [vmem:[#allocation60_spill] sm:$0xff] %v9096_v24  ;;  %v4467_v40 = vand.u32 4294901760, %v4466_v31  ;;  %v11430_v38 = vand.u32 4294901760, %v9096_v24  ;;  %v2079_v14 = vmul.f32 %v2053_v16, %v8866_v43  ;;  %v11736_v1 = vand.u32 4294901760, %v8883_v53 }
 0x26d   : > { %v9086_v4 = vsub.f32 %v9060_v56, %v11427_v23  ;;  %11734 = vst [vmem:[#allocation61_spill] sm:$0xff] %v9098_v33  ;;  %11735 = vst [vmem:[#allocation62_spill] sm:$0xff] %v9102_v5  ;;  %v11737_v54 = vand.u32 4294901760, %v8923_v57  ;;  %v11429_v47 = vand.u32 4294901760, %v9102_v5  ;;  %v9118_v48 = vsub.f32 %v1397_v25, %v4284_v10 }
 0x26e   : > { %v9120_v31 = vpack.c.bf16 %v4284_v10, %v4280_v39  ;;  %v4332_v43 = vand.u32 4294901760, %v2079_v14  ;;  %v11741_v53 = vand.u32 4294901760, %v8965_v41  ;;  %v11743_v57 = vand.u32 4294901760, %v8880_v55 }
 0x26f   : > { %v4611_v23 = vand.u32 4294901760, %v9086_v4  ;;  %v9113_v62 = vpack.c.bf16 %v11737_v54, %v11736_v1  ;;  %11739 = vst [vmem:[#allocation64_spill] sm:$0xff] %v9118_v48  ;;  %v4478_v4 = vsub.f32 %v9096_v24, %v11430_v38  ;;  %v4622_v25 = vsub.f32 %v9102_v5, %v11429_v47 }
 0x270   : > { %11740 = vst [vmem:[#allocation65_spill] sm:$0xff] %v9120_v31  ;;  %v9127_v16 = vpack.c.bf16 %v4324_v45, %v11741_v53  ;;  %v4412_v6 = vsub.f32 %v8880_v55, %v11743_v57  ;;  %v4471_v39 = vand.u32 4294901760, %v9118_v48  ;;  %6796 = vmatprep.subr.bf16.mxu0 %v9120_v31  ;;  %v11744_v10 = vand.u32 4294901760, %v8902_v8 }
 0x271   : > { %11738 = vst [vmem:[#allocation63_spill] sm:$0xff] %v9113_v62  ;;  %v11745_v45 = vand.u32 4294901760, %v8907_v59  ;;  %v11746_v1 = vand.u32 4294901760, %v8931_v29  ;;  %v4479_v53 = vand.u32 4294901760, %v4478_v4  ;;  %v9148_v57 = vsub.f32 %v2079_v14, %v4332_v43  ;;  %6798 = vmatpush1.bf16.msra.mxu0 %v9094_v21 }
 0x272   : > { %11742 = vst [vmem:[#allocation66_spill] sm:$0xff] %v9127_v16  ;;  %6718 = vmatmul.mubr.msk.bf16.gmra.mrb[52].mxu1 %vm1166_vm2, %v8115_v26  ;;  %v4424_v41 = vsub.f32 %v8902_v8, %v11744_v10  ;;  %v9152_v35 = vpack.c.bf16 %v4332_v43, %v4328_v22  ;;  %v4413_v26 = vand.u32 4294901760, %v4412_v6  ;;  %v4623_v19 = vand.u32 4294901760, %v4622_v25 }
 0x273   : > { %v9146_v54 = vpack.c.bf16 %v11746_v1, %v11745_v45  ;;  %11748 = vst [vmem:[#allocation68_spill] sm:$0xff] %v9148_v57  ;;  %3626 = vmatprep.mubr.bf16.mxu1 %v11682_v58  ;;  %v11750_v10 = vand.u32 4294901760, %v8986_v49  ;;  %v11751_v29 = vand.u32 4294901760, %v9043_v34  ;;  %v4615_v14 = vand.u32 4294901760, %v9148_v57 }
 0x274   : > { %11749 = vst [vmem:[#allocation69_spill] sm:$0xff] %v9152_v35  ;;  %v4425_v47 = vand.u32 4294901760, %v4424_v41  ;;  %v11752_v4 = vand.u32 4294901760, %v8998_v32  ;;  %v11753_v1 = vand.u32 4294901760, %v9038_v61  ;;  %v4460_v22 = vsub.f32 %v9068_v15, %v11431_v3 }
 0x275   : > { %11747 = vst [vmem:[#allocation67_spill] sm:$0xff] %v9146_v54  ;;  %v4436_v59 = vsub.f32 %v8986_v49, %v11750_v10  ;;  %v4448_v45 = vsub.f32 %v9043_v34, %v11751_v29  ;;  %v4472_v43 = vsub.f32 %v9118_v48, %v4471_v39  ;;  %v9173_v10 = vpack.c.bf16 %v4479_v53, %v4467_v40 }
 0x276   : > { %v9165_v38 = vpack.c.bf16 %v11753_v1, %v11752_v4  ;;  %v9171_v6 = vpack.c.bf16 %v4425_v47, %v4413_v26  ;;  %v4461_v29 = vand.u32 4294901760, %v4460_v22  ;;  %v11757_v32 = vand.u32 4294901760, %v8919_v0 }
 0x277   : > { %v4437_v25 = vand.u32 4294901760, %v4436_v59  ;;  %v4449_v41 = vand.u32 4294901760, %v4448_v45  ;;  %11756 = vst [vmem:[#allocation72_spill] sm:$0xff] %v9173_v10  ;;  %v4473_v17 = vand.u32 4294901760, %v4472_v43  ;;  %v11758_v4 = vand.u32 4294901760, %v8955_v42 }
 0x278   : > { %11754 = vst [vmem:[#allocation70_spill] sm:$0xff] %v9165_v38  ;;  %11755 = vst [vmem:[#allocation71_spill] sm:$0xff] %v9171_v6  ;;  %v4556_v61 = vsub.f32 %v8919_v0, %v11757_v32  ;;  %v11760_v3 = vand.u32 4294901760, %v8943_v9  ;;  %v11761_v47 = vand.u32 4294901760, %v8970_v37  ;;  %v11763_v40 = vand.u32 4294901760, %v9004_v60 }
 0x279   : > { %v4568_v1 = vsub.f32 %v8955_v42, %v11758_v4  ;;  %v9181_v50 = vpack.c.bf16 %v4449_v41, %v4437_v25  ;;  %v11764_v59 = vand.u32 4294901760, %v9056_v27  ;;  %v9195_v22 = vpack.c.bf16 %v4473_v17, %v4461_v29  ;;  %v4250_v37 = vld [vmem:[%s11365_s6] sm:$0x7] }
 0x27a   : > { %v9187_v26 = vpack.c.bf16 %v11761_v47, %v11760_v3  ;;  %v4580_v53 = vsub.f32 %v9004_v60, %v11763_v40  ;;  %v4557_v43 = vand.u32 4294901760, %v4556_v61  ;;  %v11766_v25 = vand.u32 4294901760, %v9017_v20  ;;  %6719 = vmatmul.mubr.msk.bf16.gmra.mrb[56].mxu1 %vm1166_vm2, %v8133_v13  ;;  %4253 = vperm.xlu1 %7723, %v4250_v37  }
 0x27b   : > { %11759 = vst [vmem:[#allocation73_spill] sm:$0xff] %v9181_v50  ;;  %v4592_v45 = vsub.f32 %v9056_v27, %v11764_v59  ;;  %11765 = vst [vmem:[#allocation75_spill] sm:$0xff] %v9195_v22  ;;  %v4569_v32 = vand.u32 4294901760, %v4568_v1  ;;  %v11767_v9 = vand.u32 4294901760, %v9052_v2  ;;  %v11769_v17 = vand.u32 4294901760, %v9072_v63  ;;  %3669 = vmatprep.mubr.bf16.mxu1 %v11682_v58 }
 0x27c   : > { %11762 = vst [vmem:[#allocation74_spill] sm:$0xff] %v9187_v26  ;;  %v4581_v3 = vand.u32 4294901760, %v4580_v53  ;;  %v4616_v61 = vsub.f32 %v9148_v57, %v4615_v14  ;;  %v9215_v2 = vpack.c.bf16 %v4623_v19, %v4611_v23  ;;  %v11777_v37 = vand.u32 4294901760, %v8870_v11 }
 0x27d   : > { %v9201_v41 = vpack.c.bf16 %v11767_v9, %v11766_v25  ;;  %v4593_v4 = vand.u32 4294901760, %v4592_v45  ;;  %v4604_v29 = vsub.f32 %v9072_v63, %v11769_v17  ;;  %v9213_v20 = vpack.c.bf16 %v4569_v32, %v4557_v43 }
 0x27e   : > { %11771 = vst [vmem:[#allocation78_spill] sm:$0xff] %v9215_v2  ;;  %v4617_v40 = vand.u32 4294901760, %v4616_v61  ;;  %v11774_v32 = vand.u32 4294901760, %v8880_v55  ;;  %v11775_v25 = vand.u32 4294901760, %v8902_v8  ;;  %v11780_v17 = vand.u32 4294901760, %v8986_v49 }
 0x27f   : > { %11768 = vst [vmem:[#allocation76_spill] sm:$0xff] %v9201_v41  ;;  %11770 = vst [vmem:[#allocation77_spill] sm:$0xff] %v9213_v20  ;;  %v9219_v1 = vpack.c.bf16 %v4593_v4, %v4581_v3  ;;  %v4605_v47 = vand.u32 4294901760, %v4604_v29  ;;  %v11778_v3 = vand.u32 4294901760, %v8893_v18  ;;  %v11781_v29 = vand.u32 4294901760, %v9043_v34 }
 0x280   : > { %v9237_v9 = vpack.c.bf16 %v11775_v25, %v11774_v32  ;;  %v11786_v32 = vand.u32 4294901760, %v9068_v15  ;;  %v11788_v23 = vand.u32 4294901760, %v9058_v12  ;;  %v11791_v45 = vand.u32 4294901760, %v8919_v0 }
 0x281   : > { %11772 = vst [vmem:[#allocation79_spill] sm:$0xff] %v9219_v1  ;;  %v9231_v43 = vpack.c.bf16 %v4617_v40, %v4605_v47  ;;  %v9243_v4 = vpack.c.bf16 %v11778_v3, %v11777_v37  ;;  %v9249_v61 = vpack.c.bf16 %v11781_v29, %v11780_v17  ;;  %v11783_v47 = vand.u32 4294901760, %v8962_v36 }
 0x282   : > { %11776 = vst [vmem:[#allocation81_spill] sm:$0xff] %v9237_v9  ;;  %v11784_v40 = vand.u32 4294901760, %v9009_v44  ;;  %v9259_v25 = vpack.c.bf16 %v4471_v39, %v11786_v32  ;;  %v11789_v37 = vand.u32 4294901760, %v9096_v24  ;;  %v11792_v17 = vand.u32 4294901760, %v8955_v42 }
 0x283   : > { %11773 = vst [vmem:[#allocation80_spill] sm:$0xff] %v9231_v43  ;;  %11779 = vst [vmem:[#allocation82_spill] sm:$0xff] %v9243_v4  ;;  %v11794_v59 = vand.u32 4294901760, %v8909_v7  ;;  %v11797_v39 = vand.u32 4294901760, %v9004_v60  ;;  %v11798_v32 = vand.u32 4294901760, %v9056_v27  ;;  %v11821_v4 = vld [vmem:[#allocation11_spill] sm:$0xff] }
 0x284   : > { %11782 = vst [vmem:[#allocation83_spill] sm:$0xff] %v9249_v61  ;;  %v9255_v19 = vpack.c.bf16 %v11784_v40, %v11783_v47  ;;  %11787 = vst [vmem:[#allocation85_spill] sm:$0xff] %v9259_v25  ;;  %v9265_v3 = vpack.c.bf16 %v11789_v37, %v11788_v23  ;;  %v9271_v29 = vpack.c.bf16 %v11792_v17, %v11791_v45  ;;  %v11795_v47 = vand.u32 4294901760, %v8937_v30  ;;  %v11820_v61 = vld [vmem:[#allocation9_spill] sm:$0xff] }
 0x285   : > { %v9283_v53 = vpack.c.bf16 %v11798_v32, %v11797_v39  ;;  %v11800_v23 = vand.u32 4294901760, %v8976_v51  ;;  %v11801_v37 = vand.u32 4294901760, %v9028_v46  ;;  %v11803_v45 = vand.u32 4294901760, %v9072_v63  ;;  %v11810_v39 = vld [vmem:[#allocation3_spill] sm:$0xff]  ;;  %v11811_v32 = vld [vmem:[#allocation46_spill] sm:$0xff]  ;;  %v11822_v51 = vld [vmem:[#allocation16_spill] sm:$0xff] }
 0x286   : > { %11785 = vst [vmem:[#allocation84_spill] sm:$0xff] %v9255_v19  ;;  %11790 = vst [vmem:[#allocation86_spill] sm:$0xff] %v9265_v3  ;;  %v9277_v40 = vpack.c.bf16 %v11795_v47, %v11794_v59  ;;  %v11806_v3 = vld [vmem:[#allocation34_spill] sm:$0xff]  ;;  %v11807_v47 = vand.u32 4294901760, %v9060_v56  ;;  %6720 = vmatmul.mubr.msk.bf16.vlgmr.msra.gmra.mrb[48].mxu1 %vm1166_vm2, %v11810_v39 }
 0x287   : > { %11793 = vst [vmem:[#allocation87_spill] sm:$0xff] %v9271_v29  ;;  %11799 = vst [vmem:[#allocation89_spill] sm:$0xff] %v9283_v53  ;;  %v9289_v13 = vpack.c.bf16 %v11801_v37, %v11800_v23  ;;  %v9293_v17 = vpack.c.bf16 %v4615_v14, %v11803_v45  ;;  %v11805_v29 = vld [vmem:[#allocation32_spill] sm:$0xff]  ;;  %3679 = vmatprep.mubr.bf16.mxu1 %v11682_v58  ;;  %v11812_v23 = vld [vmem:[#allocation10_spill] sm:$0xff] }
 0x288   : > { %11796 = vst [vmem:[#allocation88_spill] sm:$0xff] %v9277_v40  ;;  %v3572_v59 = vpack.c.bf16 %v11806_v3, %v11805_v29  ;;  %v11808_v40 = vand.u32 4294901760, %v9102_v5  ;;  %v11813_v14 = vld [vmem:[#allocation6_spill] sm:$0xff]  ;;  %v11814_v3 = vld [vmem:[#allocation29_spill] sm:$0xff]  ;;  %v11815_v37 = vld [vmem:[#allocation27_spill] sm:$0xff] }
 0x289   : > { %11802 = vst [vmem:[#allocation90_spill] sm:$0xff] %v9289_v13  ;;  %11804 = vst [vmem:[#allocation91_spill] sm:$0xff] %v9293_v17  ;;  %v1493_v29 = vrot.slane %v11814_v3, %v11813_v14  ;;  %v11816_v45 = vld [vmem:[#allocation30_spill] sm:$0xff]  ;;  %v11818_v17 = vld [vmem:[#allocation8_spill] sm:$0xff] }
 0x28a   : > { %v9301_v25 = vpack.c.bf16 %v11808_v40, %v11807_v47  ;;  %3701 = vmatpush1.bf16.msra.mxu1 %v3572_v59  ;;  %v1469_v40 = vrot.slane %v11815_v37, %v11813_v14  ;;  %v1481_v47 = vrot.slane %v11816_v45, %v11813_v14  ;;  %v11817_v59 = vld [vmem:[#allocation28_spill] sm:$0xff]  ;;  %v11819_v13 = vld [vmem:[#allocation15_spill] sm:$0xff] }
 0x28b   : > { %7108 = vmatprep.subr.bf16.mxu1 %v11811_v32  ;;  %vm1495_vm5 = vcmp.eq.f32.partialorder %v11818_v17, %v1493_v29  ;;  %v2516_v53 = vrot.slane %v11814_v3, %v11819_v13  ;;  %v2492_v19 = vrot.slane %v11815_v37, %v11819_v13  ;;  %vm1497_vm7 = vcmp.eq.f32.partialorder %v11820_v61, %v1493_v29 }
 0x28c   : > { %11809 = vst [vmem:[#allocation32_spill] sm:$0xff] %v9301_v25  ;;  %v1505_v25 = vrot.slane %v11817_v59, %v11813_v14  ;;  %vm1471_vm6 = vcmp.eq.f32.partialorder %v11818_v17, %v1469_v40  ;;  %v2504_v14 = vrot.slane %v11816_v45, %v11819_v13  ;;  %v2528_v56 = vrot.slane %v11817_v59, %v11819_v13 }
 0x28d   : > { %v1483_v9 = vsel %vm1471_vm6, %v1481_v47, 0.0  ;;  %vm2518_vm8 = vcmp.eq.f32.partialorder %v11818_v17, %v2516_v53  ;;  %vm1473_vm9 = vcmp.eq.f32.partialorder %v11820_v61, %v1469_v40  ;;  %vm2494_vm10 = vcmp.eq.f32.partialorder %v11818_v17, %v2492_v19 }
 0x28e   : > { %6721 = vmatmul.mubr.msk.bf16.gmra.mrb[52].mxu1 %vm1166_vm2, %v11812_v23  ;;  %v1507_v32 = vsel %vm1495_vm5, %v1505_v25, 0.0  ;;  %v1485_v5 = vsel %vm1473_vm9, %v1481_v47, 0.0  ;;  %v1509_v63 = vsel %vm1497_vm7, %v1505_v25, 0.0  ;;  %v2506_v27 = vsel %vm2494_vm10, %v2504_v14, 0.0  ;;  %v11823_v25 = vld [vmem:[#allocation18_spill] sm:$0xff] }
 0x28f   : > { %3689 = vmatprep.mubr.bf16.mxu1 %v11682_v58  ;;  %v9334_v57 = vadd.f32 %v1507_v32, %v1483_v9  ;;  %v2530_v7 = vsel %vm2518_vm8, %v2528_v56, 0.0  ;;  %v9341_v0 = vadd.f32 %v1509_v63, %v1485_v5  ;;  %vm2520_vm11 = vcmp.eq.f32.partialorder %v11820_v61, %v2516_v53  ;;  %v11825_v5 = vld [vmem:[#allocation17_spill] sm:$0xff] }
 0x290   : > { %vm2496_vm12 = vcmp.eq.f32.partialorder %v11820_v61, %v2492_v19  ;;  %v9347_v42 = vadd.f32 %v2530_v7, %v2506_v27  ;;  %v2532_v48 = vsel %vm2520_vm11, %v2528_v56, 0.0  ;;  %v11827_v19 = vld [vmem:[#allocation35_spill] sm:$0xff]  ;;  %vm4261_vm9 = vcmask 392192  }
 0x295   : > { %v1686_v29 = vpop.f32.mrb[12].mxu1 }
 0x296   : > { %6722 = vmatmul.mubr.msk.bf16.gmra.mrb[56].mxu1 %vm1166_vm2, %v11821_v4  ;;  %v1727_v46 = vmul.f32 %v1686_v29, %v11822_v51  ;;  %v1688_v60 = vpop.f32.mrb[13].mxu1 }
 0x297   : > { %3732 = vmatprep.mubr.bf16.mxu1 %v11682_v58  ;;  %v9339_v13 = vmul.f32 %v1688_v60, %v9334_v57  ;;  %v1690_v30 = vpop.f32.mrb[14].mxu1  ;;  %v2508_v60 = vsel %vm2496_vm12, %v2504_v14, 0.0 }
 0x298   : > { %v4290_v40 = vand.u32 4294901760, %v1727_v46  ;;  %v1729_v47 = vmul.f32 %v1690_v30, %v11823_v25  ;;  %v1692_v9 = vpop.f32.mrb[15].mxu1  ;;  %v9381_v44 = vadd.f32 %v2532_v48, %v2508_v60 }
 0x299   : > { %v2709_v32 = vpop.f32.mrb[20].mxu0  ;;  %v11448_v29 = vand.u32 4294901760, %v9339_v13  ;;  %v9350_v12 = vmul.f32 %v1692_v9, %v9341_v0 }
 0x29a   : > { %v9352_v24 = vsub.f32 %v1727_v46, %v4290_v40  ;;  %v2750_v63 = vmul.f32 %v2709_v32, %v11825_v5  ;;  %v2711_v53 = vpop.f32.mrb[21].mxu0  ;;  %v4294_v15 = vand.u32 4294901760, %v1729_v47 }
 0x29b   : > { %v9360_v30 = vsub.f32 %v9339_v13, %v11448_v29  ;;  %v9363_v7 = vmul.f32 %v2711_v53, %v9347_v42  ;;  %v2713_v27 = vpop.f32.mrb[22].mxu0  ;;  %v11453_v46 = vand.u32 4294901760, %v9350_v12  ;;  %v11830_v29 = vld [vmem:[#allocation19_spill] sm:$0xff]  ;;  %v11846_v10 = vand.u32 4294901760, %v9350_v12 }
 0x29c   : > { %11824 = vst [vmem:[#allocation34_spill] sm:$0xff] %v9352_v24  ;;  %v4362_v14 = vand.u32 4294901760, %v2750_v63  ;;  %v9369_v9 = vpack.c.bf16 %v4294_v15, %v4290_v40  ;;  %v2715_v32 = vpop.f32.mrb[23].mxu0  ;;  %v2752_v36 = vmul.f32 %v2713_v27, %v11830_v29  ;;  %v11832_v40 = vand.u32 4294901760, %v9352_v24 }
 0x29d   : > { %11826 = vst [vmem:[#allocation3_spill] sm:$0xff] %v9360_v30  ;;  %v1696_v56 = vpop.f32.mrb[16].mxu1  ;;  %v11834_v49 = vand.u32 4294901760, %v9363_v7  ;;  %v9399_v60 = vmul.f32 %v2715_v32, %v9381_v44 }
 0x29e   : > { %6723 = vmatmul.mubr.msk.bf16.vlgmr.msra.gmra.mrb[48].mxu1 %vm1166_vm2, %v11810_v39  ;;  %11828 = vst [vmem:[#allocation10_spill] sm:$0xff] %v9369_v9  ;;  %v9371_v39 = vsub.f32 %v1729_v47, %v4294_v15  ;;  %v9386_v15 = vsub.f32 %v9352_v24, %v11832_v40  ;;  %v9388_v47 = vsub.f32 %v2750_v63, %v4362_v14  ;;  %v1698_v53 = vpop.f32.mrb[17].mxu1  ;;  %v4366_v48 = vand.u32 4294901760, %v2752_v36 }
 0x29f   : > { %7110 = vmatpush1.bf16.msra.mxu1 %v11827_v19  ;;  %3742 = vmatprep.mubr.bf16.mxu1 %v11682_v58  ;;  %v9379_v19 = vsub.f32 %v9350_v12, %v11453_v46  ;;  %v9396_v46 = vsub.f32 %v9363_v7, %v11834_v49  ;;  %v1700_v40 = vpop.f32.mrb[18].mxu1  ;;  %v1731_v27 = vmul.f32 %v1696_v56, %v11822_v51  ;;  %v11461_v63 = vand.u32 4294901760, %v9399_v60 }
 0x2a0   : > { %11829 = vst [vmem:[#allocation6_spill] sm:$0xff] %v9371_v39  ;;  %7112 = vmatprep.subr.bf16.mxu1 %v9076_v28  ;;  %11833 = vst [vmem:[#allocation11_spill] sm:$0xff] %v9388_v47  ;;  %v1702_v11 = vpop.f32.mrb[19].mxu1  ;;  %v11836_v49 = vand.u32 4294901760, %v9371_v39  ;;  %v9412_v32 = vpack.c.bf16 %v4366_v48, %v4362_v14  ;;  %v11839_v34 = vand.u32 4294901760, %v9388_v47 }
 0x2a1   : > { %11831 = vst [vmem:[#allocation15_spill] sm:$0xff] %v9379_v19  ;;  %11835 = vst [vmem:[#allocation16_spill] sm:$0xff] %v9396_v46  ;;  %v2719_v55 = vpop.f32.mrb[24].mxu0 }
 0x2a2   : > { %v9410_v18 = vsub.f32 %v9371_v39, %v11836_v49  ;;  %11837 = vst [vmem:[#allocation18_spill] sm:$0xff] %v9412_v32  ;;  %v9421_v56 = vsub.f32 %v9388_v47, %v11839_v34  ;;  %v2754_v8 = vmul.f32 %v2719_v55, %v11825_v5  ;;  %v2721_v2 = vpop.f32.mrb[25].mxu0  ;;  %v9435_v34 = vmul.f32 %v1698_v53, %v9334_v57 }
 0x2a3   : > { %7114 = vmatpush1.bf16.msra.mxu1 %v9007_v52  ;;  %v9414_v52 = vsub.f32 %v2752_v36, %v4366_v48  ;;  %v9432_v48 = vsub.f32 %v9399_v60, %v11461_v63  ;;  %v2723_v49 = vpop.f32.mrb[26].mxu0  ;;  %v9443_v14 = vmul.f32 %v2721_v2, %v9347_v42 }
 0x2a4   : > { %7116 = vmatprep.subr.bf16.mxu1 %v9120_v31  ;;  %v4298_v31 = vand.u32 4294901760, %v1731_v27  ;;  %v4370_v28 = vand.u32 4294901760, %v2754_v8  ;;  %v2725_v36 = vpop.f32.mrb[27].mxu0  ;;  %v2756_v1 = vmul.f32 %v2723_v49, %v11830_v29  ;;  %v11862_v45 = vand.u32 4294901760, %v9435_v34 }
 0x2a5   : > { %11838 = vst [vmem:[#allocation17_spill] sm:$0xff] %v9414_v52  ;;  %11840 = vst [vmem:[#allocation19_spill] sm:$0xff] %v9432_v48  ;;  %v11842_v43 = vand.u32 4294901760, %v9414_v52  ;;  %v1706_v41 = vpop.f32.mrb[20].mxu1  ;;  %v11849_v22 = vand.u32 4294901760, %v9443_v14 }
 0x2a6   : > { %6724 = vmatmul.mubr.msk.bf16.gmra.mrb[52].mxu1 %vm1166_vm2, %v11812_v23  ;;  %v9440_v23 = vsub.f32 %v1731_v27, %v4298_v31  ;;  %v9454_v55 = vsub.f32 %v2754_v8, %v4370_v28  ;;  %v1708_v26 = vpop.f32.mrb[21].mxu1  ;;  %v4374_v38 = vand.u32 4294901760, %v2756_v1 }
 0x2a7   : > { %7118 = vmatpush1.bf16.msra.mxu1 %v9094_v21  ;;  %3752 = vmatprep.mubr.bf16.mxu1 %v11682_v58  ;;  %v9449_v53 = vsub.f32 %v9414_v52, %v11842_v43  ;;  %v11463_v21 = vand.u32 4294901760, %v9435_v34  ;;  %v1733_v58 = vmul.f32 %v1700_v40, %v11823_v25  ;;  %v11845_v40 = vand.u32 4294901760, %v9339_v13  ;;  %v1710_v8 = vpop.f32.mrb[22].mxu1 }
 0x2a8   : > { %11841 = vst [vmem:[#allocation92_spill] sm:$0xff] %v9440_v23  ;;  %11843 = vst [vmem:[#allocation93_spill] sm:$0xff] %v9454_v55  ;;  %v11848_v2 = vand.u32 4294901760, %v9440_v23  ;;  %v1712_v50 = vpop.f32.mrb[23].mxu1  ;;  %v9503_v63 = vsub.f32 %v2756_v1, %v4374_v38  ;;  %v1735_v13 = vmul.f32 %v1706_v41, %v11822_v51  ;;  %v1736_v51 = vmul.f32 %v1708_v26, %v9334_v57 }
 0x2a9   : > { %v9462_v43 = vsub.f32 %v9435_v34, %v11463_v21  ;;  %v4302_v20 = vand.u32 4294901760, %v1733_v58  ;;  %v9468_v27 = vpack.c.bf16 %v11846_v10, %v11845_v40  ;;  %v9479_v21 = vsub.f32 %v9443_v14, %v11849_v22  ;;  %v2729_v40 = vpop.f32.mrb[28].mxu0 }
 0x2aa   : > { %v9473_v49 = vsub.f32 %v9440_v23, %v11848_v2  ;;  %v1734_v2 = vmul.f32 %v1702_v11, %v9341_v0  ;;  %v11853_v22 = vand.u32 4294901760, %v9454_v55  ;;  %11855 = vst [vmem:[#allocation100_spill] sm:$0xff] %v9503_v63  ;;  %v4306_v32 = vand.u32 4294901760, %v1735_v13 }
 0x2ab   : > { %11844 = vst [vmem:[#allocation94_spill] sm:$0xff] %v9462_v43  ;;  %11847 = vst [vmem:[#allocation95_spill] sm:$0xff] %v9468_v27  ;;  %v9482_v12 = vpack.c.bf16 %v4302_v20, %v4298_v31  ;;  %v9484_v10 = vsub.f32 %v1733_v58, %v4302_v20  ;;  %6800 = vmatprep.subr.bf16.mxu0 %v9468_v27  ;;  %7120 = vmatprep.subr.bf16.mxu1 %v9468_v27  ;;  %v2731_v20 = vpop.f32.mrb[29].mxu0  ;;  %v4304_v17 = vand.u32 4294901760, %v1736_v51 }
 0x2ac   : > { %11850 = vst [vmem:[#allocation96_spill] sm:$0xff] %v9479_v21  ;;  %v9493_v54 = vsub.f32 %v9454_v55, %v11853_v22  ;;  %v9496_v31 = vpack.c.bf16 %v4374_v38, %v4370_v28  ;;  %6802 = vmatpush1.bf16.msra.mxu0 %v9369_v9  ;;  %7122 = vmatpush1.bf16.msra.mxu1 %v9369_v9  ;;  %v4300_v27 = vand.u32 4294901760, %v1734_v2  ;;  %v2733_v6 = vpop.f32.mrb[30].mxu0  ;;  %v11472_v38 = vand.u32 4294901760, %v9503_v63 }
 0x2ad   : > { %11851 = vst [vmem:[#allocation97_spill] sm:$0xff] %v9482_v12  ;;  %11852 = vst [vmem:[#allocation98_spill] sm:$0xff] %v9484_v10  ;;  %v11468_v11 = vand.u32 4294901760, %v9484_v10  ;;  %v2757_v22 = vmul.f32 %v2725_v36, %v9381_v44  ;;  %v2758_v9 = vmul.f32 %v2729_v40, %v11825_v5  ;;  %v1737_v41 = vmul.f32 %v1710_v8, %v11823_v25 }
 0x2ae   : > { %11854 = vst [vmem:[#allocation99_spill] sm:$0xff] %v9496_v31  ;;  %6725 = vmatmul.mubr.msk.bf16.gmra.mrb[56].mxu1 %vm1166_vm2, %v11821_v4  ;;  %v2735_v31 = vpop.f32.mrb[31].mxu0  ;;  %v9519_v4 = vsub.f32 %v1734_v2, %v4300_v27  ;;  %v9527_v40 = vsub.f32 %v9503_v63, %v11472_v38  ;;  %v9532_v2 = vsub.f32 %v1735_v13, %v4306_v32 }
 0x2af   : > { %v9514_v58 = vsub.f32 %v9484_v10, %v11468_v11  ;;  %v4372_v28 = vand.u32 4294901760, %v2757_v22  ;;  %v4378_v36 = vand.u32 4294901760, %v2758_v9  ;;  %v2759_v11 = vmul.f32 %v2731_v20, %v9347_v42 }
 0x2b0   : > { %11856 = vst [vmem:[#allocation101_spill] sm:$0xff] %v9519_v4  ;;  %11858 = vst [vmem:[#allocation103_spill] sm:$0xff] %v9532_v2  ;;  %v2760_v5 = vmul.f32 %v2733_v6, %v11830_v29  ;;  %v11479_v59 = vand.u32 4294901760, %v9519_v4  ;;  %v11474_v38 = vand.u32 4294901760, %v9532_v2  ;;  %v9542_v20 = vsub.f32 %v1736_v51, %v4304_v17 }
 0x2b1   : > { %v9530_v61 = vsub.f32 %v2757_v22, %v4372_v28  ;;  %v9534_v1 = vsub.f32 %v2758_v9, %v4378_v36  ;;  %v4527_v57 = vand.u32 4294901760, %v9514_v58  ;;  %v4376_v26 = vand.u32 4294901760, %v2759_v11 }
 0x2b2   : > { %11860 = vst [vmem:[#allocation105_spill] sm:$0xff] %v9542_v20  ;;  %v4310_v9 = vand.u32 4294901760, %v1737_v41  ;;  %v4382_v22 = vand.u32 4294901760, %v2760_v5  ;;  %v9548_v58 = vpack.c.bf16 %v4300_v27, %v11862_v45  ;;  %v4538_v6 = vsub.f32 %v9532_v2, %v11474_v38 }
 0x2b3   : > { %11857 = vst [vmem:[#allocation102_spill] sm:$0xff] %v9530_v61  ;;  %11859 = vst [vmem:[#allocation104_spill] sm:$0xff] %v9534_v1  ;;  %v11475_v42 = vand.u32 4294901760, %v9534_v1  ;;  %v9544_v13 = vsub.f32 %v2759_v11, %v4376_v26  ;;  %v1738_v8 = vmul.f32 %v1712_v50, %v9341_v0  ;;  %v11480_v27 = vand.u32 4294901760, %v9542_v20 }
 0x2b4   : > { %11863 = vst [vmem:[#allocation107_spill] sm:$0xff] %v9548_v58  ;;  %v9561_v51 = vpack.c.bf16 %v4310_v9, %v4306_v32  ;;  %v9563_v34 = vsub.f32 %v1737_v41, %v4310_v9  ;;  %v9565_v45 = vpack.c.bf16 %v4382_v22, %v4378_v36  ;;  %6804 = vmatprep.subr.bf16.mxu0 %v9548_v58  ;;  %v11868_v36 = vand.u32 4294901760, %v9363_v7 }
 0x2b5   : > { %11861 = vst [vmem:[#allocation106_spill] sm:$0xff] %v9544_v13  ;;  %v9557_v29 = vsub.f32 %v9534_v1, %v11475_v42  ;;  %7124 = vmatprep.subr.bf16.mxu1 %v9548_v58  ;;  %v9571_v42 = vsub.f32 %v2760_v5, %v4382_v22  ;;  %v4308_v25 = vand.u32 4294901760, %v1738_v8  ;;  %6806 = vmatpush1.bf16.msra.mxu0 %v9482_v12  ;;  %v11869_v41 = vand.u32 4294901760, %v9399_v60 }
 0x2b6   : > { %11864 = vst [vmem:[#allocation108_spill] sm:$0xff] %v9561_v51  ;;  %11865 = vst [vmem:[#allocation109_spill] sm:$0xff] %v9563_v34  ;;  %7126 = vmatpush1.bf16.msra.mxu1 %v9482_v12  ;;  %v11476_v0 = vand.u32 4294901760, %v9563_v34  ;;  %v2761_v32 = vmul.f32 %v2735_v31, %v9381_v44  ;;  %v11873_v7 = vand.u32 4294901760, %v9443_v14  ;;  %v11875_v60 = vand.u32 4294901760, %v9360_v30 }
 0x2b7   : > { %11866 = vst [vmem:[#allocation110_spill] sm:$0xff] %v9565_v45  ;;  %11867 = vst [vmem:[#allocation111_spill] sm:$0xff] %v9571_v42  ;;  %v9583_v9 = vpack.c.bf16 %v11869_v41, %v11868_v36  ;;  %v11477_v5 = vand.u32 4294901760, %v9571_v42  ;;  %v9588_v38 = vsub.f32 %v1738_v8, %v4308_v25  ;;  %v9590_v11 = vpack.c.bf16 %v4308_v25, %v4304_v17 }
 0x2b8   : > { %v4550_v50 = vsub.f32 %v9563_v34, %v11476_v0  ;;  %v4380_v44 = vand.u32 4294901760, %v2761_v32  ;;  %v9597_v31 = vpack.c.bf16 %v4372_v28, %v11873_v7  ;;  %v4484_v36 = vsub.f32 %v9360_v30, %v11875_v60 }
 0x2b9   : > { %11870 = vst [vmem:[#allocation112_spill] sm:$0xff] %v9583_v9  ;;  %11871 = vst [vmem:[#allocation113_spill] sm:$0xff] %v9588_v38  ;;  %v4539_v41 = vand.u32 4294901760, %v4538_v6  ;;  %v11481_v22 = vand.u32 4294901760, %v9588_v38  ;;  %6808 = vmatprep.subr.bf16.mxu0 %v9590_v11  ;;  %7128 = vmatprep.subr.bf16.mxu1 %v9590_v11  ;;  %v11876_v17 = vand.u32 4294901760, %v9379_v19  ;;  %v11877_v8 = vand.u32 4294901760, %v9386_v15 }
 0x2ba   : > { %11872 = vst [vmem:[#allocation114_spill] sm:$0xff] %v9590_v11  ;;  %11874 = vst [vmem:[#allocation115_spill] sm:$0xff] %v9597_v31  ;;  %v11878_v14 = vand.u32 4294901760, %v9410_v18  ;;  %v4551_v7 = vand.u32 4294901760, %v4550_v50  ;;  %v4766_v6 = vsub.f32 %v9571_v42, %v11477_v5  ;;  %v9617_v60 = vsub.f32 %v2761_v32, %v4380_v44  ;;  %6810 = vmatpush1.bf16.msra.mxu0 %v9561_v51  ;;  %v11953_v11 = vld [vmem:[#allocation5_spill] sm:$0xff] }
 0x2bb   : > { %v4496_v25 = vsub.f32 %v9379_v19, %v11876_v17  ;;  %7130 = vmatpush1.bf16.msra.mxu1 %v9561_v51  ;;  %v9621_v0 = vpack.c.bf16 %v4380_v44, %v4376_v26  ;;  %6812 = vmatprep.subr.bf16.mxu0 %v9113_v62  ;;  %v4485_v18 = vand.u32 4294901760, %v4484_v36  ;;  %v11882_v50 = vand.u32 4294901760, %v9462_v43 }
 0x2bc   : > { %v9612_v28 = vpack.c.bf16 %v11878_v14, %v11877_v8  ;;  %11880 = vst [vmem:[#allocation117_spill] sm:$0xff] %v9617_v60  ;;  %7132 = vmatprep.subr.bf16.mxu1 %v9113_v62  ;;  %v4520_v32 = vsub.f32 %v9519_v4, %v11479_v59  ;;  %v11883_v14 = vand.u32 4294901760, %v9473_v49  ;;  %v4532_v44 = vsub.f32 %v9542_v20, %v11480_v27  ;;  %v11887_v59 = vld [vmem:[#allocation40_spill] sm:$0xff] }
 0x2bd   : > { %11881 = vst [vmem:[#allocation118_spill] sm:$0xff] %v9621_v0  ;;  %v4497_v15 = vand.u32 4294901760, %v4496_v25  ;;  %v4508_v17 = vsub.f32 %v9462_v43, %v11882_v50  ;;  %v4544_v36 = vsub.f32 %v9588_v38, %v11481_v22  ;;  %v9644_v62 = vpack.c.bf16 %v4551_v7, %v4539_v41 }
 0x2be   : > { %11879 = vst [vmem:[#allocation116_spill] sm:$0xff] %v9612_v28  ;;  %v9634_v26 = vpack.c.bf16 %v4527_v57, %v11883_v14  ;;  %v4521_v5 = vand.u32 4294901760, %v4520_v32  ;;  %6814 = vmatpush1.bf16.msra.mxu0 %v11887_v59  ;;  %v4533_v49 = vand.u32 4294901760, %v4532_v44  ;;  %v11888_v14 = vand.u32 4294901760, %v9396_v46 }
 0x2bf   : > { %v9642_v25 = vpack.c.bf16 %v4497_v15, %v4485_v18  ;;  %v4509_v50 = vand.u32 4294901760, %v4508_v17  ;;  %11886 = vst [vmem:[#allocation121_spill] sm:$0xff] %v9644_v62  ;;  %7134 = vmatpush1.bf16.msra.mxu1 %v11887_v59  ;;  %v4545_v57 = vand.u32 4294901760, %v4544_v36  ;;  %v11889_v8 = vand.u32 4294901760, %v9432_v48  ;;  %6816 = vmatprep.subr.bf16.mxu0 %v9127_v16 }
 0x2c0   : > { %11884 = vst [vmem:[#allocation119_spill] sm:$0xff] %v9634_v26  ;;  %v4700_v27 = vsub.f32 %v9396_v46, %v11888_v14  ;;  %v4767_v18 = vand.u32 4294901760, %v4766_v6  ;;  %7136 = vmatprep.subr.bf16.mxu1 %v9127_v16  ;;  %v11891_v7 = vand.u32 4294901760, %v9421_v56  ;;  %v11892_v15 = vand.u32 4294901760, %v9449_v53  ;;  %v9676_v56 = vld [vmem:[%s11364_s5] sm:$0x77] }
 0x2c1   : > { %11885 = vst [vmem:[#allocation120_spill] sm:$0xff] %v9642_v25  ;;  %v4712_v22 = vsub.f32 %v9432_v48, %v11889_v8  ;;  %v9656_v41 = vpack.c.bf16 %v4521_v5, %v4509_v50  ;;  %v11894_v32 = vand.u32 4294901760, %v9479_v21  ;;  %v9667_v36 = vpack.c.bf16 %v4545_v57, %v4533_v49  ;;  %11897 = vst [vmem:[#allocation125_spill] sm:$0xff] %v9676_v56 }
 0x2c2   : > { %v9662_v17 = vpack.c.bf16 %v11892_v15, %v11891_v7  ;;  %v4701_v8 = vand.u32 4294901760, %v4700_v27  ;;  %v11896_v14 = vand.u32 4294901760, %v9530_v61  ;;  %v4755_v5 = vand.u32 4294901760, %v9557_v29  ;;  %v11903_v29 = vld [vmem:[#allocation50_spill] sm:$0xff] }
 0x2c3   : > { %11890 = vst [vmem:[#allocation122_spill] sm:$0xff] %v9656_v41  ;;  %v4724_v44 = vsub.f32 %v9479_v21, %v11894_v32  ;;  %11895 = vst [vmem:[#allocation124_spill] sm:$0xff] %v9667_v36  ;;  %v4713_v6 = vand.u32 4294901760, %v4712_v22  ;;  %v11898_v53 = vand.u32 4294901760, %v9493_v54  ;;  %v11899_v50 = vand.u32 4294901760, %v9527_v40  ;;  %6818 = vmatpush1.bf16.msra.mxu0 %v11903_v29  ;;  %7138 = vmatpush1.bf16.msra.mxu1 %v11903_v29 }
 0x2c4   : > { %11893 = vst [vmem:[#allocation123_spill] sm:$0xff] %v9662_v17  ;;  %v4736_v16 = vsub.f32 %v9530_v61, %v11896_v14  ;;  %v11901_v27 = vand.u32 4294901760, %v9544_v13  ;;  %v11902_v49 = vand.u32 4294901760, %v9617_v60  ;;  %v4258_v15 = vcombine.high %v9676_v56, %v9676_v56  ;;  %6820 = vmatprep.subr.bf16.mxu0 %v9152_v35  ;;  %7140 = vmatprep.subr.bf16.mxu1 %v9152_v35  ;;  %v11951_v35 = vld [vmem:[#allocation20_spill] sm:$0xff] }
 0x2c5   : > { %v9682_v7 = vpack.c.bf16 %v11899_v50, %v11898_v53  ;;  %v9694_v54 = vpack.c.bf16 %v4713_v6, %v4701_v8  ;;  %v4725_v40 = vand.u32 4294901760, %v4724_v44  ;;  %v9698_v50 = vpack.c.bf16 %v4767_v18, %v4755_v5 }
 0x2c6   : > { %v4748_v22 = vsub.f32 %v9544_v13, %v11901_v27  ;;  %v4760_v57 = vsub.f32 %v9617_v60, %v11902_v49  ;;  %v4737_v32 = vand.u32 4294901760, %v4736_v16  ;;  %v9702_v49 = vand.u32 4294901760, %v4258_v15 }
 0x2c7   : > { %11900 = vst [vmem:[#allocation126_spill] sm:$0xff] %v9682_v7  ;;  %11904 = vst [vmem:[#allocation127_spill] sm:$0xff] %v9694_v54  ;;  %6822 = vmatpush1.bf16.msra.mxu0 %v9098_v33  ;;  %7142 = vmatpush1.bf16.msra.mxu1 %v9098_v33  ;;  %v11917_v6 = vand.u32 4294901760, %v9519_v4  ;;  %v11920_v8 = vand.u32 4294901760, %v9484_v10  ;;  %v11923_v27 = vand.u32 4294901760, %v9588_v38  ;;  %v11950_v33 = vld [vmem:[#allocation8_spill] sm:$0xff] }
 0x2c8   : > { %v4749_v14 = vand.u32 4294901760, %v4748_v22  ;;  %v4761_v53 = vand.u32 4294901760, %v4760_v57  ;;  %11905 = vst [vmem:[#allocation128_spill] sm:$0xff] %v9698_v50  ;;  %11906 = vst [vmem:[#allocation129_spill] sm:$0xff] %v9702_v49  ;;  %v9704_v29 = vpack.c.bf16 %v4737_v32, %v4725_v40  ;;  %v9719_v5 = vsub.f32 %v4258_v15, %v9702_v49  ;;  %5540 = vmatprep.mubr.f32.mxu1 %v9702_v49 }
 0x2c9   : > { %v11910_v57 = vand.u32 4294901760, %v9360_v30  ;;  %v11911_v40 = vand.u32 4294901760, %v9379_v19  ;;  %v11916_v15 = vand.u32 4294901760, %v9462_v43  ;;  %v11919_v22 = vand.u32 4294901760, %v9440_v23 }
 0x2ca   : > { %11907 = vst [vmem:[#allocation130_spill] sm:$0xff] %v9704_v29  ;;  %v9708_v44 = vpack.c.bf16 %v4761_v53, %v4749_v14  ;;  %11909 = vst [vmem:[#allocation132_spill] sm:$0xff] %v9719_v5  ;;  %v11913_v14 = vand.u32 4294901760, %v9352_v24  ;;  %v11914_v53 = vand.u32 4294901760, %v9371_v39 }
 0x2cb   : > { %v9727_v32 = vpack.c.bf16 %v11911_v40, %v11910_v57  ;;  %v9740_v16 = vpack.c.bf16 %v11917_v6, %v11916_v15  ;;  %v9746_v57 = vpack.c.bf16 %v11920_v8, %v11919_v22  ;;  %v11922_v40 = vand.u32 4294901760, %v9542_v20 }
 0x2cc   : > { %11908 = vst [vmem:[#allocation131_spill] sm:$0xff] %v9708_v44  ;;  %v9734_v18 = vpack.c.bf16 %v11914_v53, %v11913_v14  ;;  %v11925_v53 = vand.u32 4294901760, %v9532_v2  ;;  %v11928_v15 = vand.u32 4294901760, %v9396_v46  ;;  %v11931_v22 = vand.u32 4294901760, %v9388_v47 }
 0x2cd   : > { %11912 = vst [vmem:[#allocation133_spill] sm:$0xff] %v9727_v32  ;;  %11918 = vst [vmem:[#allocation135_spill] sm:$0xff] %v9740_v16  ;;  %v9752_v32 = vpack.c.bf16 %v11923_v27, %v11922_v40  ;;  %v11929_v16 = vand.u32 4294901760, %v9432_v48  ;;  %v11934_v40 = vand.u32 4294901760, %v9479_v21  ;;  %v11935_v14 = vand.u32 4294901760, %v9530_v61  ;;  %v11955_v61 = vld [vmem:[#allocation7_spill] sm:$0xff] }
 0x2ce   : > { %11915 = vst [vmem:[#allocation134_spill] sm:$0xff] %v9734_v18  ;;  %11921 = vst [vmem:[#allocation136_spill] sm:$0xff] %v9746_v57  ;;  %v11926_v18 = vand.u32 4294901760, %v9563_v34  ;;  %v11932_v57 = vand.u32 4294901760, %v9414_v52 }
 0x2cf   : > { %11924 = vst [vmem:[#allocation137_spill] sm:$0xff] %v9752_v32  ;;  %v9765_v8 = vpack.c.bf16 %v11929_v16, %v11928_v15  ;;  %v9777_v32 = vpack.c.bf16 %v11935_v14, %v11934_v40  ;;  %v11940_v16 = vand.u32 4294901760, %v9544_v13  ;;  %v11941_v15 = vand.u32 4294901760, %v9617_v60  ;;  %v11954_v60 = vld [vmem:[#allocation21_spill] sm:$0xff] }
 0x2d0   : > { %v9759_v6 = vpack.c.bf16 %v11926_v18, %v11925_v53  ;;  %v9771_v27 = vpack.c.bf16 %v11932_v57, %v11931_v22  ;;  %v11937_v18 = vand.u32 4294901760, %v9454_v55  ;;  %v11938_v53 = vand.u32 4294901760, %v9503_v63 }
 0x2d1   : > { %11930 = vst [vmem:[#allocation139_spill] sm:$0xff] %v9765_v8  ;;  %11936 = vst [vmem:[#allocation141_spill] sm:$0xff] %v9777_v32  ;;  %v9789_v8 = vpack.c.bf16 %v11941_v15, %v11940_v16  ;;  %v11943_v57 = vand.u32 4294901760, %v9719_v5  ;;  %v11945_v14 = vand.u32 4294901760, %v9571_v42  ;;  %v11948_v16 = vld [vmem:[#allocation30_spill] sm:$0xff] }
 0x2d2   : > { %11927 = vst [vmem:[#allocation138_spill] sm:$0xff] %v9759_v6  ;;  %11933 = vst [vmem:[#allocation140_spill] sm:$0xff] %v9771_v27  ;;  %v9783_v6 = vpack.c.bf16 %v11938_v53, %v11937_v18  ;;  %v11944_v27 = vand.u32 4294901760, %v9534_v1  ;;  %v11947_v18 = vld [vmem:[#allocation13_spill] sm:$0xff]  ;;  %v3186_v51 = vrot.slane %v11948_v16, %v11951_v35 }
 0x2d3   : > { %11942 = vst [vmem:[#allocation143_spill] sm:$0xff] %v9789_v8  ;;  %v4395_v22 = vsub.f32 %v9719_v5, %v11943_v57  ;;  %v2175_v53 = vrot.slane %v11814_v3, %v11947_v18  ;;  %v2163_v15 = vrot.slane %v11948_v16, %v11947_v18  ;;  %v11949_v8 = vld [vmem:[#allocation28_spill] sm:$0xff] }
 0x2d4   : > { %11939 = vst [vmem:[#allocation142_spill] sm:$0xff] %v9783_v6  ;;  %v9798_v40 = vpack.c.bf16 %v11945_v14, %v11944_v27  ;;  %v2151_v6 = vrot.slane %v11815_v37, %v11947_v18  ;;  %v2187_v57 = vrot.slane %v11949_v8, %v11947_v18  ;;  %v3198_v27 = vrot.slane %v11814_v3, %v11951_v35  ;;  %v327_v14 = vpop.permute.xlu1 %326 }
 0x2d5   : > { %v4396_v32 = vand.u32 4294901760, %v4395_v22  ;;  %vm2177_vm2 = vcmp.eq.f32.partialorder %v11950_v33, %v2175_v53  ;;  %v11952_v22 = vld [vmem:[#allocation9_spill] sm:$0xff]  ;;  %v3210_v18 = vrot.slane %v11949_v8, %v11951_v35  ;;  %v7439_v12 = vadd.f32 %v11953_v11, %v327_v14 }
 0x2d6   : > { %11946 = vst [vmem:[#allocation144_spill] sm:$0xff] %v9798_v40  ;;  %vm2153_vm13 = vcmp.eq.f32.partialorder %v11950_v33, %v2151_v6  ;;  %vm2179_vm14 = vcmp.eq.f32.partialorder %v11952_v22, %v2175_v53  ;;  %v2189_v59 = vsel %vm2177_vm2, %v2187_v57, 0.0  ;;  %vm3200_vm15 = vcmp.eq.f32.partialorder %v11950_v33, %v3198_v27  ;;  %v991_v53 = vld [vmem:[%s11361_s2 + $0x20] sm:$0x3] }
 0x2d7   : > { %4397 = vmatprep.mubr.f32.mxu0 %v4396_v32  ;;  %v3174_v32 = vrot.slane %v11815_v37, %v11951_v35  ;;  %v2165_v40 = vsel %vm2153_vm13, %v2163_v15, 0.0  ;;  %vm2155_vm0 = vcmp.eq.f32.partialorder %v11952_v22, %v2151_v6  ;;  %v2191_v1 = vsel %vm2179_vm14, %v2187_v57, 0.0 }
 0x2d8   : > { %v2167_v58 = vsel %vm2155_vm0, %v2163_v15, 0.0  ;;  %v9825_v13 = vadd.f32 %v2189_v59, %v2165_v40  ;;  %v3212_v21 = vsel %vm3200_vm15, %v3210_v18, 0.0  ;;  %v7440_v6 = vadd.f32 %v11955_v61, %v327_v14  ;;  %v992_v59 = vld [vmem:[%s11361_s2 + $0x28] sm:$0x3]  ;;  %v11956_v40 = vld [vmem:[#allocation23_spill] sm:$0xff] }
 0x2d9   : > { %vm3176_vm1 = vcmp.eq.f32.partialorder %v11950_v33, %v3174_v32  ;;  %v9833_v57 = vadd.f32 %v2191_v1, %v2167_v58  ;;  %vm3202_vm3 = vcmp.eq.f32.partialorder %v11952_v22, %v3198_v27  ;;  %v9836_v47 = vadd.f32 %v7439_v12, %v991_v53  ;;  %v11958_v53 = vld [vmem:[#allocation22_spill] sm:$0xff] }
 0x2da   : > { %v3188_v63 = vsel %vm3176_vm1, %v3186_v51, 0.0  ;;  %vm3178_vm4 = vcmp.eq.f32.partialorder %v11952_v22, %v3174_v32  ;;  %v9854_v20 = vadd.f32 %v7440_v6, %v992_v59  ;;  %v11962_v59 = vld [vmem:[#allocation24_spill] sm:$0xff] }
 0x2db   : > { %v3190_v12 = vsel %vm3178_vm4, %v3186_v51, 0.0 }
 0x2dd   : > { %v2368_v42 = vpop.f32.mrb[24].mxu1 }
 0x2de   : > { %v2409_v55 = vmul.f32 %v2368_v42, %v11954_v60  ;;  %v2370_v35 = vpop.f32.mrb[25].mxu1 }
 0x2df   : > { %v9831_v11 = vmul.f32 %v2370_v35, %v9825_v13  ;;  %v2372_v15 = vpop.f32.mrb[26].mxu1  ;;  %v9844_v35 = vadd.f32 %v3212_v21, %v3188_v63 }
 0x2e0   : > { %v4338_v42 = vand.u32 4294901760, %v2409_v55  ;;  %v2411_v52 = vmul.f32 %v2372_v15, %v11956_v40  ;;  %v2374_v46 = vpop.f32.mrb[27].mxu1  ;;  %v3214_v15 = vsel %vm3202_vm3, %v3210_v18, 0.0 }
 0x2e1   : > { %v3391_v61 = vpop.f32.mrb[32].mxu0  ;;  %v11507_v14 = vand.u32 4294901760, %v9831_v11  ;;  %v9847_v1 = vmul.f32 %v2374_v46, %v9833_v57 }
 0x2e2   : > { %v9849_v58 = vsub.f32 %v2409_v55, %v4338_v42  ;;  %v3432_v48 = vmul.f32 %v3391_v61, %v11958_v53  ;;  %v3393_v2 = vpop.f32.mrb[33].mxu0  ;;  %v4342_v34 = vand.u32 4294901760, %v2411_v52 }
 0x2e3   : > { %v9859_v21 = vsub.f32 %v9831_v11, %v11507_v14  ;;  %v9862_v46 = vmul.f32 %v3393_v2, %v9844_v35  ;;  %v3395_v63 = vpop.f32.mrb[34].mxu0  ;;  %v4340_v55 = vand.u32 4294901760, %v9847_v1  ;;  %v9875_v2 = vadd.f32 %v3214_v15, %v3190_v12 }
 0x2e4   : > { %11957 = vst [vmem:[#allocation13_spill] sm:$0xff] %v9849_v58  ;;  %v11511_v51 = vand.u32 4294901760, %v9849_v58  ;;  %v5566_v32 = vand.u32 4294901760, %v3432_v48  ;;  %v9866_v61 = vpack.c.bf16 %v4342_v34, %v4338_v42  ;;  %v9868_v27 = vsub.f32 %v2411_v52, %v4342_v34  ;;  %v3397_v18 = vpop.f32.mrb[35].mxu0 }
 0x2e5   : > { %11959 = vst [vmem:[#allocation20_spill] sm:$0xff] %v9859_v21  ;;  %v3434_v38 = vmul.f32 %v3395_v63, %v11962_v59  ;;  %v9873_v14 = vsub.f32 %v9847_v1, %v4340_v55  ;;  %v2378_v23 = vpop.f32.mrb[28].mxu1  ;;  %v11965_v1 = vand.u32 4294901760, %v9862_v46  ;;  %v9894_v43 = vmul.f32 %v3397_v18, %v9875_v2 }
 0x2e6   : > { %11960 = vst [vmem:[#allocation5_spill] sm:$0xff] %v9866_v61  ;;  %11961 = vst [vmem:[#allocation21_spill] sm:$0xff] %v9868_v27  ;;  %v9880_v10 = vsub.f32 %v9849_v58, %v11511_v51  ;;  %v9882_v42 = vsub.f32 %v3432_v48, %v5566_v32  ;;  %v11519_v52 = vand.u32 4294901760, %v9868_v27  ;;  %v2380_v6 = vpop.f32.mrb[29].mxu1  ;;  %v2413_v63 = vmul.f32 %v2378_v23, %v11954_v60 }
 0x2e7   : > { %11963 = vst [vmem:[#allocation7_spill] sm:$0xff] %v9873_v14  ;;  %v9891_v12 = vsub.f32 %v9862_v46, %v11965_v1  ;;  %v5570_v15 = vand.u32 4294901760, %v3434_v38  ;;  %v2382_v51 = vpop.f32.mrb[30].mxu1  ;;  %v11521_v18 = vand.u32 4294901760, %v9894_v43 }
 0x2e8   : > { %11964 = vst [vmem:[#allocation23_spill] sm:$0xff] %v9882_v42  ;;  %v11520_v48 = vand.u32 4294901760, %v9882_v42  ;;  %v9900_v4 = vsub.f32 %v9868_v27, %v11519_v52  ;;  %v2384_v24 = vpop.f32.mrb[31].mxu1  ;;  %v4346_v34 = vand.u32 4294901760, %v2413_v63  ;;  %v2415_v17 = vmul.f32 %v2382_v51, %v11956_v40 }
 0x2e9   : > { %11966 = vst [vmem:[#allocation22_spill] sm:$0xff] %v9891_v12  ;;  %v9905_v39 = vpack.c.bf16 %v5570_v15, %v5566_v32  ;;  %v9907_v30 = vsub.f32 %v3434_v38, %v5570_v15  ;;  %v3401_v19 = vpop.f32.mrb[36].mxu0  ;;  %v9923_v32 = vsub.f32 %v9894_v43, %v11521_v18  ;;  %v9926_v15 = vmul.f32 %v2380_v6, %v9825_v13 }
 0x2ea   : > { %v9913_v5 = vsub.f32 %v9882_v42, %v11520_v48  ;;  %v3436_v23 = vmul.f32 %v3401_v19, %v11958_v53  ;;  %v3403_v50 = vpop.f32.mrb[37].mxu0  ;;  %v9929_v44 = vsub.f32 %v2413_v63, %v4346_v34  ;;  %v11974_v51 = vand.u32 4294901760, %v9831_v11 }
 0x2eb   : > { %11967 = vst [vmem:[#allocation24_spill] sm:$0xff] %v9905_v39  ;;  %11968 = vst [vmem:[#allocation145_spill] sm:$0xff] %v9907_v30  ;;  %v3405_v48 = vpop.f32.mrb[38].mxu0  ;;  %v9932_v7 = vmul.f32 %v3403_v50, %v9844_v35  ;;  %v11971_v29 = vand.u32 4294901760, %v9907_v30  ;;  %v11523_v6 = vand.u32 4294901760, %v9926_v15  ;;  %v4350_v39 = vand.u32 4294901760, %v2415_v17 }
 0x2ec   : > { %11969 = vst [vmem:[#allocation146_spill] sm:$0xff] %v9923_v32  ;;  %11970 = vst [vmem:[#allocation147_spill] sm:$0xff] %v9929_v44  ;;  %v5574_v19 = vand.u32 4294901760, %v3436_v23  ;;  %v3407_v1 = vpop.f32.mrb[39].mxu0  ;;  %v3438_v62 = vmul.f32 %v3405_v48, %v11962_v59  ;;  %v9955_v26 = vpack.c.bf16 %v4340_v55, %v11974_v51  ;;  %v2416_v51 = vmul.f32 %v2384_v24, %v9833_v57 }
 0x2ed   : > { %v9938_v18 = vsub.f32 %v9907_v30, %v11971_v29  ;;  %v2388_v54 = vpop.f32.mrb[32].mxu1  ;;  %v9951_v29 = vsub.f32 %v9926_v15, %v11523_v6  ;;  %v11977_v38 = vand.u32 4294901760, %v9932_v7  ;;  %v9969_v11 = vpack.c.bf16 %v4350_v39, %v4346_v34 }
 0x2ee   : > { %v9943_v52 = vsub.f32 %v3436_v23, %v5574_v19  ;;  %v2390_v36 = vpop.f32.mrb[33].mxu1  ;;  %11975 = vst [vmem:[#allocation150_spill] sm:$0xff] %v9955_v26  ;;  %v11976_v23 = vand.u32 4294901760, %v9929_v44  ;;  %v5578_v6 = vand.u32 4294901760, %v3438_v62  ;;  %v9971_v55 = vsub.f32 %v2415_v17, %v4350_v39  ;;  %6824 = vmatprep.subr.bf16.mxu0 %v9955_v26  ;;  %7144 = vmatprep.subr.bf16.mxu1 %v9955_v26 }
 0x2ef   : > { %11973 = vst [vmem:[#allocation149_spill] sm:$0xff] %v9951_v29  ;;  %v2392_v63 = vpop.f32.mrb[34].mxu1  ;;  %v9966_v41 = vsub.f32 %v9932_v7, %v11977_v38  ;;  %11979 = vst [vmem:[#allocation152_spill] sm:$0xff] %v9969_v11  ;;  %6826 = vmatpush1.bf16.msra.mxu0 %v9866_v61  ;;  %7146 = vmatpush1.bf16.msra.mxu1 %v9866_v61  ;;  %v4348_v26 = vand.u32 4294901760, %v2416_v51  ;;  %v3439_v25 = vmul.f32 %v3407_v1, %v9875_v2 }
 0x2f0   : > { %11972 = vst [vmem:[#allocation148_spill] sm:$0xff] %v9943_v52  ;;  %v9960_v50 = vsub.f32 %v9929_v44, %v11976_v23  ;;  %v2394_v28 = vpop.f32.mrb[35].mxu1  ;;  %11980 = vst [vmem:[#allocation153_spill] sm:$0xff] %v9971_v55  ;;  %v11981_v38 = vand.u32 4294901760, %v9943_v52  ;;  %v9983_v34 = vpack.c.bf16 %v5578_v6, %v5574_v19  ;;  %v11533_v17 = vand.u32 4294901760, %v9971_v55 }
 0x2f1   : > { %11978 = vst [vmem:[#allocation151_spill] sm:$0xff] %v9966_v41  ;;  %v3411_v23 = vpop.f32.mrb[40].mxu0  ;;  %v9990_v48 = vsub.f32 %v3438_v62, %v5578_v6  ;;  %v2417_v19 = vmul.f32 %v2388_v54, %v11954_v60  ;;  %v10004_v6 = vsub.f32 %v2416_v51, %v4348_v26  ;;  %v2418_v60 = vmul.f32 %v2390_v36, %v9825_v13 }
 0x2f2   : > { %v9980_v49 = vsub.f32 %v9943_v52, %v11981_v38  ;;  %11982 = vst [vmem:[#allocation154_spill] sm:$0xff] %v9983_v34  ;;  %v3413_v39 = vpop.f32.mrb[41].mxu0  ;;  %v3440_v34 = vmul.f32 %v3411_v23, %v11958_v53  ;;  %v9999_v61 = vsub.f32 %v9971_v55, %v11533_v17  ;;  %v5576_v38 = vand.u32 4294901760, %v3439_v25 }
 0x2f3   : > { %11983 = vst [vmem:[#allocation155_spill] sm:$0xff] %v9990_v48  ;;  %v3415_v22 = vpop.f32.mrb[42].mxu0  ;;  %v11537_v24 = vand.u32 4294901760, %v9990_v48  ;;  %11984 = vst [vmem:[#allocation156_spill] sm:$0xff] %v10004_v6  ;;  %v4354_v56 = vand.u32 4294901760, %v2417_v19  ;;  %v3441_v17 = vmul.f32 %v3413_v39, %v9844_v35  ;;  %v4352_v16 = vand.u32 4294901760, %v2418_v60 }
 0x2f4   : > { %v3417_v33 = vpop.f32.mrb[43].mxu0  ;;  %v5582_v1 = vand.u32 4294901760, %v3440_v34  ;;  %v10015_v8 = vsub.f32 %v3439_v25, %v5576_v38  ;;  %v2419_v54 = vmul.f32 %v2392_v63, %v11956_v40  ;;  %v3442_v53 = vmul.f32 %v3415_v22, %v11962_v59 }
 0x2f5   : > { %v10012_v23 = vsub.f32 %v9990_v48, %v11537_v24  ;;  %v10017_v51 = vsub.f32 %v2417_v19, %v4354_v56  ;;  %v5580_v36 = vand.u32 4294901760, %v3441_v17  ;;  %v10027_v25 = vsub.f32 %v2418_v60, %v4352_v16 }
 0x2f6   : > { %11985 = vst [vmem:[#allocation157_spill] sm:$0xff] %v10015_v8  ;;  %v10019_v62 = vsub.f32 %v3440_v34, %v5582_v1  ;;  %v4358_v34 = vand.u32 4294901760, %v2419_v54  ;;  %v5586_v19 = vand.u32 4294901760, %v3442_v53  ;;  %v11990_v3 = vand.u32 4294901760, %v9926_v15 }
 0x2f7   : > { %11986 = vst [vmem:[#allocation158_spill] sm:$0xff] %v10017_v51  ;;  %v11539_v24 = vand.u32 4294901760, %v10017_v51  ;;  %11988 = vst [vmem:[#allocation160_spill] sm:$0xff] %v10027_v25  ;;  %v10029_v39 = vsub.f32 %v3441_v17, %v5580_v36  ;;  %v2420_v63 = vmul.f32 %v2394_v28, %v9833_v57  ;;  %v11546_v17 = vand.u32 4294901760, %v10027_v25 }
 0x2f8   : > { %11987 = vst [vmem:[#allocation159_spill] sm:$0xff] %v10019_v62  ;;  %v11540_v35 = vand.u32 4294901760, %v10019_v62  ;;  %v10033_v13 = vpack.c.bf16 %v4348_v26, %v11990_v3  ;;  %v10046_v60 = vpack.c.bf16 %v4358_v34, %v4354_v56  ;;  %v10048_v15 = vsub.f32 %v2419_v54, %v4358_v34 }
 0x2f9   : > { %11989 = vst [vmem:[#allocation161_spill] sm:$0xff] %v10029_v39  ;;  %v4682_v22 = vsub.f32 %v10017_v51, %v11539_v24  ;;  %v10050_v3 = vpack.c.bf16 %v5586_v19, %v5582_v1  ;;  %v10055_v37 = vsub.f32 %v3442_v53, %v5586_v19  ;;  %v3443_v57 = vmul.f32 %v3417_v33, %v9875_v2 }
 0x2fa   : > { %11991 = vst [vmem:[#allocation162_spill] sm:$0xff] %v10033_v13  ;;  %v10042_v59 = vsub.f32 %v10019_v62, %v11540_v35  ;;  %11992 = vst [vmem:[#allocation163_spill] sm:$0xff] %v10046_v60  ;;  %6828 = vmatprep.subr.bf16.mxu0 %v10033_v13  ;;  %7148 = vmatprep.subr.bf16.mxu1 %v10033_v13  ;;  %v4356_v35 = vand.u32 4294901760, %v2420_v63  ;;  %v11542_v28 = vand.u32 4294901760, %v10048_v15  ;;  %v11996_v1 = vand.u32 4294901760, %v9862_v46 }
 0x2fb   : > { %11993 = vst [vmem:[#allocation164_spill] sm:$0xff] %v10048_v15  ;;  %11994 = vst [vmem:[#allocation165_spill] sm:$0xff] %v10050_v3  ;;  %v4683_v26 = vand.u32 4294901760, %v4682_v22  ;;  %6830 = vmatpush1.bf16.msra.mxu0 %v9969_v11  ;;  %7150 = vmatpush1.bf16.msra.mxu1 %v9969_v11  ;;  %v11997_v54 = vand.u32 4294901760, %v9894_v43  ;;  %v11541_v53 = vand.u32 4294901760, %v10055_v37  ;;  %v5584_v33 = vand.u32 4294901760, %v3443_v57 }
 0x2fc   : > { %11995 = vst [vmem:[#allocation166_spill] sm:$0xff] %v10055_v37  ;;  %v10072_v22 = vsub.f32 %v2420_v63, %v4356_v35  ;;  %v10074_v24 = vpack.c.bf16 %v4356_v35, %v4352_v16  ;;  %v4694_v56 = vsub.f32 %v10048_v15, %v11542_v28  ;;  %v12001_v46 = vand.u32 4294901760, %v9932_v7 }
 0x2fd   : > { %v10067_v34 = vpack.c.bf16 %v11997_v54, %v11996_v1  ;;  %v12003_v43 = vand.u32 4294901760, %v9859_v21  ;;  %v5790_v63 = vsub.f32 %v10055_v37, %v11541_v53  ;;  %v12004_v35 = vand.u32 4294901760, %v9873_v14 }
 0x2fe   : > { %11999 = vst [vmem:[#allocation168_spill] sm:$0xff] %v10072_v22  ;;  %12000 = vst [vmem:[#allocation169_spill] sm:$0xff] %v10074_v24  ;;  %v10081_v2 = vpack.c.bf16 %v5576_v38, %v12001_v46  ;;  %v11545_v16 = vand.u32 4294901760, %v10072_v22  ;;  %6832 = vmatprep.subr.bf16.mxu0 %v10074_v24  ;;  %7152 = vmatprep.subr.bf16.mxu1 %v10074_v24  ;;  %v12005_v38 = vand.u32 4294901760, %v9880_v10  ;;  %v12006_v54 = vand.u32 4294901760, %v9900_v4 }
 0x2ff   : > { %11998 = vst [vmem:[#allocation167_spill] sm:$0xff] %v10067_v34  ;;  %v4628_v1 = vsub.f32 %v9859_v21, %v12003_v43  ;;  %v4640_v7 = vsub.f32 %v9873_v14, %v12004_v35  ;;  %v4695_v43 = vand.u32 4294901760, %v4694_v56  ;;  %v10101_v19 = vsub.f32 %v3443_v57, %v5584_v33  ;;  %6834 = vmatpush1.bf16.msra.mxu0 %v10046_v60 }
 0x300   : > { %12002 = vst [vmem:[#allocation170_spill] sm:$0xff] %v10081_v2  ;;  %v10099_v46 = vpack.c.bf16 %v12006_v54, %v12005_v38  ;;  %7154 = vmatpush1.bf16.msra.mxu1 %v10046_v60  ;;  %v10105_v53 = vpack.c.bf16 %v5584_v33, %v5580_v36  ;;  %v5791_v40 = vand.u32 4294901760, %v5790_v63  ;;  %6836 = vmatprep.subr.bf16.mxu0 %v9583_v9  ;;  %v12009_v4 = vand.u32 4294901760, %v9951_v29  ;;  %v12015_v60 = vld [vmem:[#allocation18_spill] sm:$0xff] }
 0x301   : > { %12007 = vst [vmem:[#allocation171_spill] sm:$0xff] %v10101_v19  ;;  %v4629_v28 = vand.u32 4294901760, %v4628_v1  ;;  %7156 = vmatprep.subr.bf16.mxu1 %v9583_v9  ;;  %v4641_v10 = vand.u32 4294901760, %v4640_v7  ;;  %v12010_v56 = vand.u32 4294901760, %v10004_v6  ;;  %v5783_v38 = vand.u32 4294901760, %v10101_v19 }
 0x302   : > { %12008 = vst [vmem:[#allocation172_spill] sm:$0xff] %v10105_v53  ;;  %v4652_v35 = vsub.f32 %v9951_v29, %v12009_v4  ;;  %v12011_v36 = vand.u32 4294901760, %v9960_v50  ;;  %v12012_v33 = vand.u32 4294901760, %v9999_v61  ;;  %v4676_v63 = vsub.f32 %v10027_v25, %v11546_v17 }
 0x303   : > { %v4664_v57 = vsub.f32 %v10004_v6, %v12010_v56  ;;  %v4688_v7 = vsub.f32 %v10072_v22, %v11545_v16  ;;  %v10128_v54 = vpack.c.bf16 %v4641_v10, %v4629_v28  ;;  %v10130_v9 = vpack.c.bf16 %v4695_v43, %v4683_v26  ;;  %6838 = vmatpush1.bf16.msra.mxu0 %v12015_v60 }
 0x304   : > { %v10120_v1 = vpack.c.bf16 %v12012_v33, %v12011_v36  ;;  %v4653_v4 = vand.u32 4294901760, %v4652_v35  ;;  %7158 = vmatpush1.bf16.msra.mxu1 %v12015_v60  ;;  %v4677_v61 = vand.u32 4294901760, %v4676_v63  ;;  %v5779_v16 = vand.u32 4294901760, %v10042_v59  ;;  %6840 = vmatprep.subr.bf16.mxu0 %v9597_v31  ;;  %v12083_v60 = vld [vmem:[#allocation8_spill] sm:$0xff] }
 0x305   : > { %v4665_v56 = vand.u32 4294901760, %v4664_v57  ;;  %12014 = vst [vmem:[#allocation174_spill] sm:$0xff] %v10130_v9  ;;  %v4689_v50 = vand.u32 4294901760, %v4688_v7  ;;  %7160 = vmatprep.subr.bf16.mxu1 %v9597_v31  ;;  %v12017_v43 = vand.u32 4294901760, %v9891_v12  ;;  %v12019_v57 = vand.u32 4294901760, %v9923_v32 }
 0x306   : > { %12013 = vst [vmem:[#allocation173_spill] sm:$0xff] %v10120_v1  ;;  %v12020_v59 = vand.u32 4294901760, %v9913_v5  ;;  %v12021_v7 = vand.u32 4294901760, %v9938_v18  ;;  %v12024_v36 = vand.u32 4294901760, %v10015_v8  ;;  %v12028_v5 = vand.u32 4294901760, %v10029_v39 }
 0x307   : > { %v10141_v26 = vpack.c.bf16 %v4665_v56, %v4653_v4  ;;  %v5724_v10 = vsub.f32 %v9891_v12, %v12017_v43  ;;  %v10148_v35 = vpack.c.bf16 %v4689_v50, %v4677_v61  ;;  %v5736_v63 = vsub.f32 %v9923_v32, %v12019_v57 }
 0x308   : > { %v10157_v33 = vpack.c.bf16 %v12021_v7, %v12020_v59  ;;  %v12023_v4 = vand.u32 4294901760, %v9966_v41  ;;  %v5760_v61 = vsub.f32 %v10015_v8, %v12024_v36  ;;  %v12025_v50 = vand.u32 4294901760, %v9980_v49  ;;  %v12029_v59 = vld [vmem:[#allocation99_spill] sm:$0xff] }
 0x309   : > { %12016 = vst [vmem:[#allocation175_spill] sm:$0xff] %v10141_v26  ;;  %12018 = vst [vmem:[#allocation176_spill] sm:$0xff] %v10148_v35  ;;  %v5725_v28 = vand.u32 4294901760, %v5724_v10  ;;  %v12026_v43 = vand.u32 4294901760, %v10012_v23  ;;  %v5772_v18 = vsub.f32 %v10029_v39, %v12028_v5  ;;  %6842 = vmatpush1.bf16.msra.mxu0 %v12029_v59  ;;  %7162 = vmatpush1.bf16.msra.mxu1 %v12029_v59  ;;  %v5737_v7 = vand.u32 4294901760, %v5736_v63  ;;  %v12081_v59 = vld [vmem:[#allocation125_spill] sm:$0xff] }
 0x30a   : > { %12022 = vst [vmem:[#allocation177_spill] sm:$0xff] %v10157_v33  ;;  %v5748_v56 = vsub.f32 %v9966_v41, %v12023_v4  ;;  %v5784_v4 = vsub.f32 %v10101_v19, %v5783_v38  ;;  %v10177_v17 = vpack.c.bf16 %v5791_v40, %v5779_v16  ;;  %6844 = vmatprep.subr.bf16.mxu0 %v9621_v0  ;;  %v5761_v49 = vand.u32 4294901760, %v5760_v61 }
 0x30b   : > { %v10169_v57 = vpack.c.bf16 %v12026_v43, %v12025_v50  ;;  %7164 = vmatprep.subr.bf16.mxu1 %v9621_v0  ;;  %v5773_v23 = vand.u32 4294901760, %v5772_v18  ;;  %v10185_v43 = vpack.c.bf16 %v5737_v7, %v5725_v28  ;;  %v12032_v40 = vand.u32 4294901760, %v9859_v21 }
 0x30c   : > { %v5749_v10 = vand.u32 4294901760, %v5748_v56  ;;  %12030 = vst [vmem:[#allocation179_spill] sm:$0xff] %v10177_v17  ;;  %v5785_v63 = vand.u32 4294901760, %v5784_v4  ;;  %v12033_v16 = vand.u32 4294901760, %v9873_v14  ;;  %v12036_v18 = vand.u32 4294901760, %v9849_v58 }
 0x30d   : > { %12027 = vst [vmem:[#allocation178_spill] sm:$0xff] %v10169_v57  ;;  %12031 = vst [vmem:[#allocation180_spill] sm:$0xff] %v10185_v43  ;;  %v12037_v36 = vand.u32 4294901760, %v9868_v27  ;;  %v12039_v28 = vand.u32 4294901760, %v9951_v29  ;;  %v12040_v7 = vand.u32 4294901760, %v10004_v6  ;;  %v12042_v56 = vand.u32 4294901760, %v9929_v44  ;;  %6846 = vmatpush1.bf16.msra.mxu0 %v9565_v45  ;;  %7166 = vmatpush1.bf16.msra.mxu1 %v9565_v45 }
 0x30e   : > { %v10193_v5 = vpack.c.bf16 %v12033_v16, %v12032_v40  ;;  %v10195_v61 = vpack.c.bf16 %v5761_v49, %v5749_v10  ;;  %v12043_v50 = vand.u32 4294901760, %v9971_v55  ;;  %v10216_v10 = vfloor.f32 %v9836_v47 }
 0x30f   : > { %v10201_v0 = vpack.c.bf16 %v12037_v36, %v12036_v18  ;;  %v10207_v4 = vpack.c.bf16 %v12040_v7, %v12039_v28  ;;  %v10220_v49 = vpack.c.bf16 %v5785_v63, %v5773_v23  ;;  %v12047_v36 = vand.u32 4294901760, %v10027_v25 }
 0x310   : > { %12034 = vst [vmem:[#allocation181_spill] sm:$0xff] %v10193_v5  ;;  %12035 = vst [vmem:[#allocation182_spill] sm:$0xff] %v10195_v61  ;;  %v10213_v40 = vpack.c.bf16 %v12043_v50, %v12042_v56  ;;  %v12048_v16 = vand.u32 4294901760, %v10072_v22  ;;  %v12050_v28 = vand.u32 4294901760, %v10017_v51  ;;  %v12051_v50 = vand.u32 4294901760, %v10048_v15 }
 0x311   : > { %12038 = vst [vmem:[#allocation183_spill] sm:$0xff] %v10201_v0  ;;  %12041 = vst [vmem:[#allocation184_spill] sm:$0xff] %v10207_v4  ;;  %v12053_v7 = vand.u32 4294901760, %v9891_v12  ;;  %v12056_v23 = vand.u32 4294901760, %v9882_v42  ;;  %v12057_v63 = vand.u32 4294901760, %v9907_v30  ;;  %v10297_v31 = vand.u32 4294901760, %v12081_v59 }
 0x312   : > { %12044 = vst [vmem:[#allocation185_spill] sm:$0xff] %v10213_v40  ;;  %12045 = vst [vmem:[#allocation186_spill] sm:$0xff] %v10216_v10  ;;  %v10226_v18 = vpack.c.bf16 %v12048_v16, %v12047_v36  ;;  %v10232_v56 = vpack.c.bf16 %v12051_v50, %v12050_v28  ;;  %v12054_v40 = vand.u32 4294901760, %v9923_v32  ;;  %v12059_v36 = vand.u32 4294901760, %v9966_v41  ;;  %v12088_v41 = vld [vmem:[#allocation9_spill] sm:$0xff] }
 0x313   : > { %12046 = vst [vmem:[#allocation187_spill] sm:$0xff] %v10220_v49  ;;  %v10244_v0 = vpack.c.bf16 %v12057_v63, %v12056_v23  ;;  %v12060_v16 = vand.u32 4294901760, %v10015_v8  ;;  %v12062_v28 = vand.u32 4294901760, %v9943_v52  ;;  %v12063_v50 = vand.u32 4294901760, %v9990_v48 }
 0x314   : > { %12049 = vst [vmem:[#allocation188_spill] sm:$0xff] %v10226_v18  ;;  %12052 = vst [vmem:[#allocation189_spill] sm:$0xff] %v10232_v56  ;;  %v10238_v4 = vpack.c.bf16 %v12054_v40, %v12053_v7  ;;  %v12065_v40 = vand.u32 4294901760, %v10029_v39  ;;  %v12068_v23 = vand.u32 4294901760, %v10055_v37  ;;  %v10316_v13 = vsub.f32 %v12081_v59, %v10297_v31  ;;  %v10325_v37 = vld [vmem:[%s11364_s5 + $0x8] sm:$0x77] }
 0x315   : > { %12058 = vst [vmem:[#allocation191_spill] sm:$0xff] %v10244_v0  ;;  %v10250_v18 = vpack.c.bf16 %v12060_v16, %v12059_v36  ;;  %v10256_v56 = vpack.c.bf16 %v12063_v50, %v12062_v28  ;;  %v10269_v0 = vfloor.f32 %v9854_v20  ;;  %v10273_v36 = vsub.f32 %v9836_v47, %v10216_v10  ;;  %v12074_v28 = vld [vmem:[#allocation14_spill] sm:$0xff]  ;;  %v12075_v50 = vld [vmem:[#allocation29_spill] sm:$0xff] }
 0x316   : > { %12055 = vst [vmem:[#allocation190_spill] sm:$0xff] %v10238_v4  ;;  %v10260_v7 = vpack.c.bf16 %v5783_v38, %v12065_v40  ;;  %v12067_v4 = vand.u32 4294901760, %v10019_v62  ;;  %v10276_v16 = vadd.f32 1.0, %v10216_v10  ;;  %v2857_v40 = vrot.slane %v12075_v50, %v12074_v28  ;;  %12082 = vst [vmem:[#allocation29_spill] sm:$0xff] %v10297_v31 }
 0x317   : > { %12061 = vst [vmem:[#allocation192_spill] sm:$0xff] %v10250_v18  ;;  %12064 = vst [vmem:[#allocation193_spill] sm:$0xff] %v10256_v56  ;;  %v10280_v38 = vsub.f32 %v9854_v20, %v10269_v0  ;;  %v10290_v47 = vadd.f32 1.0, %v10269_v0  ;;  %v12079_v18 = vld [vmem:[#allocation30_spill] sm:$0xff]  ;;  %v12080_v20 = vld [vmem:[#allocation28_spill] sm:$0xff]  ;;  %v4259_v59 = vcombine.high %v10325_v37, %v10325_v37  ;;  %v12092_v15 = vand.u32 4294901760, %v10316_v13 }
 0x318   : > { %12066 = vst [vmem:[#allocation194_spill] sm:$0xff] %v10260_v7  ;;  %v10266_v63 = vpack.c.bf16 %v12068_v23, %v12067_v4  ;;  %12070 = vst [vmem:[#allocation196_spill] sm:$0xff] %v10269_v0  ;;  %v12076_v23 = vld [vmem:[#allocation12_spill] sm:$0xff]  ;;  %v12077_v7 = vld [vmem:[#allocation27_spill] sm:$0xff]  ;;  %v2845_v5 = vrot.slane %v12079_v18, %v12074_v28  ;;  %v2869_v45 = vrot.slane %v12080_v20, %v12074_v28 }
 0x319   : > { %12071 = vst [vmem:[#allocation197_spill] sm:$0xff] %v10273_v36  ;;  %12072 = vst [vmem:[#allocation198_spill] sm:$0xff] %v10276_v16  ;;  %v2833_v56 = vrot.slane %v12077_v7, %v12074_v28  ;;  %v3854_v4 = vrot.slane %v10216_v10, %v12076_v23  ;;  %vm2859_vm5 = vcmp.eq.f32.partialorder %v12083_v60, %v2857_v40  ;;  %v12084_v7 = vsub.f32 1.0, %v10273_v36  ;;  %v12112_v10 = vld [vmem:[#allocation71_spill] sm:$0xff] }
 0x31a   : > { %12069 = vst [vmem:[#allocation195_spill] sm:$0xff] %v10266_v63  ;;  %12073 = vst [vmem:[#allocation199_spill] sm:$0xff] %v10280_v38  ;;  %v3878_v63 = vrot.slane %v10276_v16, %v12076_v23  ;;  %v3890_v18 = vrot.slane %v10273_v36, %v12076_v23  ;;  %v3882_v28 = vrot.slane %v10290_v47, %v12076_v23  ;;  %v2871_v50 = vsel %vm2859_vm5, %v2869_v45, 0.0 }
 0x31b   : > { %12078 = vst [vmem:[#allocation14_spill] sm:$0xff] %v10290_v47  ;;  %v3866_v24 = vrot.slane %v12084_v7, %v12076_v23  ;;  %vm2835_vm7 = vcmp.eq.f32.partialorder %v12083_v60, %v2833_v56  ;;  %v3858_v11 = vrot.slane %v10269_v0, %v12076_v23  ;;  %12085 = vst [vmem:[#allocation12_spill] sm:$0xff] %v10316_v13  ;;  %v12086_v7 = vsub.f32 1.0, %v10280_v38 }
 0x31c   : > { %vm3883_vm6 = vcmp.eq.f32.partialorder %v12083_v60, %v3878_v63  ;;  %v2847_v20 = vsel %vm2835_vm7, %v2845_v5, 0.0  ;;  %vm3859_vm8 = vcmp.eq.f32.partialorder %v12083_v60, %v3854_v4  ;;  %12087 = vst [vmem:[#allocation27_spill] sm:$0xff] %v10325_v37  ;;  %v3894_v19 = vrot.slane %v10280_v38, %v12076_v23 }
 0x31d   : > { %v3870_v62 = vrot.slane %v12086_v7, %v12076_v23  ;;  %v3871_v39 = vsel %vm3859_vm8, %v3866_v24, 0.0  ;;  %v3895_v52 = vsel %vm3883_vm6, %v3890_v18, 0.0  ;;  %v10331_v48 = vadd.f32 %v2871_v50, %v2847_v20 }
 0x31e   : > { %vm3884_vm10 = vcmp.eq.f32.partialorder %v12083_v60, %v3882_v28  ;;  %vm2861_vm11 = vcmp.eq.f32.partialorder %v12088_v41, %v2857_v40  ;;  %vm3860_vm12 = vcmp.eq.f32.partialorder %v12083_v60, %v3858_v11  ;;  %vm3885_vm2 = vcmp.eq.f32.partialorder %v12088_v41, %v3878_v63 }
 0x31f   : > { %v4262_v8 = vsel %vm4261_vm9, %v4259_v59, 0  ;;  %v3872_v42 = vsel %vm3860_vm12, %v3870_v62, 0.0  ;;  %vm2837_vm13 = vcmp.eq.f32.partialorder %v12088_v41, %v2833_v56  ;;  %vm3886_vm14 = vcmp.eq.f32.partialorder %v12088_v41, %v3882_v28  ;;  %v12091_v59 = vld [vmem:[#allocation25_spill] sm:$0xff] }
 0x320   : > { %v10340_v23 = vand.u32 4294901760, %v4262_v8  ;;  %v3896_v50 = vsel %vm3884_vm10, %v3894_v19, 0.0  ;;  %vm3861_vm15 = vcmp.eq.f32.partialorder %v12088_v41, %v3854_v4  ;;  %v2849_v20 = vsel %vm2837_vm13, %v2845_v5, 0.0 }
 0x321   : > { %v2873_v30 = vsel %vm2861_vm11, %v2869_v45, 0.0  ;;  %v3873_v12 = vsel %vm3861_vm15, %v3866_v24, 0.0  ;;  %v3897_v32 = vsel %vm3885_vm2, %v3890_v18, 0.0  ;;  %vm3862_vm0 = vcmp.eq.f32.partialorder %v12088_v41, %v3858_v11 }
 0x322   : > { %12089 = vst [vmem:[#allocation30_spill] sm:$0xff] %v10340_v23  ;;  %v10345_v63 = vsub.f32 %v4262_v8, %v10340_v23  ;;  %v3874_v51 = vsel %vm3862_vm0, %v3870_v62, 0.0  ;;  %v3898_v28 = vsel %vm3886_vm14, %v3894_v19, 0.0  ;;  %v10351_v17 = vsub.f32 %v10316_v13, %v12092_v15  ;;  %v12093_v62 = vld [vmem:[#allocation26_spill] sm:$0xff] }
 0x323   : > { %v10353_v5 = vadd.f32 %v3895_v52, %v3871_v39  ;;  %v10358_v11 = vadd.f32 %v2873_v30, %v2849_v20  ;;  %v10361_v18 = vadd.f32 %v3896_v50, %v3872_v42 }
 0x324   : > { %12090 = vst [vmem:[#allocation28_spill] sm:$0xff] %v10345_v63  ;;  %v11570_v8 = vand.u32 4294901760, %v10345_v63 }
 0x325   : > { %v3050_v40 = vpop.f32.mrb[36].mxu1 }
 0x326   : > { %v3091_v7 = vmul.f32 %v3050_v40, %v12091_v59  ;;  %v3052_v56 = vpop.f32.mrb[37].mxu1  ;;  %v10364_v40 = vadd.f32 %v3897_v32, %v3873_v12  ;;  %v10375_v30 = vsub.f32 %v10345_v63, %v11570_v8 }
 0x327   : > { %v10356_v45 = vmul.f32 %v3052_v56, %v10331_v48  ;;  %v3054_v24 = vpop.f32.mrb[38].mxu1  ;;  %v10370_v56 = vadd.f32 %v3898_v28, %v3874_v51 }
 0x328   : > { %v4386_v4 = vand.u32 4294901760, %v3091_v7  ;;  %v3093_v19 = vmul.f32 %v3054_v24, %v12093_v62  ;;  %v3056_v25 = vpop.f32.mrb[39].mxu1 }
 0x329   : > { %v4075_v15 = vpop.f32.mrb[44].mxu0  ;;  %v11576_v52 = vand.u32 4294901760, %v10356_v45  ;;  %v10368_v39 = vmul.f32 %v3056_v25, %v10358_v11 }
 0x32a   : > { %v10377_v42 = vsub.f32 %v3091_v7, %v4386_v4  ;;  %v4116_v50 = vmul.f32 %v4075_v15, %v10353_v5  ;;  %v4077_v12 = vpop.f32.mrb[45].mxu0  ;;  %v4390_v32 = vand.u32 4294901760, %v3093_v19 }
 0x32b   : > { %v10384_v25 = vsub.f32 %v10356_v45, %v11576_v52  ;;  %v10387_v51 = vmul.f32 %v4077_v12, %v10361_v18  ;;  %v4079_v28 = vpop.f32.mrb[46].mxu0  ;;  %v4388_v24 = vand.u32 4294901760, %v10368_v39 }
 0x32c   : > { %v11579_v8 = vand.u32 4294901760, %v10377_v42  ;;  %v5614_v15 = vand.u32 4294901760, %v4116_v50  ;;  %v10392_v63 = vpack.c.bf16 %v4390_v32, %v4386_v4  ;;  %v10394_v13 = vsub.f32 %v3093_v19, %v4390_v32  ;;  %v4081_v20 = vpop.f32.mrb[47].mxu0 }
 0x32d   : > { %v11582_v52 = vand.u32 4294901760, %v10387_v51  ;;  %v4118_v12 = vmul.f32 %v4079_v28, %v10364_v40  ;;  %v10400_v49 = vsub.f32 %v10368_v39, %v4388_v24  ;;  %v3060_v44 = vpop.f32.mrb[40].mxu1  ;;  %v10419_v57 = vmul.f32 %v4081_v20, %v10370_v56 }
 0x32e   : > { %12094 = vst [vmem:[#allocation125_spill] sm:$0xff] %v10392_v63  ;;  %v10405_v7 = vsub.f32 %v10377_v42, %v11579_v8  ;;  %v10407_v4 = vsub.f32 %v4116_v50, %v5614_v15  ;;  %v3062_v22 = vpop.f32.mrb[41].mxu1  ;;  %v12097_v29 = vand.u32 4294901760, %v10394_v13  ;;  %v3095_v6 = vmul.f32 %v3060_v44, %v12091_v59 }
 0x32f   : > { %v10415_v28 = vsub.f32 %v10387_v51, %v11582_v52  ;;  %v5618_v39 = vand.u32 4294901760, %v4118_v12  ;;  %v3064_v8 = vpop.f32.mrb[42].mxu1  ;;  %v11590_v20 = vand.u32 4294901760, %v10419_v57 }
 0x330   : > { %12095 = vst [vmem:[#allocation25_spill] sm:$0xff] %v10407_v4  ;;  %v11586_v19 = vand.u32 4294901760, %v10407_v4  ;;  %v10426_v32 = vsub.f32 %v10394_v13, %v12097_v29  ;;  %v3066_v52 = vpop.f32.mrb[43].mxu1  ;;  %v5550_v33 = vand.u32 4294901760, %v3095_v6 }
 0x331   : > { %12096 = vst [vmem:[#allocation26_spill] sm:$0xff] %v10415_v28  ;;  %v10430_v58 = vpack.c.bf16 %v5618_v39, %v5614_v15  ;;  %v10432_v55 = vsub.f32 %v4118_v12, %v5618_v39  ;;  %v4085_v27 = vpop.f32.mrb[48].mxu0  ;;  %v10448_v12 = vsub.f32 %v10419_v57, %v11590_v20  ;;  %v10451_v39 = vmul.f32 %v3062_v22, %v10331_v48 }
 0x332   : > { %v10438_v50 = vsub.f32 %v10407_v4, %v11586_v19  ;;  %v4120_v44 = vmul.f32 %v4085_v27, %v10353_v5  ;;  %v4087_v21 = vpop.f32.mrb[49].mxu0  ;;  %v10454_v14 = vsub.f32 %v3095_v6, %v5550_v33 }
 0x333   : > { %12098 = vst [vmem:[#allocation200_spill] sm:$0xff] %v10430_v58  ;;  %12099 = vst [vmem:[#allocation201_spill] sm:$0xff] %v10432_v55  ;;  %v4089_v19 = vpop.f32.mrb[50].mxu0  ;;  %v10457_v43 = vmul.f32 %v4087_v21, %v10361_v18  ;;  %v12101_v15 = vand.u32 4294901760, %v10432_v55  ;;  %v11598_v22 = vand.u32 4294901760, %v10451_v39  ;;  %v3097_v58 = vmul.f32 %v3064_v8, %v12093_v62 }
 0x334   : > { %12100 = vst [vmem:[#allocation202_spill] sm:$0xff] %v10448_v12  ;;  %v5622_v27 = vand.u32 4294901760, %v4120_v44  ;;  %v4091_v61 = vpop.f32.mrb[51].mxu0  ;;  %v4122_v9 = vmul.f32 %v4089_v19, %v10364_v40  ;;  %v12103_v8 = vand.u32 4294901760, %v10356_v45  ;;  %v12115_v45 = vld [vmem:[#allocation129_spill] sm:$0xff]  ;;  %v12124_v16 = vand.u32 4294901760, %v10451_v39 }
 0x335   : > { %v10462_v23 = vsub.f32 %v10432_v55, %v12101_v15  ;;  %v3070_v37 = vpop.f32.mrb[44].mxu1  ;;  %v10476_v15 = vsub.f32 %v10451_v39, %v11598_v22  ;;  %v5554_v20 = vand.u32 4294901760, %v3097_v58  ;;  %v12106_v35 = vand.u32 4294901760, %v10457_v43 }
 0x336   : > { %v10468_v29 = vsub.f32 %v4120_v44, %v5622_v27  ;;  %v3072_v41 = vpop.f32.mrb[45].mxu1  ;;  %v10480_v38 = vpack.c.bf16 %v4388_v24, %v12103_v8  ;;  %v12105_v44 = vand.u32 4294901760, %v10454_v14  ;;  %v5626_v22 = vand.u32 4294901760, %v4122_v9 }
 0x337   : > { %v3074_v6 = vpop.f32.mrb[46].mxu1  ;;  %v10491_v60 = vsub.f32 %v10457_v43, %v12106_v35  ;;  %v10496_v24 = vpack.c.bf16 %v5554_v20, %v5550_v33  ;;  %v10498_v8 = vsub.f32 %v3097_v58, %v5554_v20 }
 0x338   : > { %12102 = vst [vmem:[#allocation203_spill] sm:$0xff] %v10468_v29  ;;  %12104 = vst [vmem:[#allocation204_spill] sm:$0xff] %v10480_v38  ;;  %v10485_v21 = vsub.f32 %v10454_v14, %v12105_v44  ;;  %v10493_v1 = vpop.f32.mrb[47].mxu1  ;;  %6848 = vmatprep.subr.bf16.mxu0 %v10480_v38  ;;  %7168 = vmatprep.subr.bf16.mxu1 %v10480_v38  ;;  %v3098_v44 = vmul.f32 %v3066_v52, %v10358_v11  ;;  %v12109_v35 = vand.u32 4294901760, %v10468_v29 }
 0x339   : > { %12107 = vst [vmem:[#allocation205_spill] sm:$0xff] %v10491_v60  ;;  %12108 = vst [vmem:[#allocation206_spill] sm:$0xff] %v10496_v24  ;;  %v4095_v19 = vpop.f32.mrb[52].mxu0  ;;  %v10510_v33 = vpack.c.bf16 %v5626_v22, %v5622_v27  ;;  %6850 = vmatpush1.bf16.msra.mxu0 %v10392_v63  ;;  %7170 = vmatpush1.bf16.msra.mxu1 %v10392_v63  ;;  %v11607_v20 = vand.u32 4294901760, %v10498_v8  ;;  %v10517_v0 = vsub.f32 %v4122_v9, %v5626_v22 }
 0x33a   : > { %v10507_v36 = vsub.f32 %v10468_v29, %v12109_v35  ;;  %v4097_v58 = vpop.f32.mrb[53].mxu0  ;;  %v5552_v38 = vand.u32 4294901760, %v3098_v44  ;;  %6852 = vmatprep.subr.bf16.mxu0 %v12112_v10  ;;  %v10522_v27 = vmul.f32 %v4091_v61, %v10370_v56  ;;  %v4124_v63 = vmul.f32 %v4095_v19, %v10353_v5 }
 0x33b   : > { %12110 = vst [vmem:[#allocation207_spill] sm:$0xff] %v10510_v33  ;;  %12111 = vst [vmem:[#allocation208_spill] sm:$0xff] %v10517_v0  ;;  %v4099_v35 = vpop.f32.mrb[54].mxu0  ;;  %v3099_v33 = vmul.f32 %v3070_v37, %v12091_v59  ;;  %v10529_v52 = vsub.f32 %v10498_v8, %v11607_v20  ;;  %v12113_v61 = vand.u32 4294901760, %v10351_v17  ;;  %v12114_v59 = vld [vmem:[#allocation67_spill] sm:$0xff]  ;;  %v3100_v20 = vmul.f32 %v3072_v41, %v10331_v48 }
 0x33c   : > { %v4101_v47 = vpop.f32.mrb[55].mxu0  ;;  %v10534_v22 = vsub.f32 %v3098_v44, %v5552_v38  ;;  %5542 = vmatmul.mubr.f32.vlgmr.msra.gmra.mrb[60].mxu1 %v10297_v31  ;;  %v5630_v19 = vand.u32 4294901760, %v4124_v63  ;;  %v12116_v44 = vand.u32 4294901760, %v10517_v0  ;;  %v10552_v37 = vmul.f32 %v4097_v58, %v10361_v18 }
 0x33d   : > { %4403 = vmatmul.mubr.f32.vlgmr.msra.gmra.mrb[6].mxu0 %v12113_v61  ;;  %v5558_v5 = vand.u32 4294901760, %v3099_v33  ;;  %v12117_v61 = vld [vmem:[#allocation73_spill] sm:$0xff]  ;;  %v12119_v41 = vand.u32 4294901760, %v10522_v27  ;;  %v3101_v18 = vmul.f32 %v3074_v6, %v12093_v62  ;;  %v4126_v58 = vmul.f32 %v4099_v35, %v10364_v40  ;;  %v12126_v40 = vld [vmem:[#allocation75_spill] sm:$0xff]  ;;  %v12129_v35 = vld [vmem:[#allocation72_spill] sm:$0xff] }
 0x33e   : > { %6854 = vmatpush1.bf16.msra.mxu0 %v12114_v59  ;;  %4794 = vmatprep.mubr.f32.mxu0 %v12115_v45  ;;  %v10547_v10 = vsub.f32 %v10517_v0, %v12116_v44  ;;  %v12118_v59 = vand.u32 4294901760, %v10375_v30  ;;  %v10563_v45 = vsub.f32 %v4124_v63, %v5630_v19  ;;  %v5556_v44 = vand.u32 4294901760, %v3100_v20 }
 0x33f   : > { %6856 = vmatprep.subr.bf16.mxu0 %v12117_v61  ;;  %v10559_v48 = vsub.f32 %v10522_v27, %v12119_v41  ;;  %v10561_v9 = vsub.f32 %v3099_v33, %v5558_v5  ;;  %v5628_v61 = vand.u32 4294901760, %v10552_v37  ;;  %v12122_v33 = vld [vmem:[#allocation70_spill] sm:$0xff]  ;;  %v5562_v17 = vand.u32 4294901760, %v3101_v18 }
 0x340   : > { %5661 = vmatprep.mubr.f32.mxu1 %v12118_v59  ;;  %12121 = vst [vmem:[#allocation67_spill] sm:$0xff] %v10563_v45  ;;  %v11612_v41 = vand.u32 4294901760, %v10563_v45  ;;  %v10572_v31 = vsub.f32 %v3100_v20, %v5556_v44  ;;  %v5634_v26 = vand.u32 4294901760, %v4126_v58  ;;  %v10580_v62 = vpack.c.bf16 %v5552_v38, %v12124_v16 }
 0x341   : > { %12120 = vst [vmem:[#allocation71_spill] sm:$0xff] %v10559_v48  ;;  %v11611_v59 = vand.u32 4294901760, %v10561_v9  ;;  %v10576_v63 = vsub.f32 %v10552_v37, %v5628_v61  ;;  %v3102_v37 = vmul.f32 %v10493_v1, %v10358_v11  ;;  %v10595_v16 = vpack.c.bf16 %v5562_v17, %v5558_v5 }
 0x342   : > { %6858 = vmatpush1.bf16.msra.mxu0 %v12122_v33  ;;  %12125 = vst [vmem:[#allocation70_spill] sm:$0xff] %v10580_v62  ;;  %v10589_v20 = vsub.f32 %v10563_v45, %v11612_v41  ;;  %v10597_v38 = vsub.f32 %v3101_v18, %v5562_v17  ;;  %v10599_v33 = vpack.c.bf16 %v5634_v26, %v5630_v19  ;;  %v12130_v19 = vld [vmem:[#allocation120_spill] sm:$0xff]  ;;  %v12131_v17 = vand.u32 4294901760, %v10384_v25 }
 0x343   : > { %12123 = vst [vmem:[#allocation73_spill] sm:$0xff] %v10576_v63  ;;  %6860 = vmatprep.subr.bf16.mxu0 %v12126_v40  ;;  %v5706_v6 = vsub.f32 %v10561_v9, %v11611_v59  ;;  %12127 = vst [vmem:[#allocation75_spill] sm:$0xff] %v10595_v16  ;;  %7172 = vmatprep.subr.bf16.mxu1 %v10580_v62  ;;  %v10603_v41 = vsub.f32 %v4126_v58, %v5634_v26  ;;  %v5560_v30 = vand.u32 4294901760, %v3102_v37  ;;  %v12141_v58 = vld [vmem:[#allocation122_spill] sm:$0xff] }
 0x344   : > { %7174 = vmatpush1.bf16.msra.mxu1 %v10496_v24  ;;  %v11613_v1 = vand.u32 4294901760, %v10597_v38  ;;  %v4127_v5 = vmul.f32 %v4101_v47, %v10370_v56  ;;  %v4772_v18 = vsub.f32 %v10384_v25, %v12131_v17 }
 0x345   : > { %v5707_v40 = vand.u32 4294901760, %v5706_v6  ;;  %12128 = vst [vmem:[#allocation209_spill] sm:$0xff] %v10603_v41  ;;  %v11616_v26 = vand.u32 4294901760, %v10603_v41  ;;  %v10618_v6 = vsub.f32 %v3102_v37, %v5560_v30  ;;  %v12136_v37 = vand.u32 4294901760, %v10426_v32 }
 0x346   : > { %6862 = vmatpush1.bf16.msra.mxu0 %v12129_v35  ;;  %v10620_v35 = vpack.c.bf16 %v5560_v30, %v5556_v44  ;;  %v5718_v11 = vsub.f32 %v10597_v38, %v11613_v1  ;;  %v5632_v47 = vand.u32 4294901760, %v4127_v5  ;;  %v4773_v56 = vand.u32 4294901760, %v4772_v18  ;;  %v12134_v44 = vld [vmem:[#allocation116_spill] sm:$0xff] }
 0x347   : > { %6864 = vmatprep.subr.bf16.mxu0 %v12130_v19  ;;  %v12133_v19 = vand.u32 4294901760, %v10400_v49  ;;  %v5934_v17 = vsub.f32 %v10603_v41, %v11616_v26  ;;  %v12135_v30 = vand.u32 4294901760, %v10405_v7  ;;  %v12137_v18 = vand.u32 4294901760, %v10387_v51 }
 0x348   : > { %12132 = vst [vmem:[#allocation72_spill] sm:$0xff] %v10620_v35  ;;  %7176 = vmatprep.subr.bf16.mxu1 %v10620_v35  ;;  %v5719_v24 = vand.u32 4294901760, %v5718_v11  ;;  %v10646_v26 = vsub.f32 %v4127_v5, %v5632_v47  ;;  %v12142_v7 = vand.u32 4294901760, %v10457_v43  ;;  %v12143_v32 = vand.u32 4294901760, %v10522_v27 }
 0x349   : > { %v4784_v59 = vsub.f32 %v10400_v49, %v12133_v19  ;;  %v10638_v1 = vpack.c.bf16 %v12136_v37, %v12135_v30  ;;  %v12138_v19 = vand.u32 4294901760, %v10419_v57  ;;  %7178 = vmatpush1.bf16.msra.mxu1 %v10595_v16  ;;  %v5935_v37 = vand.u32 4294901760, %v5934_v17 }
 0x34a   : > { %6866 = vmatpush1.bf16.msra.mxu0 %v12134_v44  ;;  %12140 = vst [vmem:[#allocation116_spill] sm:$0xff] %v10646_v26  ;;  %v10654_v30 = vpack.c.bf16 %v12143_v32, %v12142_v7  ;;  %7180 = vmatprep.subr.bf16.mxu1 %v10067_v34  ;;  %v10657_v57 = vpack.c.bf16 %v5632_v47, %v5628_v61  ;;  %v12144_v51 = vand.u32 4294901760, %v10476_v15  ;;  %v12145_v5 = vand.u32 4294901760, %v10534_v22 }
 0x34b   : > { %v10644_v39 = vpack.c.bf16 %v12138_v19, %v12137_v18  ;;  %6868 = vmatprep.subr.bf16.mxu0 %v12141_v58  ;;  %v4785_v44 = vand.u32 4294901760, %v4784_v59  ;;  %v5927_v59 = vand.u32 4294901760, %v10646_v26  ;;  %v12146_v27 = vand.u32 4294901760, %v10485_v21  ;;  %v12149_v19 = vld [vmem:[#allocation119_spill] sm:$0xff]  ;;  %v12152_v21 = vld [vmem:[#allocation124_spill] sm:$0xff] }
 0x34c   : > { %v5676_v11 = vsub.f32 %v10476_v15, %v12144_v51  ;;  %v5688_v58 = vsub.f32 %v10534_v22, %v12145_v5  ;;  %v12147_v17 = vand.u32 4294901760, %v10529_v52  ;;  %v12148_v61 = vand.u32 4294901760, %v10572_v31 }
 0x34d   : > { %12139 = vst [vmem:[#allocation120_spill] sm:$0xff] %v10644_v39  ;;  %v10666_v43 = vpack.c.bf16 %v4785_v44, %v4773_v56  ;;  %v12150_v51 = vand.u32 4294901760, %v10618_v6  ;;  %v10681_v56 = vpack.c.bf16 %v5719_v24, %v5707_v40  ;;  %v12151_v44 = vld [vmem:[#allocation24_spill] sm:$0xff]  ;;  %v12158_v34 = vand.u32 4294901760, %v10559_v48 }
 0x34e   : > { %v10672_v18 = vpack.c.bf16 %v12147_v17, %v12146_v27  ;;  %v5700_v47 = vsub.f32 %v10572_v31, %v12148_v61  ;;  %6870 = vmatpush1.bf16.msra.mxu0 %v12149_v19  ;;  %v5677_v7 = vand.u32 4294901760, %v5676_v11  ;;  %v5689_v32 = vand.u32 4294901760, %v5688_v58  ;;  %7182 = vmatpush1.bf16.msra.mxu1 %v12151_v44 }
 0x34f   : > { %v5712_v5 = vsub.f32 %v10618_v6, %v12150_v51  ;;  %6872 = vmatprep.subr.bf16.mxu0 %v12152_v21  ;;  %v12153_v17 = vand.u32 4294901760, %v10415_v28  ;;  %v12154_v11 = vand.u32 4294901760, %v10448_v12  ;;  %7184 = vmatprep.subr.bf16.mxu1 %v10081_v2  ;;  %v12155_v19 = vand.u32 4294901760, %v10438_v50  ;;  %v12161_v50 = vld [vmem:[#allocation121_spill] sm:$0xff] }
 0x350   : > { %v5701_v52 = vand.u32 4294901760, %v5700_v47  ;;  %v10694_v24 = vpack.c.bf16 %v5689_v32, %v5677_v7  ;;  %v12156_v47 = vand.u32 4294901760, %v10462_v23  ;;  %v12157_v21 = vand.u32 4294901760, %v10491_v60 }
 0x351   : > { %v5868_v61 = vsub.f32 %v10415_v28, %v12153_v17  ;;  %v5880_v58 = vsub.f32 %v10448_v12, %v12154_v11  ;;  %v5713_v40 = vand.u32 4294901760, %v5712_v5  ;;  %v5904_v11 = vsub.f32 %v10559_v48, %v12158_v34  ;;  %v12164_v34 = vld [vmem:[#allocation77_spill] sm:$0xff] }
 0x352   : > { %v10700_v51 = vpack.c.bf16 %v12156_v47, %v12155_v19  ;;  %v5892_v27 = vsub.f32 %v10491_v60, %v12157_v21  ;;  %v12159_v7 = vand.u32 4294901760, %v10507_v36  ;;  %v12160_v32 = vand.u32 4294901760, %v10547_v10  ;;  %6874 = vmatpush1.bf16.msra.mxu0 %v12161_v50  ;;  %v12163_v21 = vld [vmem:[#allocation154_spill] sm:$0xff] }
 0x353   : > { %v5869_v17 = vand.u32 4294901760, %v5868_v61  ;;  %v5881_v44 = vand.u32 4294901760, %v5880_v58  ;;  %v10715_v23 = vpack.c.bf16 %v5713_v40, %v5701_v52  ;;  %v12162_v47 = vand.u32 4294901760, %v10576_v63  ;;  %7186 = vmatpush1.bf16.msra.mxu1 %v12163_v21  ;;  %6876 = vmatprep.subr.bf16.mxu0 %v12164_v34 }
 0x354   : > { %v10712_v5 = vpack.c.bf16 %v12160_v32, %v12159_v7  ;;  %v5893_v19 = vand.u32 4294901760, %v5892_v27  ;;  %v5928_v58 = vsub.f32 %v10646_v26, %v5927_v59  ;;  %v5905_v10 = vand.u32 4294901760, %v5904_v11  ;;  %7188 = vmatprep.subr.bf16.mxu1 %v10105_v53 }
 0x355   : > { %v5916_v61 = vsub.f32 %v10576_v63, %v12162_v47  ;;  %v10723_v36 = vpack.c.bf16 %v5881_v44, %v5869_v17  ;;  %v12165_v7 = vand.u32 4294901760, %v10589_v20  ;;  %v12166_v17 = vand.u32 4294901760, %v10476_v15 }
 0x356   : > { %v5929_v40 = vand.u32 4294901760, %v5928_v58  ;;  %v10736_v44 = vpack.c.bf16 %v5905_v10, %v5893_v19  ;;  %v12167_v11 = vand.u32 4294901760, %v10534_v22  ;;  %v12169_v58 = vld [vmem:[#allocation74_spill] sm:$0xff]  ;;  %v12171_v19 = vand.u32 4294901760, %v10498_v8 }
 0x357   : > { %v10727_v32 = vpack.c.bf16 %v5935_v37, %v12165_v7  ;;  %v5917_v27 = vand.u32 4294901760, %v5916_v61  ;;  %6878 = vmatpush1.bf16.msra.mxu0 %v12169_v58  ;;  %v12170_v7 = vand.u32 4294901760, %v10454_v14  ;;  %v12173_v20 = vand.u32 4294901760, %v10572_v31  ;;  %7190 = vmatpush1.bf16.msra.mxu1 %v10050_v3 }
 0x358   : > { %v10746_v61 = vpack.c.bf16 %v12167_v11, %v12166_v17  ;;  %v12174_v37 = vand.u32 4294901760, %v10618_v6  ;;  %v12176_v50 = vand.u32 4294901760, %v10561_v9  ;;  %v12177_v17 = vand.u32 4294901760, %v10597_v38 }
 0x359   : > { %v10749_v34 = vpack.c.bf16 %v5929_v40, %v5917_v27  ;;  %v10755_v10 = vpack.c.bf16 %v12171_v19, %v12170_v7  ;;  %v12179_v27 = vld [vmem:[#allocation79_spill] sm:$0xff]  ;;  %v12180_v40 = vand.u32 4294901760, %v10384_v25  ;;  %v12181_v58 = vand.u32 4294901760, %v10400_v49 }
 0x35a   : > { %12168 = vst [vmem:[#allocation122_spill] sm:$0xff] %v10746_v61  ;;  %v10761_v47 = vpack.c.bf16 %v12174_v37, %v12173_v20  ;;  %v10767_v11 = vpack.c.bf16 %v12177_v17, %v12176_v50  ;;  %6880 = vmatprep.subr.bf16.mxu0 %v12179_v27  ;;  %v12183_v19 = vand.u32 4294901760, %v10377_v42  ;;  %v12184_v20 = vand.u32 4294901760, %v10394_v13  ;;  %v12218_v61 = vld [vmem:[#allocation176_spill] sm:$0xff] }
 0x35b   : > { %12172 = vst [vmem:[#allocation119_spill] sm:$0xff] %v10755_v10  ;;  %v10775_v7 = vpack.c.bf16 %v12181_v58, %v12180_v40  ;;  %v12186_v52 = vand.u32 4294901760, %v10415_v28  ;;  %v12187_v50 = vand.u32 4294901760, %v10448_v12  ;;  %v12189_v27 = vand.u32 4294901760, %v10407_v4  ;;  %v12250_v28 = vld [vmem:[#allocation56_spill] sm:$0xff] }
 0x35c   : > { %12175 = vst [vmem:[#allocation124_spill] sm:$0xff] %v10761_v47  ;;  %12178 = vst [vmem:[#allocation121_spill] sm:$0xff] %v10767_v11  ;;  %v10781_v37 = vpack.c.bf16 %v12184_v20, %v12183_v19  ;;  %v12190_v11 = vand.u32 4294901760, %v10432_v55  ;;  %v12192_v40 = vand.u32 4294901760, %v10491_v60  ;;  %v12193_v58 = vand.u32 4294901760, %v10559_v48  ;;  %v12246_v48 = vld [vmem:[#allocation49_spill] sm:$0xff] }
 0x35d   : > { %12182 = vst [vmem:[#allocation77_spill] sm:$0xff] %v10775_v7  ;;  %v10787_v17 = vpack.c.bf16 %v12187_v50, %v12186_v52  ;;  %v12195_v19 = vand.u32 4294901760, %v10468_v29  ;;  %v12196_v20 = vand.u32 4294901760, %v10517_v0  ;;  %v12198_v52 = vand.u32 4294901760, %v10576_v63  ;;  %v12231_v63 = vld [vmem:[#allocation33_spill] sm:$0xff] }
 0x35e   : > { %12185 = vst [vmem:[#allocation74_spill] sm:$0xff] %v10781_v37  ;;  %v10793_v47 = vpack.c.bf16 %v12190_v11, %v12189_v27  ;;  %v10799_v7 = vpack.c.bf16 %v12193_v58, %v12192_v40  ;;  %v12201_v11 = vand.u32 4294901760, %v10603_v41  ;;  %v12204_v40 = vld [vmem:[#allocation80_spill] sm:$0xff]  ;;  %v12205_v58 = vld [vmem:[#allocation78_spill] sm:$0xff]  ;;  %v12230_v41 = vld [vmem:[#allocation37_spill] sm:$0xff] }
 0x35f   : > { %12188 = vst [vmem:[#allocation79_spill] sm:$0xff] %v10787_v17  ;;  %v10805_v37 = vpack.c.bf16 %v12196_v20, %v12195_v19  ;;  %v10809_v50 = vpack.c.bf16 %v5927_v59, %v12198_v52  ;;  %v12200_v17 = vand.u32 4294901760, %v10563_v45  ;;  %v12206_v19 = vld [vmem:[#allocation4_spill] sm:$0xff]  ;;  %v12207_v20 = vld [vmem:[#allocation198_spill] sm:$0xff]  ;;  %v12208_v52 = vld [vmem:[#allocation175_spill] sm:$0xff] }
 0x360   : > { %12191 = vst [vmem:[#allocation210_spill] sm:$0xff] %v10793_v47  ;;  %12194 = vst [vmem:[#allocation211_spill] sm:$0xff] %v10799_v7  ;;  %v12203_v47 = vld [vmem:[#allocation76_spill] sm:$0xff]  ;;  %v3537_v59 = vrot.slane %v12207_v20, %v12206_v19  ;;  %v12214_v7 = vld [vmem:[#allocation173_spill] sm:$0xff] }
 0x361   : > { %12197 = vst [vmem:[#allocation212_spill] sm:$0xff] %v10805_v37  ;;  %12199 = vst [vmem:[#allocation213_spill] sm:$0xff] %v10809_v50  ;;  %v10815_v27 = vpack.c.bf16 %v12201_v11, %v12200_v17  ;;  %6882 = vmatpush1.bf16.msra.mxu0 %v12203_v47  ;;  %v12209_v50 = vld [vmem:[#allocation14_spill] sm:$0xff]  ;;  %v12211_v47 = vld [vmem:[#allocation197_spill] sm:$0xff] }
 0x362   : > { %6884 = vmatprep.subr.bf16.mxu0 %v12204_v40  ;;  %v3541_v37 = vrot.slane %v12209_v50, %v12206_v19  ;;  %v12210_v17 = vld [vmem:[#allocation186_spill] sm:$0xff]  ;;  %v12212_v40 = vsub.f32 1.0, %v12211_v47  ;;  %v12215_v20 = vld [vmem:[#allocation8_spill] sm:$0xff] }
 0x363   : > { %12202 = vst [vmem:[#allocation214_spill] sm:$0xff] %v10815_v27  ;;  %v3511_v11 = vrot.slane %v12210_v17, %v12206_v19  ;;  %vm3542_vm1 = vcmp.eq.f32.partialorder %v12215_v20, %v3537_v59 }
 0x364   : > { %v3523_v27 = vrot.slane %v12212_v40, %v12206_v19  ;;  %vm3543_vm3 = vcmp.eq.f32.partialorder %v12215_v20, %v3541_v37 }
 0x365   : > { %6886 = vmatpush1.bf16.msra.mxu0 %v12205_v58  ;;  %vm3516_vm4 = vcmp.eq.f32.partialorder %v12215_v20, %v3511_v11 }
 0x366   : > { %6888 = vmatprep.subr.bf16.mxu0 %v10128_v54  ;;  %v3549_v54 = vrot.slane %v12211_v47, %v12206_v19  ;;  %v12219_v47 = vld [vmem:[#allocation9_spill] sm:$0xff]  ;;  %v3528_v40 = vsel %vm3516_vm4, %v3523_v27, 0.0 }
 0x367   : > { %vm3544_vm5 = vcmp.eq.f32.partialorder %v12219_v47, %v3537_v59  ;;  %vm3545_vm7 = vcmp.eq.f32.partialorder %v12219_v47, %v3541_v37  ;;  %vm3518_vm8 = vcmp.eq.f32.partialorder %v12219_v47, %v3511_v11  ;;  %v12222_v37 = vld [vmem:[#allocation123_spill] sm:$0xff]  ;;  %v12223_v11 = vld [vmem:[#allocation130_spill] sm:$0xff] }
 0x369   : > { %6890 = vmatpush1.bf16.msra.mxu0 %v10099_v46  ;;  %v12213_v46 = vld [vmem:[#allocation196_spill] sm:$0xff] }
 0x36a   : > { %6892 = vmatprep.subr.bf16.mxu0 %v12208_v52  ;;  %v3515_v58 = vrot.slane %v12213_v46, %v12206_v19  ;;  %v12216_v52 = vld [vmem:[#allocation199_spill] sm:$0xff]  ;;  %v3554_v46 = vsel %vm3542_vm1, %v3549_v54, 0.0 }
 0x36b   : > { %v12217_v50 = vsub.f32 1.0, %v12216_v52  ;;  %v3553_v17 = vrot.slane %v12216_v52, %v12206_v19  ;;  %v3556_v52 = vsel %vm3544_vm5, %v3549_v54, 0.0  ;;  %v10853_v53 = vadd.f32 %v3554_v46, %v3528_v40  ;;  %v12224_v46 = vld [vmem:[#allocation126_spill] sm:$0xff] }
 0x36c   : > { %vm3517_vm6 = vcmp.eq.f32.partialorder %v12215_v20, %v3515_v58  ;;  %vm3519_vm9 = vcmp.eq.f32.partialorder %v12219_v47, %v3515_v58 }
 0x36d   : > { %6894 = vmatpush1.bf16.msra.mxu0 %v12214_v7  ;;  %v3527_v10 = vrot.slane %v12217_v50, %v12206_v19  ;;  %v12220_v7 = vld [vmem:[#allocation174_spill] sm:$0xff]  ;;  %v3555_v3 = vsel %vm3543_vm3, %v3553_v17, 0.0  ;;  %v12221_v19 = vld [vmem:[#allocation127_spill] sm:$0xff]  ;;  %v3557_v21 = vsel %vm3545_vm7, %v3553_v17, 0.0 }
 0x36e   : > { %6896 = vmatprep.subr.bf16.mxu0 %v12218_v61  ;;  %v3530_v61 = vsel %vm3518_vm8, %v3523_v27, 0.0 }
 0x36f   : > { %v3529_v50 = vsel %vm3517_vm6, %v3527_v10, 0.0  ;;  %v3531_v59 = vsel %vm3519_vm9, %v3527_v10, 0.0  ;;  %v10859_v35 = vadd.f32 %v3556_v52, %v3530_v61 }
 0x370   : > { %v10855_v20 = vadd.f32 %v3555_v3, %v3529_v50  ;;  %v10863_v58 = vadd.f32 %v3557_v21, %v3531_v59 }
 0x371   : > { %6898 = vmatpush1.bf16.msra.mxu0 %v12220_v7  ;;  %v3734_v2 = vpop.f32.mrb[48].mxu1 }
 0x372   : > { %6900 = vmatprep.subr.bf16.mxu0 %v12221_v19  ;;  %v3775_v7 = vmul.f32 %v3734_v2, %v10853_v53  ;;  %v3736_v16 = vpop.f32.mrb[49].mxu1  ;;  %v12225_v19 = vld [vmem:[#allocation131_spill] sm:$0xff] }
 0x373   : > { %v3776_v27 = vmul.f32 %v3736_v16, %v10855_v20  ;;  %v3738_v54 = vpop.f32.mrb[50].mxu1 }
 0x374   : > { %v5590_v47 = vand.u32 4294901760, %v3775_v7  ;;  %v3777_v10 = vmul.f32 %v3738_v54, %v10859_v35  ;;  %v3740_v17 = vpop.f32.mrb[51].mxu1 }
 0x375   : > { %6902 = vmatpush1.bf16.msra.mxu0 %v12222_v37  ;;  %v5588_v3 = vand.u32 4294901760, %v3776_v27  ;;  %v3778_v40 = vmul.f32 %v3740_v17, %v10863_v58 }
 0x376   : > { %6904 = vmatprep.subr.bf16.mxu0 %v12223_v11  ;;  %v10868_v2 = vsub.f32 %v3775_v7, %v5590_v47  ;;  %v5594_v50 = vand.u32 4294901760, %v3777_v10  ;;  %v12228_v7 = vld [vmem:[#allocation128_spill] sm:$0xff] }
 0x377   : > { %v10871_v61 = vsub.f32 %v3776_v27, %v5588_v3  ;;  %v5592_v16 = vand.u32 4294901760, %v3778_v40 }
 0x378   : > { %v11629_v21 = vand.u32 4294901760, %v10868_v2  ;;  %v10874_v52 = vpack.c.bf16 %v5594_v50, %v5590_v47  ;;  %v10876_v59 = vsub.f32 %v3777_v10, %v5594_v50 }
 0x379   : > { %6906 = vmatpush1.bf16.msra.mxu0 %v12224_v46  ;;  %v11632_v37 = vand.u32 4294901760, %v10871_v61  ;;  %v10879_v11 = vsub.f32 %v3778_v40, %v5592_v16  ;;  %v3744_v54 = vpop.f32.mrb[52].mxu1  ;;  %v10881_v17 = vpack.c.bf16 %v5592_v16, %v5588_v3 }
 0x37a   : > { %6908 = vmatprep.subr.bf16.mxu0 %v12225_v19  ;;  %12226 = vst [vmem:[#allocation76_spill] sm:$0xff] %v10874_v52  ;;  %v5802_v27 = vsub.f32 %v10868_v2, %v11629_v21  ;;  %v11636_v46 = vand.u32 4294901760, %v10876_v59  ;;  %v3779_v10 = vmul.f32 %v3744_v54, %v10853_v53  ;;  %v3746_v50 = vpop.f32.mrb[53].mxu1 }
 0x37b   : > { %12227 = vst [vmem:[#allocation80_spill] sm:$0xff] %v10881_v17  ;;  %v3780_v3 = vmul.f32 %v3746_v50, %v10855_v20  ;;  %v3748_v19 = vpop.f32.mrb[54].mxu1  ;;  %7192 = vmatprep.subr.bf16.mxu1 %v10881_v17  ;;  %v5796_v16 = vsub.f32 %v10871_v61, %v11632_v37  ;;  %v12229_v17 = vand.u32 4294901760, %v10879_v11 }
 0x37c   : > { %v5814_v54 = vsub.f32 %v10876_v59, %v11636_v46  ;;  %v5598_v47 = vand.u32 4294901760, %v3779_v10  ;;  %v3750_v21 = vpop.f32.mrb[55].mxu1  ;;  %7194 = vmatpush1.bf16.msra.mxu1 %v10874_v52  ;;  %v5803_v62 = vand.u32 4294901760, %v5802_v27 }
 0x37d   : > { %6910 = vmatpush1.bf16.msra.mxu0 %v12228_v7  ;;  %v5596_v50 = vand.u32 4294901760, %v3780_v3  ;;  %v3782_v40 = vmul.f32 %v3750_v21, %v10863_v58  ;;  %v5808_v37 = vsub.f32 %v10879_v11, %v12229_v17  ;;  %v5797_v29 = vand.u32 4294901760, %v5796_v16 }
 0x37e   : > { %6912 = vmatprep.subr.bf16.mxu0 %v10666_v43  ;;  %v3781_v43 = vmul.f32 %v3748_v19, %v10859_v35  ;;  %v5815_v45 = vand.u32 4294901760, %v5814_v54  ;;  %v10910_v7 = vsub.f32 %v3779_v10, %v5598_v47  ;;  %v12232_v19 = vpack.c.bf16 %v12230_v41, %v12231_v63 }
 0x37f   : > { %v10915_v26 = vsub.f32 %v3780_v3, %v5596_v50  ;;  %v5600_v52 = vand.u32 4294901760, %v3782_v40  ;;  %v5809_v21 = vand.u32 4294901760, %v5808_v37  ;;  %v12238_v3 = vld [vmem:[#allocation36_spill] sm:$0xff]  ;;  %v12239_v37 = vld [vmem:[#allocation31_spill] sm:$0xff] }
 0x380   : > { %v5602_v46 = vand.u32 4294901760, %v3781_v43  ;;  %v11645_v0 = vand.u32 4294901760, %v10910_v7  ;;  %v10922_v27 = vpack.c.bf16 %v5815_v45, %v5803_v62  ;;  %v12240_v16 = vpack.c.bf16 %v12238_v3, %v12239_v37  ;;  %v12247_v37 = vld [vmem:[#allocation43_spill] sm:$0xff] }
 0x381   : > { %6914 = vmatpush1.bf16.msra.mxu0 %v10638_v1  ;;  %v12235_v1 = vld [vmem:[#allocation29_spill] sm:$0xff]  ;;  %v11646_v10 = vand.u32 4294901760, %v10915_v26  ;;  %v10926_v54 = vsub.f32 %v3782_v40, %v5600_v52  ;;  %v10928_v41 = vpack.c.bf16 %v5600_v52, %v5596_v50  ;;  %v10930_v63 = vpack.c.bf16 %v5809_v21, %v5797_v29  ;;  %v12241_v40 = vld [vmem:[#allocation132_spill] sm:$0xff] }
 0x382   : > { %6916 = vmatprep.subr.bf16.mxu0 %v12232_v19  ;;  %v10918_v60 = vpack.c.bf16 %v5602_v46, %v5598_v47  ;;  %v10920_v17 = vsub.f32 %v3781_v43, %v5602_v46  ;;  %v5826_v46 = vsub.f32 %v10910_v7, %v11645_v0  ;;  %v3754_v47 = vpop.f32.mrb[56].mxu1  ;;  %v12242_v52 = vld [vmem:[#allocation52_spill] sm:$0xff]  ;;  %v12243_v43 = vld [vmem:[#allocation45_spill] sm:$0xff]  ;;  %v12248_v4 = vpack.c.bf16 %v12246_v48, %v12247_v37 }
 0x383   : > { %12236 = vst [vmem:[#allocation198_spill] sm:$0xff] %v10926_v54  ;;  %12237 = vst [vmem:[#allocation175_spill] sm:$0xff] %v10928_v41  ;;  %v12244_v29 = vpack.c.bf16 %v12242_v52, %v12243_v43  ;;  %v5831_v50 = vand.u32 4294901760, %v10926_v54  ;;  %v3783_v19 = vmul.f32 %v3754_v47, %v10853_v53  ;;  %v3756_v21 = vpop.f32.mrb[57].mxu1  ;;  %7196 = vmatprep.subr.bf16.mxu1 %v10928_v41  ;;  %v12245_v43 = vld [vmem:[#allocation27_spill] sm:$0xff] }
 0x384   : > { %12233 = vst [vmem:[#allocation78_spill] sm:$0xff] %v10918_v60  ;;  %12234 = vst [vmem:[#allocation4_spill] sm:$0xff] %v10920_v17  ;;  %4796 = vmatmul.mubr.f32.vlgmr.msra.gmra.mrb[6].mxu0 %v12235_v1  ;;  %v5837_v45 = vand.u32 4294901760, %v10920_v17  ;;  %v5820_v3 = vsub.f32 %v10915_v26, %v11646_v10  ;;  %v3784_v62 = vmul.f32 %v3756_v21, %v10855_v20  ;;  %v3758_v52 = vpop.f32.mrb[58].mxu1  ;;  %7198 = vmatpush1.bf16.msra.mxu1 %v10918_v60  ;;  %v12249_v60 = vld [vmem:[#allocation64_spill] sm:$0xff] }
 0x385   : > { %6918 = vmatpush1.bf16.msra.mxu0 %v12240_v16  ;;  %4996 = vmatprep.mubr.f32.mxu0 %v12241_v40  ;;  %v5827_v53 = vand.u32 4294901760, %v5826_v46  ;;  %v5606_v47 = vand.u32 4294901760, %v3783_v19  ;;  %v3785_v0 = vmul.f32 %v3758_v52, %v10859_v35  ;;  %v3760_v1 = vpop.f32.mrb[59].mxu1  ;;  %v5832_v10 = vsub.f32 %v10926_v54, %v5831_v50 }
 0x386   : > { %6920 = vmatprep.subr.bf16.mxu0 %v12244_v29  ;;  %v5838_v16 = vsub.f32 %v10920_v17, %v5837_v45  ;;  %v10957_v29 = vand.u32 4294901760, %v12245_v43  ;;  %v5604_v55 = vand.u32 4294901760, %v3784_v62  ;;  %v3786_v20 = vmul.f32 %v3760_v1, %v10863_v58 }
 0x387   : > { %v5821_v21 = vand.u32 4294901760, %v5820_v3  ;;  %v12251_v12 = vpack.c.bf16 %v12249_v60, %v12250_v28  ;;  %v10968_v46 = vsub.f32 %v3783_v19, %v5606_v47  ;;  %v5610_v17 = vand.u32 4294901760, %v3785_v0  ;;  %v12262_v3 = vld [vmem:[#allocation60_spill] sm:$0xff] }
 0x388   : > { %v5839_v41 = vand.u32 4294901760, %v5838_v16  ;;  %v5833_v35 = vand.u32 4294901760, %v5832_v10  ;;  %v12253_v52 = vand.u32 4294901760, %v10868_v2  ;;  %v12254_v16 = vand.u32 4294901760, %v10876_v59 }
 0x389   : > { %6922 = vmatpush1.bf16.msra.mxu0 %v12248_v4  ;;  %12252 = vst [vmem:[#allocation14_spill] sm:$0xff] %v10968_v46  ;;  %v10976_v48 = vsub.f32 %v3784_v62, %v5604_v55  ;;  %v5608_v4 = vand.u32 4294901760, %v3786_v20  ;;  %v12257_v58 = vand.u32 4294901760, %v10871_v61  ;;  %v12258_v60 = vand.u32 4294901760, %v10879_v11  ;;  %v12263_v62 = vld [vmem:[#allocation54_spill] sm:$0xff] }
 0x38a   : > { %6924 = vmatprep.subr.bf16.mxu0 %v12251_v12  ;;  %v10974_v54 = vpack.c.bf16 %v12254_v16, %v12253_v52  ;;  %v10978_v37 = vpack.c.bf16 %v5839_v41, %v5827_v53  ;;  %v5849_v12 = vand.u32 4294901760, %v10968_v46  ;;  %v10987_v1 = vpack.c.bf16 %v5610_v17, %v5606_v47 }
 0x38b   : > { %12256 = vst [vmem:[#allocation197_spill] sm:$0xff] %v10976_v48  ;;  %v10984_v28 = vpack.c.bf16 %v12258_v60, %v12257_v58  ;;  %v10989_v10 = vsub.f32 %v3785_v0, %v5610_v17  ;;  %v10991_v19 = vpack.c.bf16 %v5833_v35, %v5821_v21  ;;  %v12264_v52 = vpack.c.bf16 %v12262_v3, %v12263_v62  ;;  %v12266_v60 = vld [vmem:[#allocation15_spill] sm:$0xff]  ;;  %v12270_v3 = vld [vmem:[#allocation34_spill] sm:$0xff] }
 0x38c   : > { %12255 = vst [vmem:[#allocation186_spill] sm:$0xff] %v10974_v54  ;;  %12260 = vst [vmem:[#allocation173_spill] sm:$0xff] %v10987_v1  ;;  %v5843_v41 = vand.u32 4294901760, %v10976_v48  ;;  %v10997_v53 = vsub.f32 %v3786_v20, %v5608_v4  ;;  %v10999_v16 = vpack.c.bf16 %v5608_v4, %v5604_v55  ;;  %v5850_v58 = vsub.f32 %v10968_v46, %v5849_v12  ;;  %v12267_v54 = vld [vmem:[#allocation3_spill] sm:$0xff]  ;;  %v12269_v4 = vld [vmem:[#allocation6_spill] sm:$0xff] }
 0x38d   : > { %12259 = vst [vmem:[#allocation196_spill] sm:$0xff] %v10984_v28  ;;  %12261 = vst [vmem:[#allocation8_spill] sm:$0xff] %v10989_v10  ;;  %6926 = vmatpush1.bf16.msra.mxu0 %v12264_v52  ;;  %v12268_v47 = vpack.c.bf16 %v12266_v60, %v12267_v54  ;;  %v5861_v0 = vand.u32 4294901760, %v10989_v10  ;;  %v11012_v20 = vsub.f32 %v12245_v43, %v10957_v29  ;;  %v12273_v17 = vld [vmem:[#allocation94_spill] sm:$0xff]  ;;  %v12275_v35 = vand.u32 4294901760, %v10910_v7 }
 0x38e   : > { %12265 = vst [vmem:[#allocation199_spill] sm:$0xff] %v10999_v16  ;;  %v5855_v21 = vand.u32 4294901760, %v10997_v53  ;;  %7200 = vmatprep.subr.bf16.mxu1 %v10999_v16  ;;  %v5844_v55 = vsub.f32 %v10976_v48, %v5843_v41  ;;  %v12271_v62 = vpack.c.bf16 %v12269_v4, %v12270_v3  ;;  %v5851_v60 = vand.u32 4294901760, %v5850_v58 }
 0x38f   : > { %6928 = vmatprep.subr.bf16.mxu0 %v12268_v47  ;;  %v5862_v54 = vsub.f32 %v10989_v10, %v5861_v0  ;;  %7202 = vmatpush1.bf16.msra.mxu1 %v10987_v1  ;;  %v12272_v47 = vld [vmem:[#allocation101_spill] sm:$0xff]  ;;  %v11029_v16 = vpack.c.bf16 %v5837_v45, %v12275_v35  ;;  %v5664_v1 = vand.u32 4294901760, %v11012_v20  ;;  %v12276_v4 = vand.u32 4294901760, %v10915_v26 }
 0x390   : > { %7204 = vmatprep.subr.bf16.mxu1 %v10644_v39  ;;  %v5856_v52 = vsub.f32 %v10997_v53, %v5855_v21  ;;  %v12274_v28 = vpack.c.bf16 %v12272_v47, %v12273_v17  ;;  %v5845_v46 = vand.u32 4294901760, %v5844_v55  ;;  %v12279_v39 = vld [vmem:[#allocation92_spill] sm:$0xff]  ;;  %v12281_v45 = vld [vmem:[#allocation113_spill] sm:$0xff]  ;;  %v12286_v47 = vld [vmem:[#allocation103_spill] sm:$0xff] }
 0x391   : > { %6930 = vmatpush1.bf16.msra.mxu0 %v12271_v62  ;;  %v5863_v43 = vand.u32 4294901760, %v5862_v54  ;;  %v11034_v3 = vpack.c.bf16 %v5831_v50, %v12276_v4  ;;  %v12277_v62 = vld [vmem:[#allocation200_spill] sm:$0xff]  ;;  %v12278_v54 = vld [vmem:[#allocation98_spill] sm:$0xff]  ;;  %v12282_v17 = vld [vmem:[#allocation105_spill] sm:$0xff]  ;;  %v5665_v55 = vsub.f32 %v11012_v20, %v5664_v1  ;;  %v11057_v4 = vpack.c.bf16 %v5855_v21, %v5843_v41 }
 0x392   : > { %6932 = vmatprep.subr.bf16.mxu0 %v12274_v28  ;;  %v5857_v10 = vand.u32 4294901760, %v5856_v52  ;;  %v12280_v48 = vpack.c.bf16 %v12278_v54, %v12279_v39  ;;  %v12283_v35 = vpack.c.bf16 %v12281_v45, %v12282_v17  ;;  %v12284_v50 = vld [vmem:[#allocation207_spill] sm:$0xff]  ;;  %v12285_v52 = vld [vmem:[#allocation109_spill] sm:$0xff]  ;;  %v12288_v39 = vld [vmem:[#allocation42_spill] sm:$0xff] }
 0x393   : > { %7206 = vmatpush1.bf16.msra.mxu1 %v12277_v62  ;;  %v7245_v58 = vpack.c.bf16 %v5863_v43, %v5851_v60  ;;  %v12287_v60 = vpack.c.bf16 %v12285_v52, %v12286_v47  ;;  %v12291_v54 = vld [vmem:[#allocation41_spill] sm:$0xff]  ;;  %v12292_v45 = vld [vmem:[#allocation38_spill] sm:$0xff]  ;;  %v12295_v52 = vld [vmem:[#allocation47_spill] sm:$0xff] }
 0x394   : > { %7208 = vmatprep.subr.bf16.mxu1 %v10654_v30  ;;  %v7243_v28 = vpack.c.bf16 %v5857_v10, %v5845_v46  ;;  %v11055_v46 = vpack.c.bf16 %v5861_v0, %v5849_v12  ;;  %v5666_v10 = vand.u32 4294901760, %v5665_v55  ;;  %v12293_v17 = vpack.c.bf16 %v12291_v54, %v12292_v45  ;;  %v12297_v12 = vld [vmem:[#allocation30_spill] sm:$0xff]  ;;  %v12298_v0 = vld [vmem:[#allocation51_spill] sm:$0xff]  ;;  %v12299_v41 = vld [vmem:[#allocation44_spill] sm:$0xff] }
 0x395   : > { %6934 = vmatpush1.bf16.msra.mxu0 %v12280_v48  ;;  %v12289_v48 = vld [vmem:[#allocation39_spill] sm:$0xff]  ;;  %v12300_v21 = vpack.c.bf16 %v12298_v0, %v12299_v41  ;;  %v12301_v55 = vld [vmem:[#allocation68_spill] sm:$0xff] }
 0x396   : > { %6936 = vmatprep.subr.bf16.mxu0 %v12283_v35  ;;  %v12290_v43 = vpack.c.bf16 %v12288_v39, %v12289_v48  ;;  %v12294_v35 = vld [vmem:[#allocation53_spill] sm:$0xff]  ;;  %v12305_v48 = vld [vmem:[#allocation55_spill] sm:$0xff]  ;;  %v12309_v54 = vld [vmem:[#allocation20_spill] sm:$0xff] }
 0x397   : > { %7210 = vmatpush1.bf16.msra.mxu1 %v12284_v50  ;;  %v12296_v47 = vpack.c.bf16 %v12294_v35, %v12295_v52  ;;  %v12312_v35 = vld [vmem:[#allocation21_spill] sm:$0xff]  ;;  %v12316_v0 = vld [vmem:[#allocation156_spill] sm:$0xff] }
 0x398   : > { %7212 = vmatprep.subr.bf16.mxu1 %v10657_v57 }
 0x399   : > { %6938 = vmatpush1.bf16.msra.mxu0 %v12287_v60  ;;  %v12302_v60 = vld [vmem:[#allocation57_spill] sm:$0xff] }
 0x39a   : > { %6940 = vmatprep.subr.bf16.mxu0 %v12290_v43  ;;  %v12303_v39 = vpack.c.bf16 %v12301_v55, %v12302_v60  ;;  %v12320_v55 = vld [vmem:[#allocation153_spill] sm:$0xff]  ;;  %v12321_v60 = vld [vmem:[#allocation147_spill] sm:$0xff] }
 0x39b   : > { %7214 = vmatpush1.bf16.msra.mxu1 %v10599_v33 }
 0x39c   : > { %7216 = vmatprep.subr.bf16.mxu1 %v10694_v24  ;;  %v12304_v24 = vld [vmem:[#allocation62_spill] sm:$0xff] }
 0x39d   : > { %6942 = vmatpush1.bf16.msra.mxu0 %v12293_v17  ;;  %v12306_v43 = vpack.c.bf16 %v12304_v24, %v12305_v48  ;;  %v12311_v17 = vld [vmem:[#allocation177_spill] sm:$0xff]  ;;  %v12323_v24 = vld [vmem:[#allocation187_spill] sm:$0xff]  ;;  %v12324_v48 = vld [vmem:[#allocation168_spill] sm:$0xff] }
 0x39e   : > { %6944 = vmatprep.subr.bf16.mxu0 %v12296_v47  ;;  %5667 = vmatmul.mubr.f32.vlgmr.msra.gmra.mrb[60].mxu1 %v5666_v10  ;;  %v12307_v10 = vld [vmem:[#allocation180_spill] sm:$0xff]  ;;  %v12315_v47 = vld [vmem:[#allocation182_spill] sm:$0xff] }
 0x39f   : > { %7218 = vmatpush1.bf16.msra.mxu1 %v10672_v18  ;;  %5958 = vmatprep.mubr.f32.mxu1 %v12297_v12  ;;  %v12308_v18 = vld [vmem:[#allocation7_spill] sm:$0xff] }
 0x3a0   : > { %7220 = vmatprep.subr.bf16.mxu1 %v10715_v23  ;;  %v12310_v45 = vpack.c.bf16 %v12308_v18, %v12309_v54  ;;  %v12313_v23 = vld [vmem:[#allocation13_spill] sm:$0xff]  ;;  %v12327_v18 = vld [vmem:[#allocation179_spill] sm:$0xff]  ;;  %v12328_v54 = vld [vmem:[#allocation164_spill] sm:$0xff] }
 0x3a1   : > { %6946 = vmatpush1.bf16.msra.mxu0 %v12300_v21  ;;  %v12314_v52 = vpack.c.bf16 %v12312_v35, %v12313_v23  ;;  %v12319_v21 = vld [vmem:[#allocation178_spill] sm:$0xff]  ;;  %v12331_v35 = vld [vmem:[#allocation19_spill] sm:$0xff]  ;;  %v12332_v23 = vld [vmem:[#allocation16_spill] sm:$0xff] }
 0x3a2   : > { %6948 = vmatprep.subr.bf16.mxu0 %v12303_v39  ;;  %v12322_v39 = vpack.c.bf16 %v12320_v55, %v12321_v60  ;;  %v12340_v60 = vld [vmem:[#allocation100_spill] sm:$0xff] }
 0x3a3   : > { %7222 = vmatpush1.bf16.msra.mxu1 %v10681_v56  ;;  %v12317_v56 = vld [vmem:[#allocation149_spill] sm:$0xff] }
 0x3a4   : > { %7224 = vmatprep.subr.bf16.mxu1 %v12307_v10  ;;  %v12318_v41 = vpack.c.bf16 %v12316_v0, %v12317_v56  ;;  %v12335_v0 = vld [vmem:[#allocation11_spill] sm:$0xff] }
 0x3a5   : > { %6950 = vmatpush1.bf16.msra.mxu0 %v12306_v43  ;;  %v12325_v43 = vld [vmem:[#allocation160_spill] sm:$0xff] }
 0x3a6   : > { %6952 = vmatprep.subr.bf16.mxu0 %v12310_v45  ;;  %v12326_v10 = vpack.c.bf16 %v12324_v48, %v12325_v43  ;;  %v12329_v45 = vld [vmem:[#allocation158_spill] sm:$0xff]  ;;  %v12346_v43 = vld [vmem:[#allocation111_spill] sm:$0xff] }
 0x3a7   : > { %7226 = vmatpush1.bf16.msra.mxu1 %v12311_v17  ;;  %v12330_v17 = vpack.c.bf16 %v12328_v54, %v12329_v45  ;;  %v12344_v48 = vld [vmem:[#allocation106_spill] sm:$0xff]  ;;  %v12353_v54 = vld [vmem:[#allocation35_spill] sm:$0xff] }
 0x3a8   : > { %7228 = vmatprep.subr.bf16.mxu1 %v12315_v47  ;;  %v12334_v47 = vld [vmem:[#allocation17_spill] sm:$0xff]  ;;  %v12367_v45 = vld [vmem:[#allocation22_spill] sm:$0xff] }
 0x3a9   : > { %6954 = vmatpush1.bf16.msra.mxu0 %v12314_v52  ;;  %v12333_v52 = vpack.c.bf16 %v12331_v35, %v12332_v23  ;;  %v12336_v56 = vpack.c.bf16 %v12334_v47, %v12335_v0  ;;  %v12371_v35 = vld [vmem:[#allocation23_spill] sm:$0xff]  ;;  %v12379_v0 = vld [vmem:[#allocation148_spill] sm:$0xff] }
 0x3aa   : > { %6956 = vmatprep.subr.bf16.mxu0 %v12318_v41  ;;  %v12337_v41 = vld [vmem:[#allocation102_spill] sm:$0xff] }
 0x3ab   : > { %7230 = vmatpush1.bf16.msra.mxu1 %v12319_v21  ;;  %v12338_v21 = vld [vmem:[#allocation96_spill] sm:$0xff] }
 0x3ac   : > { %7232 = vmatprep.subr.bf16.mxu1 %v12323_v24  ;;  %v12339_v55 = vpack.c.bf16 %v12337_v41, %v12338_v21  ;;  %v12343_v24 = vld [vmem:[#allocation117_spill] sm:$0xff]  ;;  %v12381_v41 = vld [vmem:[#allocation108_spill] sm:$0xff]  ;;  %v12382_v21 = vld [vmem:[#allocation171_spill] sm:$0xff] }
 0x3ad   : > { %6958 = vmatpush1.bf16.msra.mxu0 %v12322_v39 }
 0x3ae   : > { %6960 = vmatprep.subr.bf16.mxu0 %v12326_v10  ;;  %v12347_v10 = vld [vmem:[#allocation104_spill] sm:$0xff] }
 0x3af   : > { %7234 = vmatpush1.bf16.msra.mxu1 %v12327_v18  ;;  %v12348_v18 = vpack.c.bf16 %v12346_v43, %v12347_v10  ;;  %v12390_v43 = vpack.c.bf16 %v10879_v11, %v10871_v61  ;;  %v12391_v10 = vld [vmem:[#allocation66_spill] sm:$0xff]  ;;  %v12399_v61 = vld [vmem:[#allocation61_spill] sm:$0xff] }
 0x3b0   : > { %7236 = vmatprep.subr.bf16.mxu1 %v10930_v63  ;;  %v12341_v63 = vld [vmem:[#allocation93_spill] sm:$0xff] }
 0x3b1   : > { %6962 = vmatpush1.bf16.msra.mxu0 %v12330_v17  ;;  %v12342_v39 = vpack.c.bf16 %v12340_v60, %v12341_v63  ;;  %v12370_v17 = vld [vmem:[#allocation145_spill] sm:$0xff]  ;;  %v12385_v63 = vld [vmem:[#allocation63_spill] sm:$0xff] }
 0x3b2   : > { %6964 = vmatprep.subr.bf16.mxu0 %v12333_v52  ;;  %v12372_v23 = vpack.c.bf16 %v12370_v17, %v12371_v35  ;;  %v12375_v52 = vld [vmem:[#allocation151_spill] sm:$0xff]  ;;  %v12400_v11 = vld [vmem:[#allocation197_spill] sm:$0xff]  ;;  %v12419_v17 = vld [vmem:[#allocation208_spill] sm:$0xff] }
 0x3b3   : > { %7238 = vmatpush1.bf16.msra.mxu1 %v10922_v27  ;;  %v12345_v27 = vpack.c.bf16 %v12343_v24, %v12344_v48  ;;  %v12387_v24 = vld [vmem:[#allocation159_spill] sm:$0xff] }
 0x3b4   : > { %7240 = vmatprep.subr.bf16.mxu1 %v10991_v19  ;;  %v12349_v19 = vpack.c.bf16 %v10400_v49, %v10384_v25  ;;  %v12354_v49 = vld [vmem:[#allocation58_spill] sm:$0xff]  ;;  %v12355_v25 = vand.u32 4294901760, %v12241_v40  ;;  %v12420_v35 = vld [vmem:[#allocation203_spill] sm:$0xff] }
 0x3b5   : > { %6966 = vmatpush1.bf16.msra.mxu0 %v12336_v56  ;;  %v12366_v40 = vld [vmem:[#allocation146_spill] sm:$0xff] }
 0x3b6   : > { %6968 = vmatprep.subr.bf16.mxu0 %v12339_v55  ;;  %v12383_v55 = vld [vmem:[#allocation161_spill] sm:$0xff] }
 0x3b7   : > { %7242 = vmatpush1.bf16.msra.mxu1 %v10978_v37  ;;  %v12350_v37 = vpack.c.bf16 %v10394_v13, %v10377_v42  ;;  %v12356_v13 = vld [vmem:[#allocation48_spill] sm:$0xff]  ;;  %v12357_v42 = vpack.c.bf16 %v10534_v22, %v10476_v15  ;;  %v12364_v15 = vpack.c.bf16 %v10597_v38, %v10561_v9  ;;  %v12365_v22 = vld [vmem:[#allocation10_spill] sm:$0xff]  ;;  %v12378_v38 = vld [vmem:[#allocation155_spill] sm:$0xff]  ;;  %v12384_v60 = vpack.c.bf16 %v12382_v21, %v12383_v55 }
 0x3b8   : > { %7244 = vmatprep.subr.bf16.mxu1 %v7243_v28  ;;  %v12351_v28 = vld [vmem:[#allocation46_spill] sm:$0xff]  ;;  %v12380_v56 = vpack.c.bf16 %v12378_v38, %v12379_v0  ;;  %v12427_v38 = vld [vmem:[#allocation209_spill] sm:$0xff]  ;;  %v12428_v0 = vld [vmem:[#allocation67_spill] sm:$0xff] }
 0x3b9   : > { %6970 = vmatpush1.bf16.msra.mxu0 %v12342_v39  ;;  %v12377_v9 = vld [vmem:[#allocation114_spill] sm:$0xff]  ;;  %v12432_v55 = vld [vmem:[#allocation115_spill] sm:$0xff] }
 0x3ba   : > { %6972 = vmatprep.subr.bf16.mxu0 %v12345_v27  ;;  %v12386_v39 = vld [vmem:[#allocation166_spill] sm:$0xff]  ;;  %v12389_v27 = vld [vmem:[#allocation40_spill] sm:$0xff] }
 0x3bb   : > { %7246 = vmatpush1.bf16.msra.mxu1 %v7245_v58  ;;  %v12352_v58 = vld [vmem:[#allocation12_spill] sm:$0xff]  ;;  %v12388_v48 = vpack.c.bf16 %v12386_v39, %v12387_v24  ;;  %v12431_v21 = vld [vmem:[#allocation70_spill] sm:$0xff]  ;;  %v12435_v39 = vld [vmem:[#allocation99_spill] sm:$0xff] }
 0x3bc   : > { %7248 = vmatprep.subr.bf16.mxu1 %v10723_v36  ;;  %v12360_v36 = vld [vmem:[#allocation28_spill] sm:$0xff] }
 0x3bd   : > { %6974 = vmatpush1.bf16.msra.mxu0 %v12348_v18  ;;  %v12392_v18 = vpack.c.bf16 %v10876_v59, %v10868_v2  ;;  %v12402_v2 = vld [vmem:[#allocation150_spill] sm:$0xff]  ;;  %v12403_v59 = vld [vmem:[#allocation8_spill] sm:$0xff] }
 0x3be   : > { %6976 = vmatprep.subr.bf16.mxu0 %v12349_v19  ;;  %v12393_v19 = vld [vmem:[#allocation50_spill] sm:$0xff]  ;;  %v12436_v24 = vld [vmem:[#allocation72_spill] sm:$0xff] }
 0x3bf   : > { %7250 = vmatpush1.bf16.msra.mxu1 %v10700_v51  ;;  %v12358_v51 = vld [vmem:[#allocation65_spill] sm:$0xff] }
 0x3c0   : > { %7252 = vmatprep.subr.bf16.mxu1 %v10736_v44  ;;  %v12361_v44 = vld [vmem:[#allocation59_spill] sm:$0xff] }
 0x3c1   : > { %6978 = vmatpush1.bf16.msra.mxu0 %v12350_v37  ;;  %v12394_v37 = vld [vmem:[#allocation198_spill] sm:$0xff] }
 0x3c2   : > { %6980 = vmatprep.subr.bf16.mxu0 %v12351_v28  ;;  %v12395_v28 = vpack.c.bf16 %v12394_v37, %v10915_v26  ;;  %v12406_v26 = vld [vmem:[#allocation5_spill] sm:$0xff] }
 0x3c3   : > { %7254 = vmatpush1.bf16.msra.mxu1 %v10712_v5  ;;  %v12359_v5 = vpack.c.bf16 %v10498_v8, %v10454_v14  ;;  %v12368_v14 = vpack.c.bf16 %v12366_v40, %v12367_v45  ;;  %v12369_v8 = vld [vmem:[#allocation107_spill] sm:$0xff]  ;;  %v12416_v45 = vld [vmem:[#allocation205_spill] sm:$0xff] }
 0x3c4   : > { %4999 = vmatmul.mubr.f32.vlgmr.msra.gmra.mrb[6].mxu0 %v12352_v58  ;;  %7256 = vmatprep.subr.bf16.mxu1 %v10749_v34  ;;  %v12363_v34 = vld [vmem:[#allocation95_spill] sm:$0xff]  ;;  %v12443_v37 = vld [vmem:[#allocation125_spill] sm:$0xff] }
 0x3c5   : > { %6982 = vmatpush1.bf16.msra.mxu0 %v12353_v54  ;;  %5136 = vmatprep.mubr.f32.mxu0 %v12355_v25  ;;  %v12396_v54 = vld [vmem:[#allocation69_spill] sm:$0xff]  ;;  %v12415_v40 = vld [vmem:[#allocation71_spill] sm:$0xff] }
 0x3c6   : > { %6984 = vmatprep.subr.bf16.mxu0 %v12354_v49  ;;  %v12397_v49 = vld [vmem:[#allocation4_spill] sm:$0xff] }
 0x3c7   : > { %7258 = vmatpush1.bf16.msra.mxu1 %v10727_v32  ;;  %v12362_v32 = vpack.c.bf16 %v10618_v6, %v10572_v31  ;;  %v12373_v31 = vld [vmem:[#allocation97_spill] sm:$0xff]  ;;  %v12398_v25 = vpack.c.bf16 %v12397_v49, %v10910_v7  ;;  %v12410_v7 = vld [vmem:[#allocation162_spill] sm:$0xff] }
 0x3c8   : > { %7260 = vmatprep.subr.bf16.mxu1 %v12357_v42  ;;  %v12374_v6 = vld [vmem:[#allocation157_spill] sm:$0xff]  ;;  %v12404_v42 = vld [vmem:[#allocation14_spill] sm:$0xff] }
 0x3c9   : > { %6986 = vmatpush1.bf16.msra.mxu0 %v12356_v13  ;;  %v12376_v47 = vpack.c.bf16 %v12374_v6, %v12375_v52  ;;  %v12401_v13 = vpack.c.bf16 %v10997_v53, %v12400_v11  ;;  %v12414_v53 = vld [vmem:[#allocation152_spill] sm:$0xff]  ;;  %v12424_v52 = vld [vmem:[#allocation73_spill] sm:$0xff]  ;;  %v12447_v49 = vld [vmem:[#allocation154_spill] sm:$0xff] }
 0x3ca   : > { %6988 = vmatprep.subr.bf16.mxu0 %v12358_v51  ;;  %5960 = vmatmul.mubr.f32.vlgmr.msra.gmra.mrb[60].mxu1 %v10957_v29  ;;  %v12405_v51 = vpack.c.bf16 %v12403_v59, %v12404_v42  ;;  %v12423_v6 = vld [vmem:[#allocation116_spill] sm:$0xff]  ;;  %v12450_v11 = vld [vmem:[#allocation83_spill] sm:$0xff] }
 0x3cb   : > { %7262 = vmatpush1.bf16.msra.mxu1 %v12359_v5  ;;  %6120 = vmatprep.mubr.f32.mxu1 %v12360_v36  ;;  %v12407_v5 = vld [vmem:[#allocation202_spill] sm:$0xff]  ;;  %v12453_v59 = vld [vmem:[#allocation84_spill] sm:$0xff] }
 0x3cc   : > { %7264 = vmatprep.subr.bf16.mxu1 %v12362_v32  ;;  %v12454_v42 = vld [vmem:[#allocation80_spill] sm:$0xff] }
 0x3cd   : > { %6990 = vmatpush1.bf16.msra.mxu0 %v12361_v44  ;;  %v12408_v44 = vld [vmem:[#allocation26_spill] sm:$0xff] }
 0x3ce   : > { %6992 = vmatprep.subr.bf16.mxu0 %v12363_v34  ;;  %v12409_v32 = vpack.c.bf16 %v12407_v5, %v12408_v44  ;;  %v12411_v34 = vld [vmem:[#allocation201_spill] sm:$0xff]  ;;  %v12458_v5 = vld [vmem:[#allocation175_spill] sm:$0xff] }
 0x3cf   : > { %7266 = vmatpush1.bf16.msra.mxu1 %v12364_v15  ;;  %v12412_v15 = vld [vmem:[#allocation25_spill] sm:$0xff] }
 0x3d0   : > { %7268 = vmatprep.subr.bf16.mxu1 %v12368_v14  ;;  %v12417_v14 = vpack.c.bf16 %v12415_v40, %v12416_v45  ;;  %v12459_v44 = vld [vmem:[#allocation133_spill] sm:$0xff]  ;;  %v12466_v40 = vld [vmem:[#allocation120_spill] sm:$0xff] }
 0x3d1   : > { %6994 = vmatpush1.bf16.msra.mxu0 %v12365_v22  ;;  %v12413_v22 = vpack.c.bf16 %v12411_v34, %v12412_v15  ;;  %v12462_v34 = vld [vmem:[#allocation199_spill] sm:$0xff]  ;;  %v12467_v45 = vld [vmem:[#allocation137_spill] sm:$0xff] }
 0x3d2   : > { %6996 = vmatprep.subr.bf16.mxu0 %v12369_v8  ;;  %v12418_v8 = vld [vmem:[#allocation169_spill] sm:$0xff]  ;;  %v12463_v15 = vld [vmem:[#allocation135_spill] sm:$0xff] }
 0x3d3   : > { %7270 = vmatpush1.bf16.msra.mxu1 %v12372_v23  ;;  %v12421_v23 = vpack.c.bf16 %v12419_v17, %v12420_v35  ;;  %v12470_v17 = vld [vmem:[#allocation88_spill] sm:$0xff]  ;;  %v12471_v35 = vld [vmem:[#allocation89_spill] sm:$0xff] }
 0x3d4   : > { %7272 = vmatprep.subr.bf16.mxu1 %v12376_v47  ;;  %v12425_v47 = vpack.c.bf16 %v12423_v6, %v12424_v52  ;;  %v12474_v6 = vld [vmem:[#allocation91_spill] sm:$0xff] }
 0x3d5   : > { %6998 = vmatpush1.bf16.msra.mxu0 %v12373_v31  ;;  %v12422_v31 = vld [vmem:[#allocation163_spill] sm:$0xff] }
 0x3d6   : > { %7000 = vmatprep.subr.bf16.mxu0 %v12377_v9  ;;  %v12426_v9 = vld [vmem:[#allocation112_spill] sm:$0xff]  ;;  %v12475_v52 = vld [vmem:[#allocation119_spill] sm:$0xff] }
 0x3d7   : > { %7274 = vmatpush1.bf16.msra.mxu1 %v12380_v56  ;;  %v12429_v56 = vpack.c.bf16 %v12427_v38, %v12428_v0  ;;  %v12478_v38 = vld [vmem:[#allocation181_spill] sm:$0xff] }
 0x3d8   : > { %7276 = vmatprep.subr.bf16.mxu1 %v12384_v60  ;;  %v12433_v60 = vld [vmem:[#allocation206_spill] sm:$0xff]  ;;  %v12479_v0 = vld [vmem:[#allocation121_spill] sm:$0xff] }
 0x3d9   : > { %7002 = vmatpush1.bf16.msra.mxu0 %v12381_v41  ;;  %v12430_v41 = vld [vmem:[#allocation18_spill] sm:$0xff] }
 0x3da   : > { %7004 = vmatprep.subr.bf16.mxu0 %v12385_v63  ;;  %v12434_v63 = vand.u32 4294901760, %v12360_v36  ;;  %v12444_v36 = vld [vmem:[#allocation170_spill] sm:$0xff] }
 0x3db   : > { %7278 = vmatpush1.bf16.msra.mxu1 %v12388_v48  ;;  %v12437_v48 = vld [vmem:[#allocation118_spill] sm:$0xff] }
 0x3dc   : > { %7280 = vmatprep.subr.bf16.mxu1 %v12390_v43  ;;  %v12439_v43 = vld [vmem:[#allocation110_spill] sm:$0xff] }
 0x3dd   : > { %7006 = vmatpush1.bf16.msra.mxu0 %v12389_v27  ;;  %v12438_v27 = vld [vmem:[#allocation75_spill] sm:$0xff] }
 0x3de   : > { %7008 = vmatprep.subr.bf16.mxu0 %v12391_v10  ;;  %v12440_v10 = vld [vmem:[#allocation167_spill] sm:$0xff] }
 0x3df   : > { %7282 = vmatpush1.bf16.msra.mxu1 %v12392_v18  ;;  %v12441_v18 = vld [vmem:[#allocation204_spill] sm:$0xff] }
 0x3e0   : > { %7284 = vmatprep.subr.bf16.mxu1 %v12395_v28  ;;  %v12445_v28 = vld [vmem:[#allocation81_spill] sm:$0xff] }
 0x3e1   : > { %7010 = vmatpush1.bf16.msra.mxu0 %v12393_v19  ;;  %v12442_v19 = vld [vmem:[#allocation24_spill] sm:$0xff] }
 0x3e2   : > { %7012 = vmatprep.subr.bf16.mxu0 %v12396_v54  ;;  %v12446_v54 = vand.u32 4294901760, %v12352_v58  ;;  %v12456_v58 = vld [vmem:[#allocation76_spill] sm:$0xff] }
 0x3e3   : > { %7286 = vmatpush1.bf16.msra.mxu1 %v12398_v25  ;;  %v12448_v25 = vld [vmem:[#allocation82_spill] sm:$0xff] }
 0x3e4   : > { %7288 = vmatprep.subr.bf16.mxu1 %v12401_v13  ;;  %v12451_v13 = vld [vmem:[#allocation129_spill] sm:$0xff] }
 0x3e5   : > { %7014 = vmatpush1.bf16.msra.mxu0 %v12399_v61  ;;  %v12449_v61 = vld [vmem:[#allocation172_spill] sm:$0xff] }
 0x3e6   : > { %7016 = vmatprep.subr.bf16.mxu0 %v12402_v2  ;;  %v12452_v2 = vld [vmem:[#allocation165_spill] sm:$0xff] }
 0x3e7   : > { %7290 = vmatpush1.bf16.msra.mxu1 %v12405_v51  ;;  %v12455_v51 = vld [vmem:[#allocation85_spill] sm:$0xff] }
 0x3e8   : > { %7292 = vmatprep.subr.bf16.mxu1 %v12409_v32  ;;  %v12460_v32 = vld [vmem:[#allocation78_spill] sm:$0xff] }
 0x3e9   : > { %7018 = vmatpush1.bf16.msra.mxu0 %v12406_v26  ;;  %v12457_v26 = vld [vmem:[#allocation86_spill] sm:$0xff] }
 0x3ea   : > { %7020 = vmatprep.subr.bf16.mxu0 %v12410_v7  ;;  %v12461_v7 = vld [vmem:[#allocation134_spill] sm:$0xff] }
 0x3eb   : > { %7294 = vmatpush1.bf16.msra.mxu1 %v12413_v22  ;;  %v12464_v22 = vld [vmem:[#allocation173_spill] sm:$0xff] }
 0x3ec   : > { %7296 = vmatprep.subr.bf16.mxu1 %v12417_v14  ;;  %v12468_v14 = vld [vmem:[#allocation138_spill] sm:$0xff] }
 0x3ed   : > { %7022 = vmatpush1.bf16.msra.mxu0 %v12414_v53  ;;  %v12465_v53 = vld [vmem:[#allocation136_spill] sm:$0xff] }
 0x3ee   : > { %7024 = vmatprep.subr.bf16.mxu0 %v12418_v8  ;;  %v12469_v8 = vld [vmem:[#allocation87_spill] sm:$0xff] }
 0x3ef   : > { %7298 = vmatpush1.bf16.msra.mxu1 %v12421_v23  ;;  %v12472_v23 = vld [vmem:[#allocation90_spill] sm:$0xff] }
 0x3f0   : > { %7300 = vmatprep.subr.bf16.mxu1 %v12425_v47  ;;  %v12476_v47 = vld [vmem:[#allocation32_spill] sm:$0xff] }
 0x3f1   : > { %7026 = vmatpush1.bf16.msra.mxu0 %v12422_v31  ;;  %v12473_v31 = vld [vmem:[#allocation122_spill] sm:$0xff] }
 0x3f2   : > { %7028 = vmatprep.subr.bf16.mxu0 %v12426_v9  ;;  %v12477_v9 = vld [vmem:[#allocation124_spill] sm:$0xff] }
 0x3f3   : > { %7302 = vmatpush1.bf16.msra.mxu1 %v12429_v56  ;;  %v12480_v56 = vld [vmem:[#allocation183_spill] sm:$0xff] }
 0x3f4   : > { %7304 = vmatprep.subr.bf16.mxu1 %v12431_v21 }
 0x3f5   : > { %7030 = vmatpush1.bf16.msra.mxu0 %v12430_v41  ;;  %v12481_v41 = vld [vmem:[#allocation190_spill] sm:$0xff] }
 0x3f6   : > { %7032 = vmatprep.subr.bf16.mxu0 %v12432_v55  ;;  %6123 = vmatmul.mubr.f32.vlgmr.msra.gmra.mrb[60].mxu1 %v11012_v20  ;;  %v12482_v55 = vld [vmem:[#allocation184_spill] sm:$0xff]  ;;  %v12483_v20 = vld [vmem:[#allocation191_spill] sm:$0xff] }
 0x3f7   : > { %7306 = vmatpush1.bf16.msra.mxu1 %v12433_v60  ;;  %6240 = vmatprep.mubr.f32.mxu1 %v12434_v63  ;;  %v12485_v63 = vld [vmem:[#allocation192_spill] sm:$0xff] }
 0x3f8   : > { %7308 = vmatprep.subr.bf16.mxu1 %v12436_v24 }
 0x3f9   : > { %7034 = vmatpush1.bf16.msra.mxu0 %v12435_v39  ;;  %v12486_v39 = vld [vmem:[#allocation188_spill] sm:$0xff] }
 0x3fa   : > { %7036 = vmatprep.subr.bf16.mxu0 %v12437_v48  ;;  %v12487_v48 = vld [vmem:[#allocation193_spill] sm:$0xff] }
 0x3fb   : > { %7310 = vmatpush1.bf16.msra.mxu1 %v12438_v27 }
 0x3fc   : > { %7312 = vmatprep.subr.bf16.mxu1 %v12440_v10 }
 0x3fd   : > { %7038 = vmatpush1.bf16.msra.mxu0 %v12439_v43  ;;  %v12488_v43 = vld [vmem:[#allocation189_spill] sm:$0xff] }
 0x3fe   : > { %7040 = vmatprep.subr.bf16.mxu0 %v12441_v18  ;;  %v12489_v18 = vld [vmem:[#allocation194_spill] sm:$0xff] }
 0x3ff   : > { %7314 = vmatpush1.bf16.msra.mxu1 %v12442_v19 }
 0x400   : > { %7316 = vmatprep.subr.bf16.mxu1 %v12444_v36 }
 0x401   : > { %7042 = vmatpush1.bf16.msra.mxu0 %v12443_v37  ;;  %v12490_v37 = vld [vmem:[#allocation139_spill] sm:$0xff] }
 0x402   : > { %7044 = vmatprep.subr.bf16.mxu0 %v12445_v28  ;;  %v12491_v28 = vld [vmem:[#allocation195_spill] sm:$0xff] }
 0x403   : > { %7318 = vmatpush1.bf16.msra.mxu1 %v12447_v49 }
 0x404   : > { %5140 = vmatmul.mubr.f32.vlgmr.msra.gmra.mrb[6].mxu0 %v12446_v54  ;;  %7320 = vmatprep.subr.bf16.mxu1 %v12449_v61  ;;  %v12492_v54 = vld [vmem:[#allocation140_spill] sm:$0xff] }
 0x405   : > { %7046 = vmatpush1.bf16.msra.mxu0 %v12448_v25  ;;  %5403 = vmatprep.mubr.f32.mxu0 %v12451_v13  ;;  %v12493_v25 = vld [vmem:[#allocation196_spill] sm:$0xff]  ;;  %v12495_v13 = vld [vmem:[#allocation186_spill] sm:$0xff] }
 0x406   : > { %7048 = vmatprep.subr.bf16.mxu0 %v12450_v11  ;;  %v12494_v11 = vld [vmem:[#allocation141_spill] sm:$0xff] }
 0x407   : > { %7322 = vmatpush1.bf16.msra.mxu1 %v12452_v2 }
 0x408   : > { %7324 = vmatprep.subr.bf16.mxu1 %v12454_v42 }
 0x409   : > { %7050 = vmatpush1.bf16.msra.mxu0 %v12453_v59  ;;  %v12496_v59 = vld [vmem:[#allocation142_spill] sm:$0xff] }
 0x40a   : > { %7052 = vmatprep.subr.bf16.mxu0 %v12455_v51  ;;  %v12497_v51 = vld [vmem:[#allocation143_spill] sm:$0xff] }
 0x40b   : > { %7326 = vmatpush1.bf16.msra.mxu1 %v12456_v58 }
 0x40c   : > { %7328 = vmatprep.subr.bf16.mxu1 %v12458_v5 }
 0x40d   : > { %7054 = vmatpush1.bf16.msra.mxu0 %v12457_v26  ;;  %v12498_v26 = vld [vmem:[#allocation144_spill] sm:$0xff] }
 0x40e   : > { %7056 = vmatprep.subr.bf16.mxu0 %v12459_v44  ;;  %v12499_v44 = vld [vmem:[#allocation77_spill] sm:$0xff] }
 0x40f   : > { %7330 = vmatpush1.bf16.msra.mxu1 %v12460_v32 }
 0x410   : > { %7332 = vmatprep.subr.bf16.mxu1 %v12462_v34 }
 0x411   : > { %7058 = vmatpush1.bf16.msra.mxu0 %v12461_v7  ;;  %v12500_v7 = vld [vmem:[#allocation74_spill] sm:$0xff] }
 0x412   : > { %7060 = vmatprep.subr.bf16.mxu0 %v12463_v15  ;;  %v12501_v15 = vld [vmem:[#allocation79_spill] sm:$0xff] }
 0x413   : > { %7334 = vmatpush1.bf16.msra.mxu1 %v12464_v22 }
 0x414   : > { %7336 = vmatprep.subr.bf16.mxu1 %v12466_v40 }
 0x415   : > { %7062 = vmatpush1.bf16.msra.mxu0 %v12465_v53  ;;  %v12502_v53 = vld [vmem:[#allocation29_spill] sm:$0xff] }
 0x416   : > { %7064 = vmatprep.subr.bf16.mxu0 %v12467_v45  ;;  %v12503_v45 = vld [vmem:[#allocation210_spill] sm:$0xff] }
 0x417   : > { %7338 = vmatpush1.bf16.msra.mxu1 %v12277_v62 }
 0x418   : > { %7340 = vmatprep.subr.bf16.mxu1 %v10654_v30 }
 0x419   : > { %7066 = vmatpush1.bf16.msra.mxu0 %v12468_v14  ;;  %v12505_v14 = vld [vmem:[#allocation212_spill] sm:$0xff] }
 0x41a   : > { %7068 = vmatprep.subr.bf16.mxu0 %v12469_v8  ;;  %v12507_v8 = vld [vmem:[#allocation214_spill] sm:$0xff] }
 0x41b   : > { %7342 = vmatpush1.bf16.msra.mxu1 %v12284_v50 }
 0x41c   : > { %7344 = vmatprep.subr.bf16.mxu1 %v10657_v57 }
 0x41d   : > { %7070 = vmatpush1.bf16.msra.mxu0 %v12470_v17 }
 0x41e   : > { %7072 = vmatprep.subr.bf16.mxu0 %v12471_v35 }
 0x41f   : > { %7346 = vmatpush1.bf16.msra.mxu1 %v10599_v33 }
 0x420   : > { %7348 = vmatprep.subr.bf16.mxu1 %v12473_v31 }
 0x421   : > { %7074 = vmatpush1.bf16.msra.mxu0 %v12472_v23 }
 0x422   : > { %7076 = vmatprep.subr.bf16.mxu0 %v12474_v6  ;;  %6244 = vmatmul.mubr.f32.vlgmr.msra.gmra.mrb[60].mxu1 %v5664_v1  ;;  %v12484_v1 = vld [vmem:[#allocation185_spill] sm:$0xff] }
 0x423   : > { %7350 = vmatpush1.bf16.msra.mxu1 %v12475_v52  ;;  %6447 = vmatprep.mubr.f32.mxu1 %v12297_v12 }
 0x424   : > { %7352 = vmatprep.subr.bf16.mxu1 %v12477_v9 }
 0x425   : > { %7078 = vmatpush1.bf16.msra.mxu0 %v12476_v47 }
 0x426   : > { %7080 = vmatprep.subr.bf16.mxu0 %v12478_v38 }
 0x427   : > { %7354 = vmatpush1.bf16.msra.mxu1 %v12479_v0 }
 0x428   : > { %7356 = vmatprep.subr.bf16.mxu1 %v12481_v41 }
 0x429   : > { %7082 = vmatpush1.bf16.msra.mxu0 %v12480_v56 }
 0x42a   : > { %7084 = vmatprep.subr.bf16.mxu0 %v12482_v55 }
 0x42b   : > { %7358 = vmatpush1.bf16.msra.mxu1 %v12483_v20 }
 0x42c   : > { %7360 = vmatprep.subr.bf16.mxu1 %v12485_v63 }
 0x42d   : > { %7086 = vmatpush1.bf16.msra.mxu0 %v12484_v1 }
 0x42e   : > { %7088 = vmatprep.subr.bf16.mxu0 %v12486_v39 }
 0x42f   : > { %7362 = vmatpush1.bf16.msra.mxu1 %v12487_v48 }
 0x430   : > { %7364 = vmatprep.subr.bf16.mxu1 %v12489_v18 }
 0x431   : > { %7090 = vmatpush1.bf16.msra.mxu0 %v12488_v43 }
 0x432   : > { %7092 = vmatprep.subr.bf16.mxu0 %v12490_v37 }
 0x433   : > { %7366 = vmatpush1.bf16.msra.mxu1 %v12491_v28 }
 0x434   : > { %7368 = vmatprep.subr.bf16.mxu1 %v12493_v25 }
 0x435   : > { %7094 = vmatpush1.bf16.msra.mxu0 %v12492_v54 }
 0x436   : > { %7096 = vmatprep.subr.bf16.mxu0 %v12494_v11 }
 0x437   : > { %7370 = vmatpush1.bf16.msra.mxu1 %v12495_v13 }
 0x438   : > { %7372 = vmatprep.subr.bf16.mxu1 %v11034_v3  ;;  %v12504_v3 = vld [vmem:[#allocation211_spill] sm:$0xff] }
 0x439   : > { %7098 = vmatpush1.bf16.msra.mxu0 %v12496_v59 }
 0x43a   : > { %7100 = vmatprep.subr.bf16.mxu0 %v12497_v51 }
 0x43b   : > { %7374 = vmatpush1.bf16.msra.mxu1 %v11029_v16  ;;  %v12506_v16 = vld [vmem:[#allocation213_spill] sm:$0xff] }
 0x43c   : > { %7376 = vmatprep.subr.bf16.mxu1 %v11057_v4 }
 0x43d   : > { %7102 = vmatpush1.bf16.msra.mxu0 %v12498_v26 }
 0x43e   : > { %7104 = vmatprep.subr.bf16.mxu0 %v12499_v44 }
 0x43f   : > { %7378 = vmatpush1.bf16.msra.mxu1 %v11055_v46 }
 0x440   : > { %7380 = vmatprep.subr.bf16.mxu1 %v12501_v15 }
 0x441   : > { %7106 = vmatpush1.bf16.msra.mxu0 %v12500_v7 }
 0x443   : > { %7382 = vmatpush1.bf16.msra.mxu1 %v12503_v45 }
 0x444   : > { %5405 = vmatmul.mubr.f32.vlgmr.msra.gmra.mrb[6].mxu0 %v12502_v53  ;;  %7384 = vmatprep.subr.bf16.mxu1 %v12504_v3 }
 0x447   : > { %7386 = vmatpush1.bf16.msra.mxu1 %v12505_v14 }
 0x448   : > { %7388 = vmatprep.subr.bf16.mxu1 %v12506_v16 }
 0x44b   : > { %7390 = vmatpush1.bf16.msra.mxu1 %v12507_v8 }
 0x44c   : > { %7392 = vmatprep.subr.bf16.mxu1 %v12431_v21 }
 0x44e   : > { %6449 = vmatmul.mubr.f32.vlgmr.msra.gmra.mrb[60].mxu1 %v10957_v29 }
 0x44f   : > { %7394 = vmatpush1.bf16.msra.mxu1 %v12433_v60  ;;  %6564 = vmatprep.mubr.f32.mxu1 %v12297_v12  ;;  %v4254_v12 = vpop.permute.xlu1 %4253 }
 0x450   : > { %7396 = vmatprep.subr.bf16.mxu1 %v12436_v24 }
 0x453   : > { %7398 = vmatpush1.bf16.msra.mxu1 %v12438_v27 }
 0x454   : > { %7400 = vmatprep.subr.bf16.mxu1 %v12440_v10 }
 0x457   : > { %7402 = vmatpush1.bf16.msra.mxu1 %v12442_v19 }
 0x458   : > { %7404 = vmatprep.subr.bf16.mxu1 %v12444_v36 }
 0x45b   : > { %7406 = vmatpush1.bf16.msra.mxu1 %v12447_v49 }
 0x45c   : > { %7408 = vmatprep.subr.bf16.mxu1 %v12449_v61 }
 0x45f   : > { %7410 = vmatpush1.bf16.msra.mxu1 %v12452_v2 }
 0x460   : > { %7412 = vmatprep.subr.bf16.mxu1 %v12454_v42 }
 0x463   : > { %7414 = vmatpush1.bf16.msra.mxu1 %v12456_v58 }
 0x464   : > { %7416 = vmatprep.subr.bf16.mxu1 %v12458_v5 }
 0x467   : > { %7418 = vmatpush1.bf16.msra.mxu1 %v12460_v32 }
 0x468   : > { %7420 = vmatprep.subr.bf16.mxu1 %v12462_v34 }
 0x46b   : > { %7422 = vmatpush1.bf16.msra.mxu1 %v12464_v22 }
 0x46c   : > { %7424 = vmatprep.subr.bf16.mxu1 %v12466_v40 }
 0x46f   : > { %7426 = vmatpush1.bf16.msra.mxu1 %v12277_v62 }
 0x470   : > { %7428 = vmatprep.subr.bf16.mxu1 %v10654_v30 }
 0x473   : > { %7430 = vmatpush1.bf16.msra.mxu1 %v12284_v50 }
 0x474   : > { %7432 = vmatprep.subr.bf16.mxu1 %v10657_v57 }
 0x477   : > { %7434 = vmatpush1.bf16.msra.mxu1 %v10599_v33 }
 0x47a   : > { %6566 = vmatmul.mubr.f32.vlgmr.msra.gmra.mrb[60].mxu1 %v10957_v29 }
 0x517   : > { %v5406_v46 = vpop.f32.mrb[6].mxu0 }
 0x518   : > { %v5408_v4 = vpop.f32.mrb[7].mxu0  ;;  %v7441_v21 = vadd.f32 %v5406_v46, %v4254_v12 }
 0x519   : > { %v7443_v60 = vadd.f32 %v5408_v4, %v4254_v12 }
 0x54d   : > { %v6567_v24 = vpop.f32.mrb[60].mxu1 }
 0x54e   : > { %v7442_v27 = vadd.f32 %v7441_v21, %v6567_v24  ;;  %v6569_v10 = vpop.f32.mrb[61].mxu1 }
 0x54f   : > { %v7444_v62 = vadd.f32 %v7443_v60, %v6569_v10 }
 0x551   : > { %v6574_v30 = vcombine.low %v7442_v27, %v7444_v62 }
 0x553   : > { %6576 = vst [vmem:[%s298_s23] sm:$0x77] %v6574_v30 }
 0x554 PF: > { %s17_s24 = sadd.s32 1, %s7732_s24  }
 0x555   : > { %p14_p4 = scmp.ge.s32.totalorder %s17_s24, 4  }
 0x557   :  { %16 = sbr.rel (!%p14_p4) target bundleno = 1 (0x1), region = 81 }

</bundles_post_ra>
